<compile_context>
chip_gen: v6e
topology: v6e:2x2x1
jax: 0.10.0
libtpu: 0.0.40
codegen_flags: <defaults>
</compile_context>

<pallas_src>
import functools

import jax
import jax.numpy as jnp
from jax.experimental import pallas as pl
from jax.experimental.pallas import tpu as pltpu


# ----------------------------------------------------------------------------
# Padding / sizing helpers (wrapper-side)
# ----------------------------------------------------------------------------
def _round_up(n, m):
    return ((n + m - 1) // m) * m


def _pad_axis(a, axis, new_size, value=0.0):
    pad = new_size - a.shape[axis]
    if pad == 0:
        return a
    cfg = [(0, 0)] * a.ndim
    cfg[axis] = (0, pad)
    return jnp.pad(a, cfg, constant_values=value)


def _pad_gate_blocks(a, H, Hp):
    """Last dim 4*H -> 4*Hp, keeping PyTorch gate order (i,f,g,o), one Hp block per gate."""
    if H == Hp:
        return a
    parts = jnp.split(a, 4, axis=-1)
    return jnp.concatenate([_pad_axis(p, -1, Hp) for p in parts], axis=-1)


def _choose_chunk(S, cap=64):
    """Largest divisor of S that is <= cap (timesteps per hoisted-gate chunk)."""
    if S <= cap:
        return S
    for c in range(cap, 0, -1):
        if S % c == 0:
            return c
    return S


# ----------------------------------------------------------------------------
# Pallas kernel: fc1 + ReLU -> stacked LSTM -> fc2 + softmax, all in VMEM.
# ----------------------------------------------------------------------------
def _generator_kernel(x_ref, w1_ref, b1_ref, wih_ref, whh_ref, bias_ref,
                      w2_ref, b2_ref, out_ref, seq_buf, gx_buf,
                      *, S, BB, Hp, L, Op, Tc):
    # x_ref:   (S, BB, I)        bf16, time-major input (one batch block)
    # w1_ref:  (I, Hp) bf16      b1_ref: (1, Hp) f32
    # wih_ref/whh_ref: (L, Hp, 4Hp) bf16    bias_ref: (L, 1, 4Hp) f32 (bih+bhh)
    # w2_ref:  (Hp, Op) bf16     b2_ref: (1, Op) f32 (padded lanes = -1e30)
    # out_ref: (S, BB, Op) f32
    # seq_buf: VMEM (S*BB, Hp)  bf16  — current layer's output sequence
    # gx_buf:  VMEM (Tc*BB, 4Hp) f32  — hoisted x @ W_ih (+bias) for one S-chunk
    SB = S * BB
    I = x_ref.shape[-1]
    n_chunks = S // Tc

    def sigm(v):  # one EUP tanh per gate instead of exp + divide
        return 0.5 * jnp.tanh(0.5 * v) + 0.5

    # ---- dropout1 (identity, eval) + fc1 + ReLU: one (S*BB, I) @ (I, Hp) GEMM ----
    x = x_ref[...].reshape(SB, I)                                       # bf16
    h = jnp.dot(x, w1_ref[...], preferred_element_type=jnp.float32) + b1_ref[...]
    seq_buf[...] = jnp.maximum(h, 0.0).astype(seq_buf.dtype)

    # ---- stacked LSTM (inter-layer dropout identity in eval) --------------------
    for l in range(L):
        wih = wih_ref[l]                                                # (Hp, 4Hp) bf16
        whh = whh_ref[l]                                                # (Hp, 4Hp) bf16
        bias = bias_ref[l]                                              # (1, 4Hp)  f32

        h_bf = jnp.zeros((BB, Hp), jnp.bfloat16)                        # h0 = 0
        c = jnp.zeros((BB, Hp), jnp.float32)                            # c0 = 0

        for ck in range(n_chunks):
            row0 = ck * Tc * BB
            # Hoisted input projection for this chunk of Tc timesteps: one big
            # MXU GEMM, independent of the recurrence (seq_buf rows of this
            # chunk have not been overwritten yet).
            gx_buf[...] = (
                jnp.dot(seq_buf[pl.ds(row0, Tc * BB), :], wih,
                        preferred_element_type=jnp.float32) + bias)

            # Recurrence over the chunk, fully unrolled (Tc static & small):
            # static slices, full LLO visibility.
            for t in range(Tc):
                gates = gx_buf[pl.ds(t * BB, BB), :] + jnp.dot(
                    h_bf, whh, preferred_element_type=jnp.float32)      # (BB, 4Hp) f32
                # Lane-aligned gate blocks (Hp multiple of 128), order i, f, g, o.
                i_g = sigm(gates[:, 0 * Hp:1 * Hp])
                f_g = sigm(gates[:, 1 * Hp:2 * Hp])
                g_g = jnp.tanh(gates[:, 2 * Hp:3 * Hp])
                o_g = sigm(gates[:, 3 * Hp:4 * Hp])
                c = f_g * c + i_g * g_g
                # Single bf16 cast of h: reused for both next-step matmul
                # operand and the seq_buf store.
                h_bf = (o_g * jnp.tanh(c)).astype(jnp.bfloat16)
                # Overwrite in place: this layer's output is next layer's input.
                seq_buf[pl.ds(row0 + t * BB, BB), :] = h_bf

    # ---- dropout2 (identity, eval) + fc2 + softmax(dim=2): one batched GEMM -----
    logits = (jnp.dot(seq_buf[...], w2_ref[...],
                      preferred_element_type=jnp.float32) + b2_ref[...])
    # Padded output lanes carry b2 = -1e30 -> exp underflows to exactly 0, so the
    # softmax over the real lanes is unaffected and padded outputs are exactly 0.
    m = jnp.max(logits, axis=-1, keepdims=True)
    e = jnp.exp(logits - m)
    denom = jnp.sum(e, axis=-1, keepdims=True)
    probs = e / denom                              # exact: rows sum to 1 in f32
    out_ref[...] = probs.reshape(S, BB, Op)        # lane-dense store


# ----------------------------------------------------------------------------
# Wrapper
# ----------------------------------------------------------------------------
def lstm_generator_forward(x, params, *, batch_block=None, chunk_cap=64):
    """x: (B, S, input_size) float32 -> (B, S, output_size) float32."""
    B, S, I = x.shape
    H = params["W1"].shape[1]
    L = params["Wih"].shape[0]
    O = params["W2"].shape[1]

    Hp = _round_up(H, 128)       # lane-aligned hidden size
    Op = _round_up(O, 128)       # lane-aligned output size

    # ---- batch blocking: big blocks, >=2 grid steps when batch allows (v7x) ----
    B8 = _round_up(B, 8)
    if batch_block is not None:
        BB = min(_round_up(batch_block, 8), B8)
    elif B8 <= 8:
        BB = B8
    elif B8 <= 512:
        BB = _round_up(-(-B8 // 2), 8)   # two parallel steps -> both v7x TCs busy
    else:
        BB = 256
    Bp = _round_up(B8, BB)

    Tc = _choose_chunk(S, chunk_cap)     # timesteps per hoisted-gate chunk

    # ---- weight prep: pad to lane-aligned shapes, bf16 for MXU operands --------
    # Zero padding keeps padded h/c lanes exactly 0 through the whole network
    # (zero W_ih/W_hh rows & cols, zero biases in padded positions).
    W1 = _pad_axis(params["W1"], 1, Hp).astype(jnp.bfloat16)                  # (I, Hp)
    b1 = _pad_axis(params["b1"].reshape(1, H), 1, Hp)                         # (1, Hp)

    Wih = _pad_axis(_pad_gate_blocks(params["Wih"], H, Hp), 1, Hp)            # (L, Hp, 4Hp)
    Whh = _pad_axis(_pad_gate_blocks(params["Whh"], H, Hp), 1, Hp)
    Wih = Wih.astype(jnp.bfloat16)
    Whh = Whh.astype(jnp.bfloat16)
    bias = _pad_gate_blocks(params["bih"] + params["bhh"], H, Hp)
    bias = bias.reshape(L, 1, 4 * Hp)                                         # f32

    W2 = _pad_axis(_pad_axis(params["W2"], 0, Hp), 1, Op).astype(jnp.bfloat16)  # (Hp, Op)
    b2 = _pad_axis(params["b2"].reshape(1, O), 1, Op, value=-1e30)              # (1, Op)

    # ---- input prep: time-major, batch padded to block multiple, bf16 ----------
    x_tm = jnp.transpose(x, (1, 0, 2))                     # (S, B, I)
    x_tm = _pad_axis(x_tm, 1, Bp).astype(jnp.bfloat16)     # (S, Bp, I)

    # ---- explicit VMEM budget (double-buffered blocks + resident scratch) ------
    bf, f32 = 2, 4
    footprint = (
        2 * (S * BB * I) * bf                            # x block, 2 pipeline bufs
        + 2 * (S * BB * Op) * f32                        # out block, 2 pipeline bufs
        + 2 * (I * Hp + Hp * Op + 2 * L * Hp * 4 * Hp) * bf   # weights, 2 bufs
        + 2 * (Hp + Op + L * 4 * Hp) * f32               # biases, 2 bufs
        + (S * BB * Hp) * bf                             # seq_buf scratch
        + (Tc * BB * 4 * Hp) * f32                       # gx_buf scratch
    )
    vmem_limit = int(min(100 * 2**20, max(8 * 2**20, 2 * footprint)))

    kernel = functools.partial(_generator_kernel,
                               S=S, BB=BB, Hp=Hp, L=L, Op=Op, Tc=Tc)
    grid = (Bp // BB,)   # batch-parallel grid (megacore sharding on v7x)

    out_tm = pl.pallas_call(
        kernel,
        out_shape=jax.ShapeDtypeStruct((S, Bp, Op), jnp.float32),
        grid_spec=pltpu.PrefetchScalarGridSpec(
            num_scalar_prefetch=0,
            grid=grid,
            in_specs=[
                pl.BlockSpec((S, BB, I), lambda i: (0, i, 0)),        # x (batch-blocked)
                pl.BlockSpec((I, Hp), lambda i: (0, 0)),              # W1
                pl.BlockSpec((1, Hp), lambda i: (0, 0)),              # b1
                pl.BlockSpec((L, Hp, 4 * Hp), lambda i: (0, 0, 0)),   # Wih
                pl.BlockSpec((L, Hp, 4 * Hp), lambda i: (0, 0, 0)),   # Whh
                pl.BlockSpec((L, 1, 4 * Hp), lambda i: (0, 0, 0)),    # bih+bhh
                pl.BlockSpec((Hp, Op), lambda i: (0, 0)),             # W2
                pl.BlockSpec((1, Op), lambda i: (0, 0)),              # b2
            ],
            out_specs=pl.BlockSpec((S, BB, Op), lambda i: (0, i, 0)),
            scratch_shapes=[
                pltpu.VMEM((S * BB, Hp), jnp.bfloat16),        # layer output sequence
                pltpu.VMEM((Tc * BB, 4 * Hp), jnp.float32),    # hoisted x @ Wih (chunk)
            ],
        ),
        compiler_params=pltpu.CompilerParams(
            dimension_semantics=("parallel",),
            vmem_limit_bytes=vmem_limit,
        ),
    )(x_tm, W1, b1, Wih, Whh, bias, W2, b2)

    out = jnp.transpose(out_tm, (1, 0, 2))                 # (Bp, S, Op)
    return out[:B, :, :O]


# ----------------------------------------------------------------------------
# Pure-JAX reference (same math) for validation.
#   matmul_dtype=jnp.bfloat16 mirrors the kernel's bf16-operand / f32-accumulate
#   matmuls; matmul_dtype=jnp.float32 is the exact PyTorch (f32) semantics.
# ----------------------------------------------------------------------------
def reference_forward(x, params, matmul_dtype=jnp.float32):
    B, S, I = x.shape
    H = params["W1"].shape[1]
    L = params["Wih"].shape[0]

    def mm(a, b):
        return jnp.dot(a.astype(matmul_dtype), b.astype(matmul_dtype),
                       preferred_element_type=jnp.float32)

    h = jnp.maximum(
        mm(x.reshape(B * S, I), params["W1"]).reshape(B, S, H) + params["b1"], 0.0)
    for l in range(L):
        hp = jnp.zeros((B, H), jnp.float32)
        cp = jnp.zeros((B, H), jnp.float32)
        outs = []
        for t in range(S):
            g = (mm(h[:, t, :], params["Wih"][l]) + mm(hp, params["Whh"][l])
                 + params["bih"][l] + params["bhh"][l])
            i_g = jax.nn.sigmoid(g[:, 0 * H:1 * H])
            f_g = jax.nn.sigmoid(g[:, 1 * H:2 * H])
            g_g = jnp.tanh(g[:, 2 * H:3 * H])
            o_g = jax.nn.sigmoid(g[:, 3 * H:4 * H])
            cp = f_g * cp + i_g * g_g
            hp = o_g * jnp.tanh(cp)
            outs.append(hp)
        h = jnp.stack(outs, axis=1)
    logits = (mm(h.reshape(B * S, H), params["W2"]).reshape(B, S, -1)
              + params["b2"])
    return jax.nn.softmax(logits, axis=2)


# ----------------------------------------------------------------------------
# Deterministic parameter init + demo run.
# ----------------------------------------------------------------------------
def init_params(key, input_size, hidden_size, num_layers, output_size):
    ks = jax.random.split(key, 8)
    s = 0.1
    H = hidden_size
    return {
        "W1": s * jax.random.normal(ks[0], (input_size, H), jnp.float32),
        "b1": s * jax.random.normal(ks[1], (H,), jnp.float32),
        # All LSTM layers have input size == hidden_size (layer 0 sees fc1 output).
        "Wih": s * jax.random.normal(ks[2], (num_layers, H, 4 * H), jnp.float32),
        "Whh": s * jax.random.normal(ks[3], (num_layers, H, 4 * H), jnp.float32),
        "bih": s * jax.random.normal(ks[4], (num_layers, 4 * H), jnp.float32),
        "bhh": s * jax.random.normal(ks[5], (num_layers, 4 * H), jnp.float32),
        "W2": s * jax.random.normal(ks[6], (H, output_size), jnp.float32),
        "b2": s * jax.random.normal(ks[7], (output_size,), jnp.float32),
    }


if __name__ == "__main__":
    # Small shapes consistent with the module's forward:
    # x: (batch=2, seq=8, input_size=16), hidden=32, num_layers=2, output=16.
    B, S, I, H, L, O = 2, 8, 16, 32, 2, 16

    key = jax.random.PRNGKey(0)
    k_x, k_p = jax.random.split(key)
    x = jax.random.normal(k_x, (B, S, I), jnp.float32)
    params = init_params(k_p, I, H, L, O)

    out = jax.block_until_ready(lstm_generator_forward(x, params))

    ref_bf16 = reference_forward(x, params, matmul_dtype=jnp.bfloat16)
    ref_f32 = reference_forward(x, params, matmul_dtype=jnp.float32)
    ref_bf16, ref_f32 = jax.block_until_ready((ref_bf16, ref_f32))

    assert out.shape == (B, S, O), out.shape
    err_bf16 = float(jnp.max(jnp.abs(out - ref_bf16)))   # same-precision reference
    err_f32 = float(jnp.max(jnp.abs(out - ref_f32)))     # exact f32 module semantics
    assert err_bf16 < 2e-3, err_bf16
    assert err_f32 < 2e-2, err_f32
    # Exact normalization -> rows of the softmax sum to 1 (f32 rounding only).
    assert jnp.allclose(jnp.sum(out, axis=2), 1.0, atol=1e-3)

    # TODO(synk): dropout1/dropout2 and the LSTM inter-layer dropout are identity
    # here (eval-mode semantics); training-mode stochastic dropout would need
    # pltpu.prng_* inside the kernel.
    print("KERNEL_OK")
</pallas_src>

<mosaic_0001>
module attributes {stable_mosaic.version = 11 : i64} {
  func.func @_generator_kernel(%arg0: i32, %arg1: memref<8x8x16xbf16, #tpu.memory_space<vmem>>, %arg2: memref<16x128xbf16, #tpu.memory_space<vmem>>, %arg3: memref<1x128xf32, #tpu.memory_space<vmem>>, %arg4: memref<2x128x512xbf16, #tpu.memory_space<vmem>>, %arg5: memref<2x128x512xbf16, #tpu.memory_space<vmem>>, %arg6: memref<2x1x512xf32, #tpu.memory_space<vmem>>, %arg7: memref<128x128xbf16, #tpu.memory_space<vmem>>, %arg8: memref<1x128xf32, #tpu.memory_space<vmem>>, %arg9: memref<8x8x128xf32, #tpu.memory_space<vmem>>, %arg10: memref<64x128xbf16, #tpu.memory_space<vmem>>, %arg11: memref<64x512xf32, #tpu.memory_space<vmem>>) attributes {dimension_semantics = [#tpu.dimension_semantics<parallel>], iteration_bounds = array<i64: 1>, scalar_prefetch = 0 : i64, scratch_operands = 2 : i64, tpu.core_type = #tpu.core_type<tc>, window_params = [{transform_indices = @transform_0, window_bounds = array<i64: 8, 8, 16>}, {pipeline_mode = #tpu.pipeline_mode<synchronous>, transform_indices = @transform_1, window_bounds = array<i64: 16, 128>}, {pipeline_mode = #tpu.pipeline_mode<synchronous>, transform_indices = @transform_2, window_bounds = array<i64: 1, 128>}, {pipeline_mode = #tpu.pipeline_mode<synchronous>, transform_indices = @transform_3, window_bounds = array<i64: 2, 128, 512>}, {pipeline_mode = #tpu.pipeline_mode<synchronous>, transform_indices = @transform_4, window_bounds = array<i64: 2, 128, 512>}, {pipeline_mode = #tpu.pipeline_mode<synchronous>, transform_indices = @transform_5, window_bounds = array<i64: 2, 1, 512>}, {pipeline_mode = #tpu.pipeline_mode<synchronous>, transform_indices = @transform_6, window_bounds = array<i64: 128, 128>}, {pipeline_mode = #tpu.pipeline_mode<synchronous>, transform_indices = @transform_7, window_bounds = array<i64: 1, 128>}, {transform_indices = @transform_8, window_bounds = array<i64: 8, 8, 128>}]} {
    %c0 = arith.constant 0 : index
    %c0_0 = arith.constant 0 : index
    %c0_1 = arith.constant 0 : index
    %0 = vector.load %arg1[%c0, %c0_0, %c0_1] : memref<8x8x16xbf16, #tpu.memory_space<vmem>>, vector<8x8x16xbf16>
    %1 = vector.shape_cast %0 : vector<8x8x16xbf16> to vector<64x16xbf16>
    %c0_2 = arith.constant 0 : index
    %c0_3 = arith.constant 0 : index
    %2 = vector.load %arg2[%c0_2, %c0_3] : memref<16x128xbf16, #tpu.memory_space<vmem>>, vector<16x128xbf16>
    %cst = arith.constant dense<0.000000e+00> : vector<64x128xf32>
    %3 = tpu.matmul %1, %2, %cst {dimension_numbers = #tpu.dot_dimension_numbers<[1], [0], [0], [1], [0, 0, 1, 1], [], []>} : vector<64x16xbf16>, vector<16x128xbf16>, vector<64x128xf32> -> vector<64x128xf32>
    %c0_4 = arith.constant 0 : index
    %c0_5 = arith.constant 0 : index
    %4 = vector.load %arg3[%c0_4, %c0_5] : memref<1x128xf32, #tpu.memory_space<vmem>>, vector<1x128xf32>
    %5 = vector.broadcast %4 : vector<1x128xf32> to vector<64x128xf32>
    %6 = arith.addf %3, %5 : vector<64x128xf32>
    %cst_6 = arith.constant 0.000000e+00 : f32
    %7 = vector.broadcast %cst_6 : f32 to vector<64x128xf32>
    %8 = arith.maximumf %6, %7 : vector<64x128xf32>
    %9 = arith.truncf %8 : vector<64x128xf32> to vector<64x128xbf16>
    %c0_7 = arith.constant 0 : index
    %c0_8 = arith.constant 0 : index
    %10 = vector.load %arg10[%c0_7, %c0_8] : memref<64x128xbf16, #tpu.memory_space<vmem>>, vector<64x128xbf16>
    tpu.vector_store %arg10[%c0_7, %c0_8], %9 {strides = array<i32>} : memref<64x128xbf16, #tpu.memory_space<vmem>>, vector<64x128xbf16>,
    %c0_9 = arith.constant 0 : index
    %c0_10 = arith.constant 0 : index
    %c0_11 = arith.constant 0 : index
    %11 = vector.load %arg4[%c0_9, %c0_10, %c0_11] : memref<2x128x512xbf16, #tpu.memory_space<vmem>>, vector<1x128x512xbf16>
    %12 = vector.shape_cast %11 : vector<1x128x512xbf16> to vector<128x512xbf16>
    %c0_12 = arith.constant 0 : index
    %c0_13 = arith.constant 0 : index
    %c0_14 = arith.constant 0 : index
    %13 = vector.load %arg5[%c0_12, %c0_13, %c0_14] : memref<2x128x512xbf16, #tpu.memory_space<vmem>>, vector<1x128x512xbf16>
    %14 = vector.shape_cast %13 : vector<1x128x512xbf16> to vector<128x512xbf16>
    %c0_15 = arith.constant 0 : index
    %c0_16 = arith.constant 0 : index
    %c0_17 = arith.constant 0 : index
    %15 = vector.load %arg6[%c0_15, %c0_16, %c0_17] : memref<2x1x512xf32, #tpu.memory_space<vmem>>, vector<1x1x512xf32>
    %16 = vector.shape_cast %15 : vector<1x1x512xf32> to vector<1x512xf32>
    %cst_18 = arith.constant 0.000000e+00 : bf16
    %17 = vector.broadcast %cst_18 : bf16 to vector<8x128xbf16>
    %cst_19 = arith.constant 0.000000e+00 : f32
    %18 = vector.broadcast %cst_19 : f32 to vector<8x128xf32>
    %c0_20 = arith.constant 0 : index
    %c0_21 = arith.constant 0 : index
    %19 = vector.load %arg10[%c0_20, %c0_21] : memref<64x128xbf16, #tpu.memory_space<vmem>>, vector<64x128xbf16>
    %cst_22 = arith.constant dense<0.000000e+00> : vector<64x512xf32>
    %20 = tpu.matmul %19, %12, %cst_22 {dimension_numbers = #tpu.dot_dimension_numbers<[1], [0], [0], [1], [0, 0, 1, 1], [], []>} : vector<64x128xbf16>, vector<128x512xbf16>, vector<64x512xf32> -> vector<64x512xf32>
    %21 = vector.broadcast %16 : vector<1x512xf32> to vector<64x512xf32>
    %22 = arith.addf %20, %21 : vector<64x512xf32>
    %c0_23 = arith.constant 0 : index
    %c0_24 = arith.constant 0 : index
    %23 = vector.load %arg11[%c0_23, %c0_24] : memref<64x512xf32, #tpu.memory_space<vmem>>, vector<64x512xf32>
    tpu.vector_store %arg11[%c0_23, %c0_24], %22 {strides = array<i32>} : memref<64x512xf32, #tpu.memory_space<vmem>>, vector<64x512xf32>,
    %c0_25 = arith.constant 0 : index
    %c0_26 = arith.constant 0 : index
    %24 = vector.load %arg11[%c0_25, %c0_26] : memref<64x512xf32, #tpu.memory_space<vmem>>, vector<8x512xf32>
    %cst_27 = arith.constant dense<0.000000e+00> : vector<8x512xf32>
    %25 = tpu.matmul %17, %14, %cst_27 {dimension_numbers = #tpu.dot_dimension_numbers<[1], [0], [0], [1], [0, 0, 1, 1], [], []>} : vector<8x128xbf16>, vector<128x512xbf16>, vector<8x512xf32> -> vector<8x512xf32>
    %26 = arith.addf %24, %25 : vector<8x512xf32>
    %27 = vector.extract_strided_slice %26 {offsets = [0, 0], sizes = [8, 128], strides = [1, 1]} : vector<8x512xf32> to vector<8x128xf32>
    %cst_28 = arith.constant 5.000000e-01 : f32
    %28 = vector.broadcast %cst_28 : f32 to vector<8x128xf32>
    %29 = arith.mulf %28, %27 : vector<8x128xf32>
    %30 = math.tanh %29 : vector<8x128xf32>
    %cst_29 = arith.constant 5.000000e-01 : f32
    %31 = vector.broadcast %cst_29 : f32 to vector<8x128xf32>
    %32 = arith.mulf %31, %30 : vector<8x128xf32>
    %cst_30 = arith.constant 5.000000e-01 : f32
    %33 = vector.broadcast %cst_30 : f32 to vector<8x128xf32>
    %34 = arith.addf %32, %33 : vector<8x128xf32>
    %35 = vector.extract_strided_slice %26 {offsets = [0, 128], sizes = [8, 128], strides = [1, 1]} : vector<8x512xf32> to vector<8x128xf32>
    %cst_31 = arith.constant 5.000000e-01 : f32
    %36 = vector.broadcast %cst_31 : f32 to vector<8x128xf32>
    %37 = arith.mulf %36, %35 : vector<8x128xf32>
    %38 = math.tanh %37 : vector<8x128xf32>
    %cst_32 = arith.constant 5.000000e-01 : f32
    %39 = vector.broadcast %cst_32 : f32 to vector<8x128xf32>
    %40 = arith.mulf %39, %38 : vector<8x128xf32>
    %cst_33 = arith.constant 5.000000e-01 : f32
    %41 = vector.broadcast %cst_33 : f32 to vector<8x128xf32>
    %42 = arith.addf %40, %41 : vector<8x128xf32>
    %43 = vector.extract_strided_slice %26 {offsets = [0, 256], sizes = [8, 128], strides = [1, 1]} : vector<8x512xf32> to vector<8x128xf32>
    %44 = math.tanh %43 : vector<8x128xf32>
    %45 = vector.extract_strided_slice %26 {offsets = [0, 384], sizes = [8, 128], strides = [1, 1]} : vector<8x512xf32> to vector<8x128xf32>
    %cst_34 = arith.constant 5.000000e-01 : f32
    %46 = vector.broadcast %cst_34 : f32 to vector<8x128xf32>
    %47 = arith.mulf %46, %45 : vector<8x128xf32>
    %48 = math.tanh %47 : vector<8x128xf32>
    %cst_35 = arith.constant 5.000000e-01 : f32
    %49 = vector.broadcast %cst_35 : f32 to vector<8x128xf32>
    %50 = arith.mulf %49, %48 : vector<8x128xf32>
    %cst_36 = arith.constant 5.000000e-01 : f32
    %51 = vector.broadcast %cst_36 : f32 to vector<8x128xf32>
    %52 = arith.addf %50, %51 : vector<8x128xf32>
    %53 = arith.mulf %42, %18 : vector<8x128xf32>
    %54 = arith.mulf %34, %44 : vector<8x128xf32>
    %55 = arith.addf %53, %54 : vector<8x128xf32>
    %56 = math.tanh %55 : vector<8x128xf32>
    %57 = arith.mulf %52, %56 : vector<8x128xf32>
    %58 = arith.truncf %57 : vector<8x128xf32> to vector<8x128xbf16>
    %c0_37 = arith.constant 0 : index
    %c0_38 = arith.constant 0 : index
    %59 = vector.load %arg10[%c0_37, %c0_38] : memref<64x128xbf16, #tpu.memory_space<vmem>>, vector<8x128xbf16>
    tpu.vector_store %arg10[%c0_37, %c0_38], %58 {strides = array<i32>} : memref<64x128xbf16, #tpu.memory_space<vmem>>, vector<8x128xbf16>,
    %c8 = arith.constant 8 : index
    %c0_39 = arith.constant 0 : index
    %60 = vector.load %arg11[%c8, %c0_39] : memref<64x512xf32, #tpu.memory_space<vmem>>, vector<8x512xf32>
    %cst_40 = arith.constant dense<0.000000e+00> : vector<8x512xf32>
    %61 = tpu.matmul %58, %14, %cst_40 {dimension_numbers = #tpu.dot_dimension_numbers<[1], [0], [0], [1], [0, 0, 1, 1], [], []>} : vector<8x128xbf16>, vector<128x512xbf16>, vector<8x512xf32> -> vector<8x512xf32>
    %62 = arith.addf %60, %61 : vector<8x512xf32>
    %63 = vector.extract_strided_slice %62 {offsets = [0, 0], sizes = [8, 128], strides = [1, 1]} : vector<8x512xf32> to vector<8x128xf32>
    %cst_41 = arith.constant 5.000000e-01 : f32
    %64 = vector.broadcast %cst_41 : f32 to vector<8x128xf32>
    %65 = arith.mulf %64, %63 : vector<8x128xf32>
    %66 = math.tanh %65 : vector<8x128xf32>
    %cst_42 = arith.constant 5.000000e-01 : f32
    %67 = vector.broadcast %cst_42 : f32 to vector<8x128xf32>
    %68 = arith.mulf %67, %66 : vector<8x128xf32>
    %cst_43 = arith.constant 5.000000e-01 : f32
    %69 = vector.broadcast %cst_43 : f32 to vector<8x128xf32>
    %70 = arith.addf %68, %69 : vector<8x128xf32>
    %71 = vector.extract_strided_slice %62 {offsets = [0, 128], sizes = [8, 128], strides = [1, 1]} : vector<8x512xf32> to vector<8x128xf32>
    %cst_44 = arith.constant 5.000000e-01 : f32
    %72 = vector.broadcast %cst_44 : f32 to vector<8x128xf32>
    %73 = arith.mulf %72, %71 : vector<8x128xf32>
    %74 = math.tanh %73 : vector<8x128xf32>
    %cst_45 = arith.constant 5.000000e-01 : f32
    %75 = vector.broadcast %cst_45 : f32 to vector<8x128xf32>
    %76 = arith.mulf %75, %74 : vector<8x128xf32>
    %cst_46 = arith.constant 5.000000e-01 : f32
    %77 = vector.broadcast %cst_46 : f32 to vector<8x128xf32>
    %78 = arith.addf %76, %77 : vector<8x128xf32>
    %79 = vector.extract_strided_slice %62 {offsets = [0, 256], sizes = [8, 128], strides = [1, 1]} : vector<8x512xf32> to vector<8x128xf32>
    %80 = math.tanh %79 : vector<8x128xf32>
    %81 = vector.extract_strided_slice %62 {offsets = [0, 384], sizes = [8, 128], strides = [1, 1]} : vector<8x512xf32> to vector<8x128xf32>
    %cst_47 = arith.constant 5.000000e-01 : f32
    %82 = vector.broadcast %cst_47 : f32 to vector<8x128xf32>
    %83 = arith.mulf %82, %81 : vector<8x128xf32>
    %84 = math.tanh %83 : vector<8x128xf32>
    %cst_48 = arith.constant 5.000000e-01 : f32
    %85 = vector.broadcast %cst_48 : f32 to vector<8x128xf32>
    %86 = arith.mulf %85, %84 : vector<8x128xf32>
    %cst_49 = arith.constant 5.000000e-01 : f32
    %87 = vector.broadcast %cst_49 : f32 to vector<8x128xf32>
    %88 = arith.addf %86, %87 : vector<8x128xf32>
    %89 = arith.mulf %78, %55 : vector<8x128xf32>
    %90 = arith.mulf %70, %80 : vector<8x128xf32>
    %91 = arith.addf %89, %90 : vector<8x128xf32>
    %92 = math.tanh %91 : vector<8x128xf32>
    %93 = arith.mulf %88, %92 : vector<8x128xf32>
    %94 = arith.truncf %93 : vector<8x128xf32> to vector<8x128xbf16>
    %c8_50 = arith.constant 8 : index
    %c0_51 = arith.constant 0 : index
    %95 = vector.load %arg10[%c8_50, %c0_51] : memref<64x128xbf16, #tpu.memory_space<vmem>>, vector<8x128xbf16>
    tpu.vector_store %arg10[%c8_50, %c0_51], %94 {strides = array<i32>} : memref<64x128xbf16, #tpu.memory_space<vmem>>, vector<8x128xbf16>,
    %c16 = arith.constant 16 : index
    %c0_52 = arith.constant 0 : index
    %96 = vector.load %arg11[%c16, %c0_52] : memref<64x512xf32, #tpu.memory_space<vmem>>, vector<8x512xf32>
    %cst_53 = arith.constant dense<0.000000e+00> : vector<8x512xf32>
    %97 = tpu.matmul %94, %14, %cst_53 {dimension_numbers = #tpu.dot_dimension_numbers<[1], [0], [0], [1], [0, 0, 1, 1], [], []>} : vector<8x128xbf16>, vector<128x512xbf16>, vector<8x512xf32> -> vector<8x512xf32>
    %98 = arith.addf %96, %97 : vector<8x512xf32>
    %99 = vector.extract_strided_slice %98 {offsets = [0, 0], sizes = [8, 128], strides = [1, 1]} : vector<8x512xf32> to vector<8x128xf32>
    %cst_54 = arith.constant 5.000000e-01 : f32
    %100 = vector.broadcast %cst_54 : f32 to vector<8x128xf32>
    %101 = arith.mulf %100, %99 : vector<8x128xf32>
    %102 = math.tanh %101 : vector<8x128xf32>
    %cst_55 = arith.constant 5.000000e-01 : f32
    %103 = vector.broadcast %cst_55 : f32 to vector<8x128xf32>
    %104 = arith.mulf %103, %102 : vector<8x128xf32>
    %cst_56 = arith.constant 5.000000e-01 : f32
    %105 = vector.broadcast %cst_56 : f32 to vector<8x128xf32>
    %106 = arith.addf %104, %105 : vector<8x128xf32>
    %107 = vector.extract_strided_slice %98 {offsets = [0, 128], sizes = [8, 128], strides = [1, 1]} : vector<8x512xf32> to vector<8x128xf32>
    %cst_57 = arith.constant 5.000000e-01 : f32
    %108 = vector.broadcast %cst_57 : f32 to vector<8x128xf32>
    %109 = arith.mulf %108, %107 : vector<8x128xf32>
    %110 = math.tanh %109 : vector<8x128xf32>
    %cst_58 = arith.constant 5.000000e-01 : f32
    %111 = vector.broadcast %cst_58 : f32 to vector<8x128xf32>
    %112 = arith.mulf %111, %110 : vector<8x128xf32>
    %cst_59 = arith.constant 5.000000e-01 : f32
    %113 = vector.broadcast %cst_59 : f32 to vector<8x128xf32>
    %114 = arith.addf %112, %113 : vector<8x128xf32>
    %115 = vector.extract_strided_slice %98 {offsets = [0, 256], sizes = [8, 128], strides = [1, 1]} : vector<8x512xf32> to vector<8x128xf32>
    %116 = math.tanh %115 : vector<8x128xf32>
    %117 = vector.extract_strided_slice %98 {offsets = [0, 384], sizes = [8, 128], strides = [1, 1]} : vector<8x512xf32> to vector<8x128xf32>
    %cst_60 = arith.constant 5.000000e-01 : f32
    %118 = vector.broadcast %cst_60 : f32 to vector<8x128xf32>
    %119 = arith.mulf %118, %117 : vector<8x128xf32>
    %120 = math.tanh %119 : vector<8x128xf32>
    %cst_61 = arith.constant 5.000000e-01 : f32
    %121 = vector.broadcast %cst_61 : f32 to vector<8x128xf32>
    %122 = arith.mulf %121, %120 : vector<8x128xf32>
    %cst_62 = arith.constant 5.000000e-01 : f32
    %123 = vector.broadcast %cst_62 : f32 to vector<8x128xf32>
    %124 = arith.addf %122, %123 : vector<8x128xf32>
    %125 = arith.mulf %114, %91 : vector<8x128xf32>
    %126 = arith.mulf %106, %116 : vector<8x128xf32>
    %127 = arith.addf %125, %126 : vector<8x128xf32>
    %128 = math.tanh %127 : vector<8x128xf32>
    %129 = arith.mulf %124, %128 : vector<8x128xf32>
    %130 = arith.truncf %129 : vector<8x128xf32> to vector<8x128xbf16>
    %c16_63 = arith.constant 16 : index
    %c0_64 = arith.constant 0 : index
    %131 = vector.load %arg10[%c16_63, %c0_64] : memref<64x128xbf16, #tpu.memory_space<vmem>>, vector<8x128xbf16>
    tpu.vector_store %arg10[%c16_63, %c0_64], %130 {strides = array<i32>} : memref<64x128xbf16, #tpu.memory_space<vmem>>, vector<8x128xbf16>,
    %c24 = arith.constant 24 : index
    %c0_65 = arith.constant 0 : index
    %132 = vector.load %arg11[%c24, %c0_65] : memref<64x512xf32, #tpu.memory_space<vmem>>, vector<8x512xf32>
    %cst_66 = arith.constant dense<0.000000e+00> : vector<8x512xf32>
    %133 = tpu.matmul %130, %14, %cst_66 {dimension_numbers = #tpu.dot_dimension_numbers<[1], [0], [0], [1], [0, 0, 1, 1], [], []>} : vector<8x128xbf16>, vector<128x512xbf16>, vector<8x512xf32> -> vector<8x512xf32>
    %134 = arith.addf %132, %133 : vector<8x512xf32>
    %135 = vector.extract_strided_slice %134 {offsets = [0, 0], sizes = [8, 128], strides = [1, 1]} : vector<8x512xf32> to vector<8x128xf32>
    %cst_67 = arith.constant 5.000000e-01 : f32
    %136 = vector.broadcast %cst_67 : f32 to vector<8x128xf32>
    %137 = arith.mulf %136, %135 : vector<8x128xf32>
    %138 = math.tanh %137 : vector<8x128xf32>
    %cst_68 = arith.constant 5.000000e-01 : f32
    %139 = vector.broadcast %cst_68 : f32 to vector<8x128xf32>
    %140 = arith.mulf %139, %138 : vector<8x128xf32>
    %cst_69 = arith.constant 5.000000e-01 : f32
    %141 = vector.broadcast %cst_69 : f32 to vector<8x128xf32>
    %142 = arith.addf %140, %141 : vector<8x128xf32>
    %143 = vector.extract_strided_slice %134 {offsets = [0, 128], sizes = [8, 128], strides = [1, 1]} : vector<8x512xf32> to vector<8x128xf32>
    %cst_70 = arith.constant 5.000000e-01 : f32
    %144 = vector.broadcast %cst_70 : f32 to vector<8x128xf32>
    %145 = arith.mulf %144, %143 : vector<8x128xf32>
    %146 = math.tanh %145 : vector<8x128xf32>
    %cst_71 = arith.constant 5.000000e-01 : f32
    %147 = vector.broadcast %cst_71 : f32 to vector<8x128xf32>
    %148 = arith.mulf %147, %146 : vector<8x128xf32>
    %cst_72 = arith.constant 5.000000e-01 : f32
    %149 = vector.broadcast %cst_72 : f32 to vector<8x128xf32>
    %150 = arith.addf %148, %149 : vector<8x128xf32>
    %151 = vector.extract_strided_slice %134 {offsets = [0, 256], sizes = [8, 128], strides = [1, 1]} : vector<8x512xf32> to vector<8x128xf32>
    %152 = math.tanh %151 : vector<8x128xf32>
    %153 = vector.extract_strided_slice %134 {offsets = [0, 384], sizes = [8, 128], strides = [1, 1]} : vector<8x512xf32> to vector<8x128xf32>
    %cst_73 = arith.constant 5.000000e-01 : f32
    %154 = vector.broadcast %cst_73 : f32 to vector<8x128xf32>
    %155 = arith.mulf %154, %153 : vector<8x128xf32>
    %156 = math.tanh %155 : vector<8x128xf32>
    %cst_74 = arith.constant 5.000000e-01 : f32
    %157 = vector.broadcast %cst_74 : f32 to vector<8x128xf32>
    %158 = arith.mulf %157, %156 : vector<8x128xf32>
    %cst_75 = arith.constant 5.000000e-01 : f32
    %159 = vector.broadcast %cst_75 : f32 to vector<8x128xf32>
    %160 = arith.addf %158, %159 : vector<8x128xf32>
    %161 = arith.mulf %150, %127 : vector<8x128xf32>
    %162 = arith.mulf %142, %152 : vector<8x128xf32>
    %163 = arith.addf %161, %162 : vector<8x128xf32>
    %164 = math.tanh %163 : vector<8x128xf32>
    %165 = arith.mulf %160, %164 : vector<8x128xf32>
    %166 = arith.truncf %165 : vector<8x128xf32> to vector<8x128xbf16>
    %c24_76 = arith.constant 24 : index
    %c0_77 = arith.constant 0 : index
    %167 = vector.load %arg10[%c24_76, %c0_77] : memref<64x128xbf16, #tpu.memory_space<vmem>>, vector<8x128xbf16>
    tpu.vector_store %arg10[%c24_76, %c0_77], %166 {strides = array<i32>} : memref<64x128xbf16, #tpu.memory_space<vmem>>, vector<8x128xbf16>,
    %c32 = arith.constant 32 : index
    %c0_78 = arith.constant 0 : index
    %168 = vector.load %arg11[%c32, %c0_78] : memref<64x512xf32, #tpu.memory_space<vmem>>, vector<8x512xf32>
    %cst_79 = arith.constant dense<0.000000e+00> : vector<8x512xf32>
    %169 = tpu.matmul %166, %14, %cst_79 {dimension_numbers = #tpu.dot_dimension_numbers<[1], [0], [0], [1], [0, 0, 1, 1], [], []>} : vector<8x128xbf16>, vector<128x512xbf16>, vector<8x512xf32> -> vector<8x512xf32>
    %170 = arith.addf %168, %169 : vector<8x512xf32>
    %171 = vector.extract_strided_slice %170 {offsets = [0, 0], sizes = [8, 128], strides = [1, 1]} : vector<8x512xf32> to vector<8x128xf32>
    %cst_80 = arith.constant 5.000000e-01 : f32
    %172 = vector.broadcast %cst_80 : f32 to vector<8x128xf32>
    %173 = arith.mulf %172, %171 : vector<8x128xf32>
    %174 = math.tanh %173 : vector<8x128xf32>
    %cst_81 = arith.constant 5.000000e-01 : f32
    %175 = vector.broadcast %cst_81 : f32 to vector<8x128xf32>
    %176 = arith.mulf %175, %174 : vector<8x128xf32>
    %cst_82 = arith.constant 5.000000e-01 : f32
    %177 = vector.broadcast %cst_82 : f32 to vector<8x128xf32>
    %178 = arith.addf %176, %177 : vector<8x128xf32>
    %179 = vector.extract_strided_slice %170 {offsets = [0, 128], sizes = [8, 128], strides = [1, 1]} : vector<8x512xf32> to vector<8x128xf32>
    %cst_83 = arith.constant 5.000000e-01 : f32
    %180 = vector.broadcast %cst_83 : f32 to vector<8x128xf32>
    %181 = arith.mulf %180, %179 : vector<8x128xf32>
    %182 = math.tanh %181 : vector<8x128xf32>
    %cst_84 = arith.constant 5.000000e-01 : f32
    %183 = vector.broadcast %cst_84 : f32 to vector<8x128xf32>
    %184 = arith.mulf %183, %182 : vector<8x128xf32>
    %cst_85 = arith.constant 5.000000e-01 : f32
    %185 = vector.broadcast %cst_85 : f32 to vector<8x128xf32>
    %186 = arith.addf %184, %185 : vector<8x128xf32>
    %187 = vector.extract_strided_slice %170 {offsets = [0, 256], sizes = [8, 128], strides = [1, 1]} : vector<8x512xf32> to vector<8x128xf32>
    %188 = math.tanh %187 : vector<8x128xf32>
    %189 = vector.extract_strided_slice %170 {offsets = [0, 384], sizes = [8, 128], strides = [1, 1]} : vector<8x512xf32> to vector<8x128xf32>
    %cst_86 = arith.constant 5.000000e-01 : f32
    %190 = vector.broadcast %cst_86 : f32 to vector<8x128xf32>
    %191 = arith.mulf %190, %189 : vector<8x128xf32>
    %192 = math.tanh %191 : vector<8x128xf32>
    %cst_87 = arith.constant 5.000000e-01 : f32
    %193 = vector.broadcast %cst_87 : f32 to vector<8x128xf32>
    %194 = arith.mulf %193, %192 : vector<8x128xf32>
    %cst_88 = arith.constant 5.000000e-01 : f32
    %195 = vector.broadcast %cst_88 : f32 to vector<8x128xf32>
    %196 = arith.addf %194, %195 : vector<8x128xf32>
    %197 = arith.mulf %186, %163 : vector<8x128xf32>
    %198 = arith.mulf %178, %188 : vector<8x128xf32>
    %199 = arith.addf %197, %198 : vector<8x128xf32>
    %200 = math.tanh %199 : vector<8x128xf32>
    %201 = arith.mulf %196, %200 : vector<8x128xf32>
    %202 = arith.truncf %201 : vector<8x128xf32> to vector<8x128xbf16>
    %c32_89 = arith.constant 32 : index
    %c0_90 = arith.constant 0 : index
    %203 = vector.load %arg10[%c32_89, %c0_90] : memref<64x128xbf16, #tpu.memory_space<vmem>>, vector<8x128xbf16>
    tpu.vector_store %arg10[%c32_89, %c0_90], %202 {strides = array<i32>} : memref<64x128xbf16, #tpu.memory_space<vmem>>, vector<8x128xbf16>,
    %c40 = arith.constant 40 : index
    %c0_91 = arith.constant 0 : index
    %204 = vector.load %arg11[%c40, %c0_91] : memref<64x512xf32, #tpu.memory_space<vmem>>, vector<8x512xf32>
    %cst_92 = arith.constant dense<0.000000e+00> : vector<8x512xf32>
    %205 = tpu.matmul %202, %14, %cst_92 {dimension_numbers = #tpu.dot_dimension_numbers<[1], [0], [0], [1], [0, 0, 1, 1], [], []>} : vector<8x128xbf16>, vector<128x512xbf16>, vector<8x512xf32> -> vector<8x512xf32>
    %206 = arith.addf %204, %205 : vector<8x512xf32>
    %207 = vector.extract_strided_slice %206 {offsets = [0, 0], sizes = [8, 128], strides = [1, 1]} : vector<8x512xf32> to vector<8x128xf32>
    %cst_93 = arith.constant 5.000000e-01 : f32
    %208 = vector.broadcast %cst_93 : f32 to vector<8x128xf32>
    %209 = arith.mulf %208, %207 : vector<8x128xf32>
    %210 = math.tanh %209 : vector<8x128xf32>
    %cst_94 = arith.constant 5.000000e-01 : f32
    %211 = vector.broadcast %cst_94 : f32 to vector<8x128xf32>
    %212 = arith.mulf %211, %210 : vector<8x128xf32>
    %cst_95 = arith.constant 5.000000e-01 : f32
    %213 = vector.broadcast %cst_95 : f32 to vector<8x128xf32>
    %214 = arith.addf %212, %213 : vector<8x128xf32>
    %215 = vector.extract_strided_slice %206 {offsets = [0, 128], sizes = [8, 128], strides = [1, 1]} : vector<8x512xf32> to vector<8x128xf32>
    %cst_96 = arith.constant 5.000000e-01 : f32
    %216 = vector.broadcast %cst_96 : f32 to vector<8x128xf32>
    %217 = arith.mulf %216, %215 : vector<8x128xf32>
    %218 = math.tanh %217 : vector<8x128xf32>
    %cst_97 = arith.constant 5.000000e-01 : f32
    %219 = vector.broadcast %cst_97 : f32 to vector<8x128xf32>
    %220 = arith.mulf %219, %218 : vector<8x128xf32>
    %cst_98 = arith.constant 5.000000e-01 : f32
    %221 = vector.broadcast %cst_98 : f32 to vector<8x128xf32>
    %222 = arith.addf %220, %221 : vector<8x128xf32>
    %223 = vector.extract_strided_slice %206 {offsets = [0, 256], sizes = [8, 128], strides = [1, 1]} : vector<8x512xf32> to vector<8x128xf32>
    %224 = math.tanh %223 : vector<8x128xf32>
    %225 = vector.extract_strided_slice %206 {offsets = [0, 384], sizes = [8, 128], strides = [1, 1]} : vector<8x512xf32> to vector<8x128xf32>
    %cst_99 = arith.constant 5.000000e-01 : f32
    %226 = vector.broadcast %cst_99 : f32 to vector<8x128xf32>
    %227 = arith.mulf %226, %225 : vector<8x128xf32>
    %228 = math.tanh %227 : vector<8x128xf32>
    %cst_100 = arith.constant 5.000000e-01 : f32
    %229 = vector.broadcast %cst_100 : f32 to vector<8x128xf32>
    %230 = arith.mulf %229, %228 : vector<8x128xf32>
    %cst_101 = arith.constant 5.000000e-01 : f32
    %231 = vector.broadcast %cst_101 : f32 to vector<8x128xf32>
    %232 = arith.addf %230, %231 : vector<8x128xf32>
    %233 = arith.mulf %222, %199 : vector<8x128xf32>
    %234 = arith.mulf %214, %224 : vector<8x128xf32>
    %235 = arith.addf %233, %234 : vector<8x128xf32>
    %236 = math.tanh %235 : vector<8x128xf32>
    %237 = arith.mulf %232, %236 : vector<8x128xf32>
    %238 = arith.truncf %237 : vector<8x128xf32> to vector<8x128xbf16>
    %c40_102 = arith.constant 40 : index
    %c0_103 = arith.constant 0 : index
    %239 = vector.load %arg10[%c40_102, %c0_103] : memref<64x128xbf16, #tpu.memory_space<vmem>>, vector<8x128xbf16>
    tpu.vector_store %arg10[%c40_102, %c0_103], %238 {strides = array<i32>} : memref<64x128xbf16, #tpu.memory_space<vmem>>, vector<8x128xbf16>,
    %c48 = arith.constant 48 : index
    %c0_104 = arith.constant 0 : index
    %240 = vector.load %arg11[%c48, %c0_104] : memref<64x512xf32, #tpu.memory_space<vmem>>, vector<8x512xf32>
    %cst_105 = arith.constant dense<0.000000e+00> : vector<8x512xf32>
    %241 = tpu.matmul %238, %14, %cst_105 {dimension_numbers = #tpu.dot_dimension_numbers<[1], [0], [0], [1], [0, 0, 1, 1], [], []>} : vector<8x128xbf16>, vector<128x512xbf16>, vector<8x512xf32> -> vector<8x512xf32>
    %242 = arith.addf %240, %241 : vector<8x512xf32>
    %243 = vector.extract_strided_slice %242 {offsets = [0, 0], sizes = [8, 128], strides = [1, 1]} : vector<8x512xf32> to vector<8x128xf32>
    %cst_106 = arith.constant 5.000000e-01 : f32
    %244 = vector.broadcast %cst_106 : f32 to vector<8x128xf32>
    %245 = arith.mulf %244, %243 : vector<8x128xf32>
    %246 = math.tanh %245 : vector<8x128xf32>
    %cst_107 = arith.constant 5.000000e-01 : f32
    %247 = vector.broadcast %cst_107 : f32 to vector<8x128xf32>
    %248 = arith.mulf %247, %246 : vector<8x128xf32>
    %cst_108 = arith.constant 5.000000e-01 : f32
    %249 = vector.broadcast %cst_108 : f32 to vector<8x128xf32>
    %250 = arith.addf %248, %249 : vector<8x128xf32>
    %251 = vector.extract_strided_slice %242 {offsets = [0, 128], sizes = [8, 128], strides = [1, 1]} : vector<8x512xf32> to vector<8x128xf32>
    %cst_109 = arith.constant 5.000000e-01 : f32
    %252 = vector.broadcast %cst_109 : f32 to vector<8x128xf32>
    %253 = arith.mulf %252, %251 : vector<8x128xf32>
    %254 = math.tanh %253 : vector<8x128xf32>
    %cst_110 = arith.constant 5.000000e-01 : f32
    %255 = vector.broadcast %cst_110 : f32 to vector<8x128xf32>
    %256 = arith.mulf %255, %254 : vector<8x128xf32>
    %cst_111 = arith.constant 5.000000e-01 : f32
    %257 = vector.broadcast %cst_111 : f32 to vector<8x128xf32>
    %258 = arith.addf %256, %257 : vector<8x128xf32>
    %259 = vector.extract_strided_slice %242 {offsets = [0, 256], sizes = [8, 128], strides = [1, 1]} : vector<8x512xf32> to vector<8x128xf32>
    %260 = math.tanh %259 : vector<8x128xf32>
    %261 = vector.extract_strided_slice %242 {offsets = [0, 384], sizes = [8, 128], strides = [1, 1]} : vector<8x512xf32> to vector<8x128xf32>
    %cst_112 = arith.constant 5.000000e-01 : f32
    %262 = vector.broadcast %cst_112 : f32 to vector<8x128xf32>
    %263 = arith.mulf %262, %261 : vector<8x128xf32>
    %264 = math.tanh %263 : vector<8x128xf32>
    %cst_113 = arith.constant 5.000000e-01 : f32
    %265 = vector.broadcast %cst_113 : f32 to vector<8x128xf32>
    %266 = arith.mulf %265, %264 : vector<8x128xf32>
    %cst_114 = arith.constant 5.000000e-01 : f32
    %267 = vector.broadcast %cst_114 : f32 to vector<8x128xf32>
    %268 = arith.addf %266, %267 : vector<8x128xf32>
    %269 = arith.mulf %258, %235 : vector<8x128xf32>
    %270 = arith.mulf %250, %260 : vector<8x128xf32>
    %271 = arith.addf %269, %270 : vector<8x128xf32>
    %272 = math.tanh %271 : vector<8x128xf32>
    %273 = arith.mulf %268, %272 : vector<8x128xf32>
    %274 = arith.truncf %273 : vector<8x128xf32> to vector<8x128xbf16>
    %c48_115 = arith.constant 48 : index
    %c0_116 = arith.constant 0 : index
    %275 = vector.load %arg10[%c48_115, %c0_116] : memref<64x128xbf16, #tpu.memory_space<vmem>>, vector<8x128xbf16>
    tpu.vector_store %arg10[%c48_115, %c0_116], %274 {strides = array<i32>} : memref<64x128xbf16, #tpu.memory_space<vmem>>, vector<8x128xbf16>,
    %c56 = arith.constant 56 : index
    %c0_117 = arith.constant 0 : index
    %276 = vector.load %arg11[%c56, %c0_117] : memref<64x512xf32, #tpu.memory_space<vmem>>, vector<8x512xf32>
    %cst_118 = arith.constant dense<0.000000e+00> : vector<8x512xf32>
    %277 = tpu.matmul %274, %14, %cst_118 {dimension_numbers = #tpu.dot_dimension_numbers<[1], [0], [0], [1], [0, 0, 1, 1], [], []>} : vector<8x128xbf16>, vector<128x512xbf16>, vector<8x512xf32> -> vector<8x512xf32>
    %278 = arith.addf %276, %277 : vector<8x512xf32>
    %279 = vector.extract_strided_slice %278 {offsets = [0, 0], sizes = [8, 128], strides = [1, 1]} : vector<8x512xf32> to vector<8x128xf32>
    %cst_119 = arith.constant 5.000000e-01 : f32
    %280 = vector.broadcast %cst_119 : f32 to vector<8x128xf32>
    %281 = arith.mulf %280, %279 : vector<8x128xf32>
    %282 = math.tanh %281 : vector<8x128xf32>
    %cst_120 = arith.constant 5.000000e-01 : f32
    %283 = vector.broadcast %cst_120 : f32 to vector<8x128xf32>
    %284 = arith.mulf %283, %282 : vector<8x128xf32>
    %cst_121 = arith.constant 5.000000e-01 : f32
    %285 = vector.broadcast %cst_121 : f32 to vector<8x128xf32>
    %286 = arith.addf %284, %285 : vector<8x128xf32>
    %287 = vector.extract_strided_slice %278 {offsets = [0, 128], sizes = [8, 128], strides = [1, 1]} : vector<8x512xf32> to vector<8x128xf32>
    %cst_122 = arith.constant 5.000000e-01 : f32
    %288 = vector.broadcast %cst_122 : f32 to vector<8x128xf32>
    %289 = arith.mulf %288, %287 : vector<8x128xf32>
    %290 = math.tanh %289 : vector<8x128xf32>
    %cst_123 = arith.constant 5.000000e-01 : f32
    %291 = vector.broadcast %cst_123 : f32 to vector<8x128xf32>
    %292 = arith.mulf %291, %290 : vector<8x128xf32>
    %cst_124 = arith.constant 5.000000e-01 : f32
    %293 = vector.broadcast %cst_124 : f32 to vector<8x128xf32>
    %294 = arith.addf %292, %293 : vector<8x128xf32>
    %295 = vector.extract_strided_slice %278 {offsets = [0, 256], sizes = [8, 128], strides = [1, 1]} : vector<8x512xf32> to vector<8x128xf32>
    %296 = math.tanh %295 : vector<8x128xf32>
    %297 = vector.extract_strided_slice %278 {offsets = [0, 384], sizes = [8, 128], strides = [1, 1]} : vector<8x512xf32> to vector<8x128xf32>
    %cst_125 = arith.constant 5.000000e-01 : f32
    %298 = vector.broadcast %cst_125 : f32 to vector<8x128xf32>
    %299 = arith.mulf %298, %297 : vector<8x128xf32>
    %300 = math.tanh %299 : vector<8x128xf32>
    %cst_126 = arith.constant 5.000000e-01 : f32
    %301 = vector.broadcast %cst_126 : f32 to vector<8x128xf32>
    %302 = arith.mulf %301, %300 : vector<8x128xf32>
    %cst_127 = arith.constant 5.000000e-01 : f32
    %303 = vector.broadcast %cst_127 : f32 to vector<8x128xf32>
    %304 = arith.addf %302, %303 : vector<8x128xf32>
    %305 = arith.mulf %294, %271 : vector<8x128xf32>
    %306 = arith.mulf %286, %296 : vector<8x128xf32>
    %307 = arith.addf %305, %306 : vector<8x128xf32>
    %308 = math.tanh %307 : vector<8x128xf32>
    %309 = arith.mulf %304, %308 : vector<8x128xf32>
    %310 = arith.truncf %309 : vector<8x128xf32> to vector<8x128xbf16>
    %c56_128 = arith.constant 56 : index
    %c0_129 = arith.constant 0 : index
    %311 = vector.load %arg10[%c56_128, %c0_129] : memref<64x128xbf16, #tpu.memory_space<vmem>>, vector<8x128xbf16>
    tpu.vector_store %arg10[%c56_128, %c0_129], %310 {strides = array<i32>} : memref<64x128xbf16, #tpu.memory_space<vmem>>, vector<8x128xbf16>,
    %c1 = arith.constant 1 : index
    %c0_130 = arith.constant 0 : index
    %c0_131 = arith.constant 0 : index
    %312 = vector.load %arg4[%c1, %c0_130, %c0_131] : memref<2x128x512xbf16, #tpu.memory_space<vmem>>, vector<1x128x512xbf16>
    %313 = vector.shape_cast %312 : vector<1x128x512xbf16> to vector<128x512xbf16>
    %c1_132 = arith.constant 1 : index
    %c0_133 = arith.constant 0 : index
    %c0_134 = arith.constant 0 : index
    %314 = vector.load %arg5[%c1_132, %c0_133, %c0_134] : memref<2x128x512xbf16, #tpu.memory_space<vmem>>, vector<1x128x512xbf16>
    %315 = vector.shape_cast %314 : vector<1x128x512xbf16> to vector<128x512xbf16>
    %c1_135 = arith.constant 1 : index
    %c0_136 = arith.constant 0 : index
    %c0_137 = arith.constant 0 : index
    %316 = vector.load %arg6[%c1_135, %c0_136, %c0_137] : memref<2x1x512xf32, #tpu.memory_space<vmem>>, vector<1x1x512xf32>
    %317 = vector.shape_cast %316 : vector<1x1x512xf32> to vector<1x512xf32>
    %cst_138 = arith.constant 0.000000e+00 : bf16
    %318 = vector.broadcast %cst_138 : bf16 to vector<8x128xbf16>
    %cst_139 = arith.constant 0.000000e+00 : f32
    %319 = vector.broadcast %cst_139 : f32 to vector<8x128xf32>
    %c0_140 = arith.constant 0 : index
    %c0_141 = arith.constant 0 : index
    %320 = vector.load %arg10[%c0_140, %c0_141] : memref<64x128xbf16, #tpu.memory_space<vmem>>, vector<64x128xbf16>
    %cst_142 = arith.constant dense<0.000000e+00> : vector<64x512xf32>
    %321 = tpu.matmul %320, %313, %cst_142 {dimension_numbers = #tpu.dot_dimension_numbers<[1], [0], [0], [1], [0, 0, 1, 1], [], []>} : vector<64x128xbf16>, vector<128x512xbf16>, vector<64x512xf32> -> vector<64x512xf32>
    %322 = vector.broadcast %317 : vector<1x512xf32> to vector<64x512xf32>
    %323 = arith.addf %321, %322 : vector<64x512xf32>
    %c0_143 = arith.constant 0 : index
    %c0_144 = arith.constant 0 : index
    %324 = vector.load %arg11[%c0_143, %c0_144] : memref<64x512xf32, #tpu.memory_space<vmem>>, vector<64x512xf32>
    tpu.vector_store %arg11[%c0_143, %c0_144], %323 {strides = array<i32>} : memref<64x512xf32, #tpu.memory_space<vmem>>, vector<64x512xf32>,
    %c0_145 = arith.constant 0 : index
    %c0_146 = arith.constant 0 : index
    %325 = vector.load %arg11[%c0_145, %c0_146] : memref<64x512xf32, #tpu.memory_space<vmem>>, vector<8x512xf32>
    %cst_147 = arith.constant dense<0.000000e+00> : vector<8x512xf32>
    %326 = tpu.matmul %318, %315, %cst_147 {dimension_numbers = #tpu.dot_dimension_numbers<[1], [0], [0], [1], [0, 0, 1, 1], [], []>} : vector<8x128xbf16>, vector<128x512xbf16>, vector<8x512xf32> -> vector<8x512xf32>
    %327 = arith.addf %325, %326 : vector<8x512xf32>
    %328 = vector.extract_strided_slice %327 {offsets = [0, 0], sizes = [8, 128], strides = [1, 1]} : vector<8x512xf32> to vector<8x128xf32>
    %cst_148 = arith.constant 5.000000e-01 : f32
    %329 = vector.broadcast %cst_148 : f32 to vector<8x128xf32>
    %330 = arith.mulf %329, %328 : vector<8x128xf32>
    %331 = math.tanh %330 : vector<8x128xf32>
    %cst_149 = arith.constant 5.000000e-01 : f32
    %332 = vector.broadcast %cst_149 : f32 to vector<8x128xf32>
    %333 = arith.mulf %332, %331 : vector<8x128xf32>
    %cst_150 = arith.constant 5.000000e-01 : f32
    %334 = vector.broadcast %cst_150 : f32 to vector<8x128xf32>
    %335 = arith.addf %333, %334 : vector<8x128xf32>
    %336 = vector.extract_strided_slice %327 {offsets = [0, 128], sizes = [8, 128], strides = [1, 1]} : vector<8x512xf32> to vector<8x128xf32>
    %cst_151 = arith.constant 5.000000e-01 : f32
    %337 = vector.broadcast %cst_151 : f32 to vector<8x128xf32>
    %338 = arith.mulf %337, %336 : vector<8x128xf32>
    %339 = math.tanh %338 : vector<8x128xf32>
    %cst_152 = arith.constant 5.000000e-01 : f32
    %340 = vector.broadcast %cst_152 : f32 to vector<8x128xf32>
    %341 = arith.mulf %340, %339 : vector<8x128xf32>
    %cst_153 = arith.constant 5.000000e-01 : f32
    %342 = vector.broadcast %cst_153 : f32 to vector<8x128xf32>
    %343 = arith.addf %341, %342 : vector<8x128xf32>
    %344 = vector.extract_strided_slice %327 {offsets = [0, 256], sizes = [8, 128], strides = [1, 1]} : vector<8x512xf32> to vector<8x128xf32>
    %345 = math.tanh %344 : vector<8x128xf32>
    %346 = vector.extract_strided_slice %327 {offsets = [0, 384], sizes = [8, 128], strides = [1, 1]} : vector<8x512xf32> to vector<8x128xf32>
    %cst_154 = arith.constant 5.000000e-01 : f32
    %347 = vector.broadcast %cst_154 : f32 to vector<8x128xf32>
    %348 = arith.mulf %347, %346 : vector<8x128xf32>
    %349 = math.tanh %348 : vector<8x128xf32>
    %cst_155 = arith.constant 5.000000e-01 : f32
    %350 = vector.broadcast %cst_155 : f32 to vector<8x128xf32>
    %351 = arith.mulf %350, %349 : vector<8x128xf32>
    %cst_156 = arith.constant 5.000000e-01 : f32
    %352 = vector.broadcast %cst_156 : f32 to vector<8x128xf32>
    %353 = arith.addf %351, %352 : vector<8x128xf32>
    %354 = arith.mulf %343, %319 : vector<8x128xf32>
    %355 = arith.mulf %335, %345 : vector<8x128xf32>
    %356 = arith.addf %354, %355 : vector<8x128xf32>
    %357 = math.tanh %356 : vector<8x128xf32>
    %358 = arith.mulf %353, %357 : vector<8x128xf32>
    %359 = arith.truncf %358 : vector<8x128xf32> to vector<8x128xbf16>
    %c0_157 = arith.constant 0 : index
    %c0_158 = arith.constant 0 : index
    %360 = vector.load %arg10[%c0_157, %c0_158] : memref<64x128xbf16, #tpu.memory_space<vmem>>, vector<8x128xbf16>
    tpu.vector_store %arg10[%c0_157, %c0_158], %359 {strides = array<i32>} : memref<64x128xbf16, #tpu.memory_space<vmem>>, vector<8x128xbf16>,
    %c8_159 = arith.constant 8 : index
    %c0_160 = arith.constant 0 : index
    %361 = vector.load %arg11[%c8_159, %c0_160] : memref<64x512xf32, #tpu.memory_space<vmem>>, vector<8x512xf32>
    %cst_161 = arith.constant dense<0.000000e+00> : vector<8x512xf32>
    %362 = tpu.matmul %359, %315, %cst_161 {dimension_numbers = #tpu.dot_dimension_numbers<[1], [0], [0], [1], [0, 0, 1, 1], [], []>} : vector<8x128xbf16>, vector<128x512xbf16>, vector<8x512xf32> -> vector<8x512xf32>
    %363 = arith.addf %361, %362 : vector<8x512xf32>
    %364 = vector.extract_strided_slice %363 {offsets = [0, 0], sizes = [8, 128], strides = [1, 1]} : vector<8x512xf32> to vector<8x128xf32>
    %cst_162 = arith.constant 5.000000e-01 : f32
    %365 = vector.broadcast %cst_162 : f32 to vector<8x128xf32>
    %366 = arith.mulf %365, %364 : vector<8x128xf32>
    %367 = math.tanh %366 : vector<8x128xf32>
    %cst_163 = arith.constant 5.000000e-01 : f32
    %368 = vector.broadcast %cst_163 : f32 to vector<8x128xf32>
    %369 = arith.mulf %368, %367 : vector<8x128xf32>
    %cst_164 = arith.constant 5.000000e-01 : f32
    %370 = vector.broadcast %cst_164 : f32 to vector<8x128xf32>
    %371 = arith.addf %369, %370 : vector<8x128xf32>
    %372 = vector.extract_strided_slice %363 {offsets = [0, 128], sizes = [8, 128], strides = [1, 1]} : vector<8x512xf32> to vector<8x128xf32>
    %cst_165 = arith.constant 5.000000e-01 : f32
    %373 = vector.broadcast %cst_165 : f32 to vector<8x128xf32>
    %374 = arith.mulf %373, %372 : vector<8x128xf32>
    %375 = math.tanh %374 : vector<8x128xf32>
    %cst_166 = arith.constant 5.000000e-01 : f32
    %376 = vector.broadcast %cst_166 : f32 to vector<8x128xf32>
    %377 = arith.mulf %376, %375 : vector<8x128xf32>
    %cst_167 = arith.constant 5.000000e-01 : f32
    %378 = vector.broadcast %cst_167 : f32 to vector<8x128xf32>
    %379 = arith.addf %377, %378 : vector<8x128xf32>
    %380 = vector.extract_strided_slice %363 {offsets = [0, 256], sizes = [8, 128], strides = [1, 1]} : vector<8x512xf32> to vector<8x128xf32>
    %381 = math.tanh %380 : vector<8x128xf32>
    %382 = vector.extract_strided_slice %363 {offsets = [0, 384], sizes = [8, 128], strides = [1, 1]} : vector<8x512xf32> to vector<8x128xf32>
    %cst_168 = arith.constant 5.000000e-01 : f32
    %383 = vector.broadcast %cst_168 : f32 to vector<8x128xf32>
    %384 = arith.mulf %383, %382 : vector<8x128xf32>
    %385 = math.tanh %384 : vector<8x128xf32>
    %cst_169 = arith.constant 5.000000e-01 : f32
    %386 = vector.broadcast %cst_169 : f32 to vector<8x128xf32>
    %387 = arith.mulf %386, %385 : vector<8x128xf32>
    %cst_170 = arith.constant 5.000000e-01 : f32
    %388 = vector.broadcast %cst_170 : f32 to vector<8x128xf32>
    %389 = arith.addf %387, %388 : vector<8x128xf32>
    %390 = arith.mulf %379, %356 : vector<8x128xf32>
    %391 = arith.mulf %371, %381 : vector<8x128xf32>
    %392 = arith.addf %390, %391 : vector<8x128xf32>
    %393 = math.tanh %392 : vector<8x128xf32>
    %394 = arith.mulf %389, %393 : vector<8x128xf32>
    %395 = arith.truncf %394 : vector<8x128xf32> to vector<8x128xbf16>
    %c8_171 = arith.constant 8 : index
    %c0_172 = arith.constant 0 : index
    %396 = vector.load %arg10[%c8_171, %c0_172] : memref<64x128xbf16, #tpu.memory_space<vmem>>, vector<8x128xbf16>
    tpu.vector_store %arg10[%c8_171, %c0_172], %395 {strides = array<i32>} : memref<64x128xbf16, #tpu.memory_space<vmem>>, vector<8x128xbf16>,
    %c16_173 = arith.constant 16 : index
    %c0_174 = arith.constant 0 : index
    %397 = vector.load %arg11[%c16_173, %c0_174] : memref<64x512xf32, #tpu.memory_space<vmem>>, vector<8x512xf32>
    %cst_175 = arith.constant dense<0.000000e+00> : vector<8x512xf32>
    %398 = tpu.matmul %395, %315, %cst_175 {dimension_numbers = #tpu.dot_dimension_numbers<[1], [0], [0], [1], [0, 0, 1, 1], [], []>} : vector<8x128xbf16>, vector<128x512xbf16>, vector<8x512xf32> -> vector<8x512xf32>
    %399 = arith.addf %397, %398 : vector<8x512xf32>
    %400 = vector.extract_strided_slice %399 {offsets = [0, 0], sizes = [8, 128], strides = [1, 1]} : vector<8x512xf32> to vector<8x128xf32>
    %cst_176 = arith.constant 5.000000e-01 : f32
    %401 = vector.broadcast %cst_176 : f32 to vector<8x128xf32>
    %402 = arith.mulf %401, %400 : vector<8x128xf32>
    %403 = math.tanh %402 : vector<8x128xf32>
    %cst_177 = arith.constant 5.000000e-01 : f32
    %404 = vector.broadcast %cst_177 : f32 to vector<8x128xf32>
    %405 = arith.mulf %404, %403 : vector<8x128xf32>
    %cst_178 = arith.constant 5.000000e-01 : f32
    %406 = vector.broadcast %cst_178 : f32 to vector<8x128xf32>
    %407 = arith.addf %405, %406 : vector<8x128xf32>
    %408 = vector.extract_strided_slice %399 {offsets = [0, 128], sizes = [8, 128], strides = [1, 1]} : vector<8x512xf32> to vector<8x128xf32>
    %cst_179 = arith.constant 5.000000e-01 : f32
    %409 = vector.broadcast %cst_179 : f32 to vector<8x128xf32>
    %410 = arith.mulf %409, %408 : vector<8x128xf32>
    %411 = math.tanh %410 : vector<8x128xf32>
    %cst_180 = arith.constant 5.000000e-01 : f32
    %412 = vector.broadcast %cst_180 : f32 to vector<8x128xf32>
    %413 = arith.mulf %412, %411 : vector<8x128xf32>
    %cst_181 = arith.constant 5.000000e-01 : f32
    %414 = vector.broadcast %cst_181 : f32 to vector<8x128xf32>
    %415 = arith.addf %413, %414 : vector<8x128xf32>
    %416 = vector.extract_strided_slice %399 {offsets = [0, 256], sizes = [8, 128], strides = [1, 1]} : vector<8x512xf32> to vector<8x128xf32>
    %417 = math.tanh %416 : vector<8x128xf32>
    %418 = vector.extract_strided_slice %399 {offsets = [0, 384], sizes = [8, 128], strides = [1, 1]} : vector<8x512xf32> to vector<8x128xf32>
    %cst_182 = arith.constant 5.000000e-01 : f32
    %419 = vector.broadcast %cst_182 : f32 to vector<8x128xf32>
    %420 = arith.mulf %419, %418 : vector<8x128xf32>
    %421 = math.tanh %420 : vector<8x128xf32>
    %cst_183 = arith.constant 5.000000e-01 : f32
    %422 = vector.broadcast %cst_183 : f32 to vector<8x128xf32>
    %423 = arith.mulf %422, %421 : vector<8x128xf32>
    %cst_184 = arith.constant 5.000000e-01 : f32
    %424 = vector.broadcast %cst_184 : f32 to vector<8x128xf32>
    %425 = arith.addf %423, %424 : vector<8x128xf32>
    %426 = arith.mulf %415, %392 : vector<8x128xf32>
    %427 = arith.mulf %407, %417 : vector<8x128xf32>
    %428 = arith.addf %426, %427 : vector<8x128xf32>
    %429 = math.tanh %428 : vector<8x128xf32>
    %430 = arith.mulf %425, %429 : vector<8x128xf32>
    %431 = arith.truncf %430 : vector<8x128xf32> to vector<8x128xbf16>
    %c16_185 = arith.constant 16 : index
    %c0_186 = arith.constant 0 : index
    %432 = vector.load %arg10[%c16_185, %c0_186] : memref<64x128xbf16, #tpu.memory_space<vmem>>, vector<8x128xbf16>
    tpu.vector_store %arg10[%c16_185, %c0_186], %431 {strides = array<i32>} : memref<64x128xbf16, #tpu.memory_space<vmem>>, vector<8x128xbf16>,
    %c24_187 = arith.constant 24 : index
    %c0_188 = arith.constant 0 : index
    %433 = vector.load %arg11[%c24_187, %c0_188] : memref<64x512xf32, #tpu.memory_space<vmem>>, vector<8x512xf32>
    %cst_189 = arith.constant dense<0.000000e+00> : vector<8x512xf32>
    %434 = tpu.matmul %431, %315, %cst_189 {dimension_numbers = #tpu.dot_dimension_numbers<[1], [0], [0], [1], [0, 0, 1, 1], [], []>} : vector<8x128xbf16>, vector<128x512xbf16>, vector<8x512xf32> -> vector<8x512xf32>
    %435 = arith.addf %433, %434 : vector<8x512xf32>
    %436 = vector.extract_strided_slice %435 {offsets = [0, 0], sizes = [8, 128], strides = [1, 1]} : vector<8x512xf32> to vector<8x128xf32>
    %cst_190 = arith.constant 5.000000e-01 : f32
    %437 = vector.broadcast %cst_190 : f32 to vector<8x128xf32>
    %438 = arith.mulf %437, %436 : vector<8x128xf32>
    %439 = math.tanh %438 : vector<8x128xf32>
    %cst_191 = arith.constant 5.000000e-01 : f32
    %440 = vector.broadcast %cst_191 : f32 to vector<8x128xf32>
    %441 = arith.mulf %440, %439 : vector<8x128xf32>
    %cst_192 = arith.constant 5.000000e-01 : f32
    %442 = vector.broadcast %cst_192 : f32 to vector<8x128xf32>
    %443 = arith.addf %441, %442 : vector<8x128xf32>
    %444 = vector.extract_strided_slice %435 {offsets = [0, 128], sizes = [8, 128], strides = [1, 1]} : vector<8x512xf32> to vector<8x128xf32>
    %cst_193 = arith.constant 5.000000e-01 : f32
    %445 = vector.broadcast %cst_193 : f32 to vector<8x128xf32>
    %446 = arith.mulf %445, %444 : vector<8x128xf32>
    %447 = math.tanh %446 : vector<8x128xf32>
    %cst_194 = arith.constant 5.000000e-01 : f32
    %448 = vector.broadcast %cst_194 : f32 to vector<8x128xf32>
    %449 = arith.mulf %448, %447 : vector<8x128xf32>
    %cst_195 = arith.constant 5.000000e-01 : f32
    %450 = vector.broadcast %cst_195 : f32 to vector<8x128xf32>
    %451 = arith.addf %449, %450 : vector<8x128xf32>
    %452 = vector.extract_strided_slice %435 {offsets = [0, 256], sizes = [8, 128], strides = [1, 1]} : vector<8x512xf32> to vector<8x128xf32>
    %453 = math.tanh %452 : vector<8x128xf32>
    %454 = vector.extract_strided_slice %435 {offsets = [0, 384], sizes = [8, 128], strides = [1, 1]} : vector<8x512xf32> to vector<8x128xf32>
    %cst_196 = arith.constant 5.000000e-01 : f32
    %455 = vector.broadcast %cst_196 : f32 to vector<8x128xf32>
    %456 = arith.mulf %455, %454 : vector<8x128xf32>
    %457 = math.tanh %456 : vector<8x128xf32>
    %cst_197 = arith.constant 5.000000e-01 : f32
    %458 = vector.broadcast %cst_197 : f32 to vector<8x128xf32>
    %459 = arith.mulf %458, %457 : vector<8x128xf32>
    %cst_198 = arith.constant 5.000000e-01 : f32
    %460 = vector.broadcast %cst_198 : f32 to vector<8x128xf32>
    %461 = arith.addf %459, %460 : vector<8x128xf32>
    %462 = arith.mulf %451, %428 : vector<8x128xf32>
    %463 = arith.mulf %443, %453 : vector<8x128xf32>
    %464 = arith.addf %462, %463 : vector<8x128xf32>
    %465 = math.tanh %464 : vector<8x128xf32>
    %466 = arith.mulf %461, %465 : vector<8x128xf32>
    %467 = arith.truncf %466 : vector<8x128xf32> to vector<8x128xbf16>
    %c24_199 = arith.constant 24 : index
    %c0_200 = arith.constant 0 : index
    %468 = vector.load %arg10[%c24_199, %c0_200] : memref<64x128xbf16, #tpu.memory_space<vmem>>, vector<8x128xbf16>
    tpu.vector_store %arg10[%c24_199, %c0_200], %467 {strides = array<i32>} : memref<64x128xbf16, #tpu.memory_space<vmem>>, vector<8x128xbf16>,
    %c32_201 = arith.constant 32 : index
    %c0_202 = arith.constant 0 : index
    %469 = vector.load %arg11[%c32_201, %c0_202] : memref<64x512xf32, #tpu.memory_space<vmem>>, vector<8x512xf32>
    %cst_203 = arith.constant dense<0.000000e+00> : vector<8x512xf32>
    %470 = tpu.matmul %467, %315, %cst_203 {dimension_numbers = #tpu.dot_dimension_numbers<[1], [0], [0], [1], [0, 0, 1, 1], [], []>} : vector<8x128xbf16>, vector<128x512xbf16>, vector<8x512xf32> -> vector<8x512xf32>
    %471 = arith.addf %469, %470 : vector<8x512xf32>
    %472 = vector.extract_strided_slice %471 {offsets = [0, 0], sizes = [8, 128], strides = [1, 1]} : vector<8x512xf32> to vector<8x128xf32>
    %cst_204 = arith.constant 5.000000e-01 : f32
    %473 = vector.broadcast %cst_204 : f32 to vector<8x128xf32>
    %474 = arith.mulf %473, %472 : vector<8x128xf32>
    %475 = math.tanh %474 : vector<8x128xf32>
    %cst_205 = arith.constant 5.000000e-01 : f32
    %476 = vector.broadcast %cst_205 : f32 to vector<8x128xf32>
    %477 = arith.mulf %476, %475 : vector<8x128xf32>
    %cst_206 = arith.constant 5.000000e-01 : f32
    %478 = vector.broadcast %cst_206 : f32 to vector<8x128xf32>
    %479 = arith.addf %477, %478 : vector<8x128xf32>
    %480 = vector.extract_strided_slice %471 {offsets = [0, 128], sizes = [8, 128], strides = [1, 1]} : vector<8x512xf32> to vector<8x128xf32>
    %cst_207 = arith.constant 5.000000e-01 : f32
    %481 = vector.broadcast %cst_207 : f32 to vector<8x128xf32>
    %482 = arith.mulf %481, %480 : vector<8x128xf32>
    %483 = math.tanh %482 : vector<8x128xf32>
    %cst_208 = arith.constant 5.000000e-01 : f32
    %484 = vector.broadcast %cst_208 : f32 to vector<8x128xf32>
    %485 = arith.mulf %484, %483 : vector<8x128xf32>
    %cst_209 = arith.constant 5.000000e-01 : f32
    %486 = vector.broadcast %cst_209 : f32 to vector<8x128xf32>
    %487 = arith.addf %485, %486 : vector<8x128xf32>
    %488 = vector.extract_strided_slice %471 {offsets = [0, 256], sizes = [8, 128], strides = [1, 1]} : vector<8x512xf32> to vector<8x128xf32>
    %489 = math.tanh %488 : vector<8x128xf32>
    %490 = vector.extract_strided_slice %471 {offsets = [0, 384], sizes = [8, 128], strides = [1, 1]} : vector<8x512xf32> to vector<8x128xf32>
    %cst_210 = arith.constant 5.000000e-01 : f32
    %491 = vector.broadcast %cst_210 : f32 to vector<8x128xf32>
    %492 = arith.mulf %491, %490 : vector<8x128xf32>
    %493 = math.tanh %492 : vector<8x128xf32>
    %cst_211 = arith.constant 5.000000e-01 : f32
    %494 = vector.broadcast %cst_211 : f32 to vector<8x128xf32>
    %495 = arith.mulf %494, %493 : vector<8x128xf32>
    %cst_212 = arith.constant 5.000000e-01 : f32
    %496 = vector.broadcast %cst_212 : f32 to vector<8x128xf32>
    %497 = arith.addf %495, %496 : vector<8x128xf32>
    %498 = arith.mulf %487, %464 : vector<8x128xf32>
    %499 = arith.mulf %479, %489 : vector<8x128xf32>
    %500 = arith.addf %498, %499 : vector<8x128xf32>
    %501 = math.tanh %500 : vector<8x128xf32>
    %502 = arith.mulf %497, %501 : vector<8x128xf32>
    %503 = arith.truncf %502 : vector<8x128xf32> to vector<8x128xbf16>
    %c32_213 = arith.constant 32 : index
    %c0_214 = arith.constant 0 : index
    %504 = vector.load %arg10[%c32_213, %c0_214] : memref<64x128xbf16, #tpu.memory_space<vmem>>, vector<8x128xbf16>
    tpu.vector_store %arg10[%c32_213, %c0_214], %503 {strides = array<i32>} : memref<64x128xbf16, #tpu.memory_space<vmem>>, vector<8x128xbf16>,
    %c40_215 = arith.constant 40 : index
    %c0_216 = arith.constant 0 : index
    %505 = vector.load %arg11[%c40_215, %c0_216] : memref<64x512xf32, #tpu.memory_space<vmem>>, vector<8x512xf32>
    %cst_217 = arith.constant dense<0.000000e+00> : vector<8x512xf32>
    %506 = tpu.matmul %503, %315, %cst_217 {dimension_numbers = #tpu.dot_dimension_numbers<[1], [0], [0], [1], [0, 0, 1, 1], [], []>} : vector<8x128xbf16>, vector<128x512xbf16>, vector<8x512xf32> -> vector<8x512xf32>
    %507 = arith.addf %505, %506 : vector<8x512xf32>
    %508 = vector.extract_strided_slice %507 {offsets = [0, 0], sizes = [8, 128], strides = [1, 1]} : vector<8x512xf32> to vector<8x128xf32>
    %cst_218 = arith.constant 5.000000e-01 : f32
    %509 = vector.broadcast %cst_218 : f32 to vector<8x128xf32>
    %510 = arith.mulf %509, %508 : vector<8x128xf32>
    %511 = math.tanh %510 : vector<8x128xf32>
    %cst_219 = arith.constant 5.000000e-01 : f32
    %512 = vector.broadcast %cst_219 : f32 to vector<8x128xf32>
    %513 = arith.mulf %512, %511 : vector<8x128xf32>
    %cst_220 = arith.constant 5.000000e-01 : f32
    %514 = vector.broadcast %cst_220 : f32 to vector<8x128xf32>
    %515 = arith.addf %513, %514 : vector<8x128xf32>
    %516 = vector.extract_strided_slice %507 {offsets = [0, 128], sizes = [8, 128], strides = [1, 1]} : vector<8x512xf32> to vector<8x128xf32>
    %cst_221 = arith.constant 5.000000e-01 : f32
    %517 = vector.broadcast %cst_221 : f32 to vector<8x128xf32>
    %518 = arith.mulf %517, %516 : vector<8x128xf32>
    %519 = math.tanh %518 : vector<8x128xf32>
    %cst_222 = arith.constant 5.000000e-01 : f32
    %520 = vector.broadcast %cst_222 : f32 to vector<8x128xf32>
    %521 = arith.mulf %520, %519 : vector<8x128xf32>
    %cst_223 = arith.constant 5.000000e-01 : f32
    %522 = vector.broadcast %cst_223 : f32 to vector<8x128xf32>
    %523 = arith.addf %521, %522 : vector<8x128xf32>
    %524 = vector.extract_strided_slice %507 {offsets = [0, 256], sizes = [8, 128], strides = [1, 1]} : vector<8x512xf32> to vector<8x128xf32>
    %525 = math.tanh %524 : vector<8x128xf32>
    %526 = vector.extract_strided_slice %507 {offsets = [0, 384], sizes = [8, 128], strides = [1, 1]} : vector<8x512xf32> to vector<8x128xf32>
    %cst_224 = arith.constant 5.000000e-01 : f32
    %527 = vector.broadcast %cst_224 : f32 to vector<8x128xf32>
    %528 = arith.mulf %527, %526 : vector<8x128xf32>
    %529 = math.tanh %528 : vector<8x128xf32>
    %cst_225 = arith.constant 5.000000e-01 : f32
    %530 = vector.broadcast %cst_225 : f32 to vector<8x128xf32>
    %531 = arith.mulf %530, %529 : vector<8x128xf32>
    %cst_226 = arith.constant 5.000000e-01 : f32
    %532 = vector.broadcast %cst_226 : f32 to vector<8x128xf32>
    %533 = arith.addf %531, %532 : vector<8x128xf32>
    %534 = arith.mulf %523, %500 : vector<8x128xf32>
    %535 = arith.mulf %515, %525 : vector<8x128xf32>
    %536 = arith.addf %534, %535 : vector<8x128xf32>
    %537 = math.tanh %536 : vector<8x128xf32>
    %538 = arith.mulf %533, %537 : vector<8x128xf32>
    %539 = arith.truncf %538 : vector<8x128xf32> to vector<8x128xbf16>
    %c40_227 = arith.constant 40 : index
    %c0_228 = arith.constant 0 : index
    %540 = vector.load %arg10[%c40_227, %c0_228] : memref<64x128xbf16, #tpu.memory_space<vmem>>, vector<8x128xbf16>
    tpu.vector_store %arg10[%c40_227, %c0_228], %539 {strides = array<i32>} : memref<64x128xbf16, #tpu.memory_space<vmem>>, vector<8x128xbf16>,
    %c48_229 = arith.constant 48 : index
    %c0_230 = arith.constant 0 : index
    %541 = vector.load %arg11[%c48_229, %c0_230] : memref<64x512xf32, #tpu.memory_space<vmem>>, vector<8x512xf32>
    %cst_231 = arith.constant dense<0.000000e+00> : vector<8x512xf32>
    %542 = tpu.matmul %539, %315, %cst_231 {dimension_numbers = #tpu.dot_dimension_numbers<[1], [0], [0], [1], [0, 0, 1, 1], [], []>} : vector<8x128xbf16>, vector<128x512xbf16>, vector<8x512xf32> -> vector<8x512xf32>
    %543 = arith.addf %541, %542 : vector<8x512xf32>
    %544 = vector.extract_strided_slice %543 {offsets = [0, 0], sizes = [8, 128], strides = [1, 1]} : vector<8x512xf32> to vector<8x128xf32>
    %cst_232 = arith.constant 5.000000e-01 : f32
    %545 = vector.broadcast %cst_232 : f32 to vector<8x128xf32>
    %546 = arith.mulf %545, %544 : vector<8x128xf32>
    %547 = math.tanh %546 : vector<8x128xf32>
    %cst_233 = arith.constant 5.000000e-01 : f32
    %548 = vector.broadcast %cst_233 : f32 to vector<8x128xf32>
    %549 = arith.mulf %548, %547 : vector<8x128xf32>
    %cst_234 = arith.constant 5.000000e-01 : f32
    %550 = vector.broadcast %cst_234 : f32 to vector<8x128xf32>
    %551 = arith.addf %549, %550 : vector<8x128xf32>
    %552 = vector.extract_strided_slice %543 {offsets = [0, 128], sizes = [8, 128], strides = [1, 1]} : vector<8x512xf32> to vector<8x128xf32>
    %cst_235 = arith.constant 5.000000e-01 : f32
    %553 = vector.broadcast %cst_235 : f32 to vector<8x128xf32>
    %554 = arith.mulf %553, %552 : vector<8x128xf32>
    %555 = math.tanh %554 : vector<8x128xf32>
    %cst_236 = arith.constant 5.000000e-01 : f32
    %556 = vector.broadcast %cst_236 : f32 to vector<8x128xf32>
    %557 = arith.mulf %556, %555 : vector<8x128xf32>
    %cst_237 = arith.constant 5.000000e-01 : f32
    %558 = vector.broadcast %cst_237 : f32 to vector<8x128xf32>
    %559 = arith.addf %557, %558 : vector<8x128xf32>
    %560 = vector.extract_strided_slice %543 {offsets = [0, 256], sizes = [8, 128], strides = [1, 1]} : vector<8x512xf32> to vector<8x128xf32>
    %561 = math.tanh %560 : vector<8x128xf32>
    %562 = vector.extract_strided_slice %543 {offsets = [0, 384], sizes = [8, 128], strides = [1, 1]} : vector<8x512xf32> to vector<8x128xf32>
    %cst_238 = arith.constant 5.000000e-01 : f32
    %563 = vector.broadcast %cst_238 : f32 to vector<8x128xf32>
    %564 = arith.mulf %563, %562 : vector<8x128xf32>
    %565 = math.tanh %564 : vector<8x128xf32>
    %cst_239 = arith.constant 5.000000e-01 : f32
    %566 = vector.broadcast %cst_239 : f32 to vector<8x128xf32>
    %567 = arith.mulf %566, %565 : vector<8x128xf32>
    %cst_240 = arith.constant 5.000000e-01 : f32
    %568 = vector.broadcast %cst_240 : f32 to vector<8x128xf32>
    %569 = arith.addf %567, %568 : vector<8x128xf32>
    %570 = arith.mulf %559, %536 : vector<8x128xf32>
    %571 = arith.mulf %551, %561 : vector<8x128xf32>
    %572 = arith.addf %570, %571 : vector<8x128xf32>
    %573 = math.tanh %572 : vector<8x128xf32>
    %574 = arith.mulf %569, %573 : vector<8x128xf32>
    %575 = arith.truncf %574 : vector<8x128xf32> to vector<8x128xbf16>
    %c48_241 = arith.constant 48 : index
    %c0_242 = arith.constant 0 : index
    %576 = vector.load %arg10[%c48_241, %c0_242] : memref<64x128xbf16, #tpu.memory_space<vmem>>, vector<8x128xbf16>
    tpu.vector_store %arg10[%c48_241, %c0_242], %575 {strides = array<i32>} : memref<64x128xbf16, #tpu.memory_space<vmem>>, vector<8x128xbf16>,
    %c56_243 = arith.constant 56 : index
    %c0_244 = arith.constant 0 : index
    %577 = vector.load %arg11[%c56_243, %c0_244] : memref<64x512xf32, #tpu.memory_space<vmem>>, vector<8x512xf32>
    %cst_245 = arith.constant dense<0.000000e+00> : vector<8x512xf32>
    %578 = tpu.matmul %575, %315, %cst_245 {dimension_numbers = #tpu.dot_dimension_numbers<[1], [0], [0], [1], [0, 0, 1, 1], [], []>} : vector<8x128xbf16>, vector<128x512xbf16>, vector<8x512xf32> -> vector<8x512xf32>
    %579 = arith.addf %577, %578 : vector<8x512xf32>
    %580 = vector.extract_strided_slice %579 {offsets = [0, 0], sizes = [8, 128], strides = [1, 1]} : vector<8x512xf32> to vector<8x128xf32>
    %cst_246 = arith.constant 5.000000e-01 : f32
    %581 = vector.broadcast %cst_246 : f32 to vector<8x128xf32>
    %582 = arith.mulf %581, %580 : vector<8x128xf32>
    %583 = math.tanh %582 : vector<8x128xf32>
    %cst_247 = arith.constant 5.000000e-01 : f32
    %584 = vector.broadcast %cst_247 : f32 to vector<8x128xf32>
    %585 = arith.mulf %584, %583 : vector<8x128xf32>
    %cst_248 = arith.constant 5.000000e-01 : f32
    %586 = vector.broadcast %cst_248 : f32 to vector<8x128xf32>
    %587 = arith.addf %585, %586 : vector<8x128xf32>
    %588 = vector.extract_strided_slice %579 {offsets = [0, 128], sizes = [8, 128], strides = [1, 1]} : vector<8x512xf32> to vector<8x128xf32>
    %cst_249 = arith.constant 5.000000e-01 : f32
    %589 = vector.broadcast %cst_249 : f32 to vector<8x128xf32>
    %590 = arith.mulf %589, %588 : vector<8x128xf32>
    %591 = math.tanh %590 : vector<8x128xf32>
    %cst_250 = arith.constant 5.000000e-01 : f32
    %592 = vector.broadcast %cst_250 : f32 to vector<8x128xf32>
    %593 = arith.mulf %592, %591 : vector<8x128xf32>
    %cst_251 = arith.constant 5.000000e-01 : f32
    %594 = vector.broadcast %cst_251 : f32 to vector<8x128xf32>
    %595 = arith.addf %593, %594 : vector<8x128xf32>
    %596 = vector.extract_strided_slice %579 {offsets = [0, 256], sizes = [8, 128], strides = [1, 1]} : vector<8x512xf32> to vector<8x128xf32>
    %597 = math.tanh %596 : vector<8x128xf32>
    %598 = vector.extract_strided_slice %579 {offsets = [0, 384], sizes = [8, 128], strides = [1, 1]} : vector<8x512xf32> to vector<8x128xf32>
    %cst_252 = arith.constant 5.000000e-01 : f32
    %599 = vector.broadcast %cst_252 : f32 to vector<8x128xf32>
    %600 = arith.mulf %599, %598 : vector<8x128xf32>
    %601 = math.tanh %600 : vector<8x128xf32>
    %cst_253 = arith.constant 5.000000e-01 : f32
    %602 = vector.broadcast %cst_253 : f32 to vector<8x128xf32>
    %603 = arith.mulf %602, %601 : vector<8x128xf32>
    %cst_254 = arith.constant 5.000000e-01 : f32
    %604 = vector.broadcast %cst_254 : f32 to vector<8x128xf32>
    %605 = arith.addf %603, %604 : vector<8x128xf32>
    %606 = arith.mulf %595, %572 : vector<8x128xf32>
    %607 = arith.mulf %587, %597 : vector<8x128xf32>
    %608 = arith.addf %606, %607 : vector<8x128xf32>
    %609 = math.tanh %608 : vector<8x128xf32>
    %610 = arith.mulf %605, %609 : vector<8x128xf32>
    %611 = arith.truncf %610 : vector<8x128xf32> to vector<8x128xbf16>
    %c56_255 = arith.constant 56 : index
    %c0_256 = arith.constant 0 : index
    %612 = vector.load %arg10[%c56_255, %c0_256] : memref<64x128xbf16, #tpu.memory_space<vmem>>, vector<8x128xbf16>
    tpu.vector_store %arg10[%c56_255, %c0_256], %611 {strides = array<i32>} : memref<64x128xbf16, #tpu.memory_space<vmem>>, vector<8x128xbf16>,
    %c0_257 = arith.constant 0 : index
    %c0_258 = arith.constant 0 : index
    %613 = vector.load %arg10[%c0_257, %c0_258] : memref<64x128xbf16, #tpu.memory_space<vmem>>, vector<64x128xbf16>
    %c0_259 = arith.constant 0 : index
    %c0_260 = arith.constant 0 : index
    %614 = vector.load %arg7[%c0_259, %c0_260] : memref<128x128xbf16, #tpu.memory_space<vmem>>, vector<128x128xbf16>
    %cst_261 = arith.constant dense<0.000000e+00> : vector<64x128xf32>
    %615 = tpu.matmul %613, %614, %cst_261 {dimension_numbers = #tpu.dot_dimension_numbers<[1], [0], [0], [1], [0, 0, 1, 1], [], []>} : vector<64x128xbf16>, vector<128x128xbf16>, vector<64x128xf32> -> vector<64x128xf32>
    %c0_262 = arith.constant 0 : index
    %c0_263 = arith.constant 0 : index
    %616 = vector.load %arg8[%c0_262, %c0_263] : memref<1x128xf32, #tpu.memory_space<vmem>>, vector<1x128xf32>
    %617 = vector.broadcast %616 : vector<1x128xf32> to vector<64x128xf32>
    %618 = arith.addf %615, %617 : vector<64x128xf32>
    %cst_264 = arith.constant dense<0xFF800000> : vector<64xf32>
    %619 = vector.multi_reduction <maximumf>, %618, %cst_264 [1] : vector<64x128xf32> to vector<64xf32>
    %620 = vector.shape_cast %619 : vector<64xf32> to vector<64x1xf32>
    %621 = vector.broadcast %620 : vector<64x1xf32> to vector<64x128xf32>
    %622 = arith.subf %618, %621 : vector<64x128xf32>
    %623 = math.exp %622 : vector<64x128xf32>
    %cst_265 = arith.constant dense<0.000000e+00> : vector<64xf32>
    %624 = vector.multi_reduction <add>, %623, %cst_265 [1] : vector<64x128xf32> to vector<64xf32>
    %625 = vector.shape_cast %624 : vector<64xf32> to vector<64x1xf32>
    %626 = vector.broadcast %625 : vector<64x1xf32> to vector<64x128xf32>
    %627 = arith.divf %623, %626 : vector<64x128xf32>
    %628 = vector.shape_cast %627 : vector<64x128xf32> to vector<8x8x128xf32>
    %c0_266 = arith.constant 0 : index
    %c0_267 = arith.constant 0 : index
    %c0_268 = arith.constant 0 : index
    %629 = vector.load %arg9[%c0_266, %c0_267, %c0_268] : memref<8x8x128xf32, #tpu.memory_space<vmem>>, vector<8x8x128xf32>
    tpu.vector_store %arg9[%c0_266, %c0_267, %c0_268], %628 {strides = array<i32>} : memref<8x8x128xf32, #tpu.memory_space<vmem>>, vector<8x8x128xf32>,
    return
  }
  func.func @transform_0(%arg0: i32) -> (i32, i32, i32) {
    %c0_i32 = arith.constant 0 : i32
    %c0_i32_0 = arith.constant 0 : i32
    %c0_i32_1 = arith.constant 0 : i32
    return %c0_i32, %arg0, %c0_i32_0 : i32, i32, i32
  }
  func.func @transform_1(%arg0: i32) -> (i32, i32) {
    %c0_i32 = arith.constant 0 : i32
    %c0_i32_0 = arith.constant 0 : i32
    %c0_i32_1 = arith.constant 0 : i32
    return %c0_i32, %c0_i32_0 : i32, i32
  }
  func.func @transform_2(%arg0: i32) -> (i32, i32) {
    %c0_i32 = arith.constant 0 : i32
    %c0_i32_0 = arith.constant 0 : i32
    %c0_i32_1 = arith.constant 0 : i32
    return %c0_i32, %c0_i32_0 : i32, i32
  }
  func.func @transform_3(%arg0: i32) -> (i32, i32, i32) {
    %c0_i32 = arith.constant 0 : i32
    %c0_i32_0 = arith.constant 0 : i32
    %c0_i32_1 = arith.constant 0 : i32
    %c0_i32_2 = arith.constant 0 : i32
    return %c0_i32, %c0_i32_0, %c0_i32_1 : i32, i32, i32
  }
  func.func @transform_4(%arg0: i32) -> (i32, i32, i32) {
    %c0_i32 = arith.constant 0 : i32
    %c0_i32_0 = arith.constant 0 : i32
    %c0_i32_1 = arith.constant 0 : i32
    %c0_i32_2 = arith.constant 0 : i32
    return %c0_i32, %c0_i32_0, %c0_i32_1 : i32, i32, i32
  }
  func.func @transform_5(%arg0: i32) -> (i32, i32, i32) {
    %c0_i32 = arith.constant 0 : i32
    %c0_i32_0 = arith.constant 0 : i32
    %c0_i32_1 = arith.constant 0 : i32
    %c0_i32_2 = arith.constant 0 : i32
    return %c0_i32, %c0_i32_0, %c0_i32_1 : i32, i32, i32
  }
  func.func @transform_6(%arg0: i32) -> (i32, i32) {
    %c0_i32 = arith.constant 0 : i32
    %c0_i32_0 = arith.constant 0 : i32
    %c0_i32_1 = arith.constant 0 : i32
    return %c0_i32, %c0_i32_0 : i32, i32
  }
  func.func @transform_7(%arg0: i32) -> (i32, i32) {
    %c0_i32 = arith.constant 0 : i32
    %c0_i32_0 = arith.constant 0 : i32
    %c0_i32_1 = arith.constant 0 : i32
    return %c0_i32, %c0_i32_0 : i32, i32
  }
  func.func @transform_8(%arg0: i32) -> (i32, i32, i32) {
    %c0_i32 = arith.constant 0 : i32
    %c0_i32_0 = arith.constant 0 : i32
    %c0_i32_1 = arith.constant 0 : i32
    return %c0_i32, %arg0, %c0_i32_0 : i32, i32, i32
  }
}

</mosaic_0001>

<bundles_post_ra>
// kernel: tpu_custom_call.1
= control target key start
LH: loop header
LB: loop body
LE: loop exit
PB: predicated region body
PF: predicated region fallthrough
CT: control target
= control target key end

     0   :  { %13 = vsyncpa [#allocation5], 0  ;;  %s5547_s0 = inlined_call_operand.hbm [shape: bf16[8,8,16], index: 0, kind: input, shape index: {}]   ;;  %s5548_s1 = inlined_call_operand.hbm [shape: bf16[16,128], index: 1, kind: input, shape index: {}]   ;;  %s5549_s2 = inlined_call_operand.vmem [shape: f32[1,128], index: 2, kind: input, shape index: {}]   ;;  %s5550_s3 = inlined_call_operand.hbm [shape: bf16[2,128,512], index: 3, kind: input, shape index: {}]   ;;  %s5551_s4 = inlined_call_operand.hbm [shape: bf16[2,128,512], index: 4, kind: input, shape index: {}]   ;;  %s5552_s5 = inlined_call_operand.vmem [shape: f32[2,1,512], index: 5, kind: input, shape index: {}]   ;;  %s5553_s6 = inlined_call_operand.hbm [shape: bf16[128,128], index: 6, kind: input, shape index: {}]   ;;  %s5554_s7 = inlined_call_operand.vmem [shape: f32[1,128], index: 7, kind: input, shape index: {}]   ;;  %s5555_s8 = inlined_call_operand.hbm [shape: f32[8,8,128], index: 8, kind: output, shape index: {}]  }
   0x1   :  { %14 = vsyncpa [#allocation8], 0 }
   0x2   :  { %15 = vsyncpa [#allocation11], 0 }
   0x3   :  { %16 = vsyncpa [#allocation6], 0  ;;  %s4393_s27 = smov [#allocation7]  }
   0x4   :  { %s34_s28 = sshll.u32 %s4393_s27, 4  ;;  %s35_s28 = int_to_ptr.vmem [resolvable:$true] %s34_s28 }
   0x5   :  { %s4273_s29 = scalar_lea.vmem %s35_s28, 128  ;;  %p4278_p1 = scmp.lt.s32.totalorder %s35_s28, %s35_s28 }
   0x6   :  { %p4274_p0 = scmp.ne.s32.totalorder %s35_s28, %s4273_s29  ;;  %p4279_p2 = scmp.lt.s32.totalorder %s4273_s29, %s4273_s29 }
   0x8   :  { %p4280_p3 = por %p4279_p2, %p4278_p1 }
   0xa   :  { %p4281_p4 = pnand %p4280_p3, %p4274_p0 }
   0xc   :  { %4284 = shalt.err (!%p4281_p4)
}
   0xd   :  { %s4394_s30 = smov 64   ;;  %s4395_s9 = smov 4  }
   0xe   :  { %40 = dma.hbm_to_vmem [thread:$0]  %s5548_s1, 128, %s35_s28, [#allocation8], %s4394_s30, %s4394_s30, %s4395_s9  }
   0xf   :  { %s4396_s12 = smov [#allocation10]   ;;  %s4397_s14 = smov [#allocation4]  }
  0x10   :  { %s60_s13 = sshll.u32 %s4396_s12, 4  ;;  %s22_s15 = sshll.u32 %s4397_s14, 4  ;;  %s61_s13 = int_to_ptr.vmem [resolvable:$true] %s60_s13  ;;  %s23_s15 = int_to_ptr.vmem [resolvable:$true] %s22_s15 }
  0x11   :  { %s4293_s16 = scalar_lea.vmem %s61_s13, 8192  ;;  %p4298_p6 = scmp.lt.s32.totalorder %s61_s13, %s61_s13 }
  0x12   :  { %p4294_p5 = scmp.ne.s32.totalorder %s61_s13, %s4293_s16  ;;  %p4299_p7 = scmp.lt.s32.totalorder %s4293_s16, %s4293_s16 }
  0x14   :  { %p4300_p8 = por %p4299_p7, %p4298_p6 }
  0x16   :  { %p4301_p9 = pnand %p4300_p8, %p4294_p5 }
  0x18   :  { %4304 = shalt.err (!%p4301_p9)
}
  0x19   :  { %s4398_s17 = smov 256   ;;  %s4399_s18 = smov 16  }
  0x1a   :  { %66 = dma.hbm_to_vmem [thread:$0]  %s5551_s4, 8192, %s61_s13, [#allocation11], %s4398_s17, %s4398_s17, %s4399_s18  }
  0x1b   :  { %s4313_s1 = scalar_lea.vmem %s23_s15, 512  ;;  %p4318_p11 = scmp.lt.s32.totalorder %s23_s15, %s23_s15 }
  0x1c   :  { %p4314_p10 = scmp.ne.s32.totalorder %s23_s15, %s4313_s1  ;;  %p4319_p12 = scmp.lt.s32.totalorder %s4313_s1, %s4313_s1 }
  0x1e   :  { %p4320_p13 = por %p4319_p12, %p4318_p11 }
  0x20   :  { %p4321_p0 = pnand %p4320_p13, %p4314_p10 }
  0x22   :  { %4324 = shalt.err (!%p4321_p0)
}
  0x23   :  { %28 = dma.hbm_to_vmem [thread:$0]  %s5547_s0, 512, %s23_s15, [#allocation5], %s4394_s30, %s4394_s30, %s4395_s9  }
  0x24   :  { %s4400_s23 = smov [#allocation9]   ;;  %s4401_s25 = smov [#allocation12]  }
  0x25   :  { %s48_s24 = sshll.u32 %s4400_s23, 4  ;;  %s74_s4 = sshll.u32 %s4401_s25, 4  ;;  %s49_s24 = int_to_ptr.vmem [resolvable:$true] %s48_s24  ;;  %s75_s4 = int_to_ptr.vmem [resolvable:$true] %s74_s4 }
  0x26   :  { %s4333_s26 = scalar_lea.vmem %s49_s24, 8192  ;;  %p4338_p2 = scmp.lt.s32.totalorder %s49_s24, %s49_s24 }
  0x27   :  { %p4334_p1 = scmp.ne.s32.totalorder %s49_s24, %s4333_s26  ;;  %p4339_p3 = scmp.lt.s32.totalorder %s4333_s26, %s4333_s26 }
  0x29   :  { %p4340_p4 = por %p4339_p3, %p4338_p2 }
  0x2b   :  { %p4341_p5 = pnand %p4340_p4, %p4334_p1 }
  0x2d   :  { %4344 = shalt.err (!%p4341_p5)
}
  0x2e   :  { %54 = dma.hbm_to_vmem [thread:$0]  %s5550_s3, 8192, %s49_s24, [#allocation8], %s4398_s17, %s4398_s17, %s4399_s18  }
  0x2f   :  { %s4353_s29 = scalar_lea.vmem %s75_s4, 1024  ;;  %p4358_p7 = scmp.lt.s32.totalorder %s75_s4, %s75_s4 }
  0x30   :  { %p4354_p6 = scmp.ne.s32.totalorder %s75_s4, %s4353_s29  ;;  %p4359_p8 = scmp.lt.s32.totalorder %s4353_s29, %s4353_s29 }
  0x32   :  { %p4360_p9 = por %p4359_p8, %p4358_p7 }
  0x34   :  { %p4361_p10 = pnand %p4360_p9, %p4354_p6 }
  0x36   :  { %4364 = shalt.err (!%p4361_p10)
}
  0x37   :  { %80 = dma.hbm_to_vmem [thread:$0]  %s5553_s6, 1024, %s75_s4, [#allocation11], %s4394_s30, %s4394_s30, %s4395_s9  }
  0x38   :  { %4385 = dma.done.wait [#allocation5], 512  }
  0x39   :  { %4386 = vsyncadd [#allocation5], 4294966784 }
  0x3a   :  { %4387 = dma.done.wait [#allocation8], 8320  }
  0x3b   :  { %4388 = vsyncadd [#allocation8], 4294958976 }
  0x3c   :  { %4389 = dma.done.wait [#allocation11], 9216  }
  0x3d   :  { %4390 = vsyncadd [#allocation11], 4294958080  ;;  %v3793_v0 = vld [vmem:[#allocation7] sm:$0xff]   ;;  %vm142_vm0 = vcmask 130048   ;;  %v3795_v2 = vld [vmem:[#allocation4 + $0x8] sm:$0xff]   ;;  %v5558_v38 = vmov 0  }
  0x3e   :  { %v3794_v1 = vld [vmem:[#allocation4] sm:$0xff]   ;;  %3746 = vmatprep.subr.bf16.mxu1 %v3793_v0  ;;  %v3796_v3 = vld [vmem:[#allocation4 + $0x10] sm:$0xff]   ;;  %v3798_v4 = vld [vmem:[#allocation9 + $0xe4] ss:$16 sps:$4 sm:$0xff]   ;;  %578 = vmatprep.mubr.bf16.mxu0 %v5558_v38 }
  0x3f   :  { %3747 = vmatpush3.bf16.msra.mxu1 %v3793_v0  ;;  %3748 = vmatprep.mubr.msk.bf16.mxu1 %vm142_vm0, %v3794_v1  ;;  %v3800_v5 = vld [vmem:[#allocation9 + $0xe0] ss:$16 sps:$4 sm:$0xff]   ;;  %v4478_v6 = vld [vmem:[#allocation10 + $0xe4] ss:$16 sps:$4 sm:$0xff]   ;;  %v3847_v37 = vld [vmem:[#allocation9 + $0xec] ss:$16 sps:$4 sm:$0xff]  }
  0x40   :  { %546 = vmatprep.subr.bf16.mxu0 %v3798_v4  ;;  %v3797_v7 = vld [vmem:[#allocation4 + $0x18] sm:$0xff]   ;;  %888 = vmatprep.subr.bf16.mxu1 %v4478_v6  ;;  %v3530_v40 = vld [vmem:[%s5549_s2] ss:$0 sm:$0xff] }
  0x41   :  { %547 = vmatpush1.bf16.msra.mxu0 %v3800_v5  ;;  %v3803_v8 = vld [vmem:[#allocation9 + $0xc4] ss:$16 sps:$4 sm:$0xff]   ;;  %v4480_v9 = vld [vmem:[#allocation10 + $0xe0] ss:$16 sps:$4 sm:$0xff]   ;;  %v3845_v4 = vld [vmem:[#allocation9 + $0xe8] ss:$16 sps:$4 sm:$0xff]  }
  0x42   :  { %3749 = vmatmul.mubr.msk.bf16.vlgmr.msra.gmra.mxu1 %vm142_vm0, %v3795_v2  ;;  %v3806_v10 = vld [vmem:[#allocation9 + $0xc0] ss:$16 sps:$4 sm:$0xff]   ;;  %v4483_v11 = vld [vmem:[#allocation10 + $0xc4] ss:$16 sps:$4 sm:$0xff]   ;;  %548 = vmatprep.subr.bf16.mxu0 %v3803_v8  ;;  %v3852_v5 = vld [vmem:[#allocation9 + $0xcc] ss:$16 sps:$4 sm:$0xff]  }
  0x43   :  { %3752 = vmatprep.mubr.msk.bf16.mxu1 %vm142_vm0, %v3796_v3  ;;  %889 = vmatpush1.bf16.msra.mxu1 %v4480_v9  ;;  %v3809_v12 = vld [vmem:[#allocation9 + $0xa4] ss:$16 sps:$4 sm:$0xff]   ;;  %v4487_v13 = vld [vmem:[#allocation10 + $0xc0] ss:$16 sps:$4 sm:$0xff]   ;;  %v3855_v8 = vld [vmem:[#allocation9 + $0xac] ss:$16 sps:$4 sm:$0xff]  }
  0x44   :  { %890 = vmatprep.subr.bf16.mxu1 %v4483_v11  ;;  %v3812_v14 = vld [vmem:[#allocation9 + $0xa0] ss:$16 sps:$4 sm:$0xff]   ;;  %v4491_v15 = vld [vmem:[#allocation10 + $0xa4] ss:$16 sps:$4 sm:$0xff]  }
  0x45   :  { %549 = vmatpush1.bf16.msra.mxu0 %v3806_v10  ;;  %v4493_v16 = vld [vmem:[#allocation10 + $0xa0] ss:$16 sps:$4 sm:$0xff]   ;;  %v3815_v17 = vld [vmem:[#allocation9 + $0x84] ss:$16 sps:$4 sm:$0xff]   ;;  %v3853_v10 = vld [vmem:[#allocation9 + $0xa8] ss:$16 sps:$4 sm:$0xff]  }
  0x46   :  { %550 = vmatprep.subr.bf16.mxu0 %v3809_v12  ;;  %v3818_v18 = vld [vmem:[#allocation9 + $0x80] ss:$16 sps:$4 sm:$0xff]   ;;  %v4497_v19 = vld [vmem:[#allocation10 + $0x84] ss:$16 sps:$4 sm:$0xff]   ;;  %v3859_v12 = vld [vmem:[#allocation9 + $0x8c] ss:$16 sps:$4 sm:$0xff]  }
  0x47   :  { %891 = vmatpush1.bf16.msra.mxu1 %v4487_v13  ;;  %v4499_v20 = vld [vmem:[#allocation10 + $0x80] ss:$16 sps:$4 sm:$0xff]   ;;  %v3821_v21 = vld [vmem:[#allocation9 + $0x64] ss:$16 sps:$4 sm:$0xff]  }
  0x48   :  { %892 = vmatprep.subr.bf16.mxu1 %v4491_v15  ;;  %v3824_v22 = vld [vmem:[#allocation9 + $0x60] ss:$16 sps:$4 sm:$0xff]   ;;  %v4503_v23 = vld [vmem:[#allocation10 + $0x64] ss:$16 sps:$4 sm:$0xff]  }
  0x49   :  { %551 = vmatpush1.bf16.msra.mxu0 %v3812_v14  ;;  %v4505_v24 = vld [vmem:[#allocation10 + $0x60] ss:$16 sps:$4 sm:$0xff]   ;;  %v3827_v25 = vld [vmem:[#allocation9 + $0x44] ss:$16 sps:$4 sm:$0xff]  }
  0x4a   :  { %3753 = vmatmul.mubr.msk.bf16.gmra.mxu1 %vm142_vm0, %v3797_v7  ;;  %552 = vmatprep.subr.bf16.mxu0 %v3815_v17  ;;  %v3830_v26 = vld [vmem:[#allocation9 + $0x40] ss:$16 sps:$4 sm:$0xff]   ;;  %v4509_v27 = vld [vmem:[#allocation10 + $0x44] ss:$16 sps:$4 sm:$0xff]   ;;  %v3850_v7 = vld [vmem:[#allocation9 + $0xc8] ss:$16 sps:$4 sm:$0xff]  }
  0x4b   :  { %893 = vmatpush1.bf16.msra.mxu1 %v4493_v16  ;;  %v4511_v28 = vld [vmem:[#allocation10 + $0x40] ss:$16 sps:$4 sm:$0xff]   ;;  %v3833_v29 = vld [vmem:[#allocation9 + $0x24] ss:$16 sps:$4 sm:$0xff]   ;;  %920 = vmatprep.mubr.bf16.mxu1 %v5558_v38  ;;  %v3857_v17 = vld [vmem:[#allocation9 + $0x88] ss:$16 sps:$4 sm:$0xff]  }
  0x4c   :  { %894 = vmatprep.subr.bf16.mxu1 %v4497_v19  ;;  %v3836_v30 = vld [vmem:[#allocation9 + $0x20] ss:$16 sps:$4 sm:$0xff]   ;;  %v4515_v31 = vld [vmem:[#allocation10 + $0x24] ss:$16 sps:$4 sm:$0xff]  }
  0x4d   :  { %553 = vmatpush1.bf16.msra.mxu0 %v3818_v18  ;;  %v4517_v32 = vld [vmem:[#allocation10 + $0x20] ss:$16 sps:$4 sm:$0xff]   ;;  %v3839_v33 = vld [vmem:[#allocation9 + $0x4] ss:$16 sps:$4 sm:$0xff]   ;;  %v3862_v18 = vld [vmem:[#allocation9 + $0x6c] ss:$16 sps:$4 sm:$0xff]  }
  0x4e   :  { %554 = vmatprep.subr.bf16.mxu0 %v3821_v21  ;;  %v3842_v34 = vld [vmem:[#allocation9] ss:$16 sps:$4 sm:$0xff]   ;;  %v4521_v35 = vld [vmem:[#allocation10 + $0x4] ss:$16 sps:$4 sm:$0xff]   ;;  %v3860_v21 = vld [vmem:[#allocation9 + $0x68] ss:$16 sps:$4 sm:$0xff]  }
  0x4f   :  { %895 = vmatpush1.bf16.msra.mxu1 %v4499_v20  ;;  %v4523_v36 = vld [vmem:[#allocation10] ss:$16 sps:$4 sm:$0xff]  }
  0x50   :  { %896 = vmatprep.subr.bf16.mxu1 %v4503_v23 }
  0x51   :  { %555 = vmatpush1.bf16.msra.mxu0 %v3824_v22 }
  0x52   :  { %556 = vmatprep.subr.bf16.mxu0 %v3827_v25  ;;  %v3866_v25 = vld [vmem:[#allocation9 + $0x4c] ss:$16 sps:$4 sm:$0xff]  }
  0x53   :  { %897 = vmatpush1.bf16.msra.mxu1 %v4505_v24 }
  0x54   :  { %898 = vmatprep.subr.bf16.mxu1 %v4509_v27 }
  0x55   :  { %557 = vmatpush1.bf16.msra.mxu0 %v3830_v26  ;;  %v3864_v26 = vld [vmem:[#allocation9 + $0x48] ss:$16 sps:$4 sm:$0xff]  }
  0x56   :  { %558 = vmatprep.subr.bf16.mxu0 %v3833_v29  ;;  %v3869_v29 = vld [vmem:[#allocation9 + $0x2c] ss:$16 sps:$4 sm:$0xff]  }
  0x57   :  { %899 = vmatpush1.bf16.msra.mxu1 %v4511_v28 }
  0x58   :  { %900 = vmatprep.subr.bf16.mxu1 %v4515_v31 }
  0x59   :  { %559 = vmatpush1.bf16.msra.mxu0 %v3836_v30  ;;  %v3867_v30 = vld [vmem:[#allocation9 + $0x28] ss:$16 sps:$4 sm:$0xff]  }
  0x5a   :  { %560 = vmatprep.subr.bf16.mxu0 %v3839_v33 }
  0x5b   :  { %901 = vmatpush1.bf16.msra.mxu1 %v4517_v32 }
  0x5c   :  { %902 = vmatprep.subr.bf16.mxu1 %v4521_v35 }
  0x5d   :  { %561 = vmatpush1.bf16.msra.mxu0 %v3842_v34  ;;  %v3873_v34 = vld [vmem:[#allocation9 + $0xc] ss:$16 sps:$4 sm:$0xff]  }
  0x5e   :  { %619 = vmatprep.subr.bf16.mxu0 %v3847_v37  ;;  %v3871_v37 = vld [vmem:[#allocation9 + $0x8] ss:$16 sps:$4 sm:$0xff]  }
  0x5f   :  { %903 = vmatpush1.bf16.msra.mxu1 %v4523_v36 }
  0x60   :  { %998 = vmatprep.subr.bf16.mxu1 %v4478_v6 }
  0x62   :  { %921 = vmatmul.mubr.bf16.vlgmr.msra.gmra.mxu1 %v5558_v38 }
  0x63   :  { %999 = vmatpush1.bf16.msra.mxu1 %v4480_v9  ;;  %1030 = vmatprep.mubr.bf16.mxu1 %v5558_v38 }
  0x64   :  { %1000 = vmatprep.subr.bf16.mxu1 %v4483_v11 }
  0x67   :  { %1001 = vmatpush1.bf16.msra.mxu1 %v4487_v13 }
  0x68   :  { %1002 = vmatprep.subr.bf16.mxu1 %v4491_v15 }
  0x6b   :  { %1003 = vmatpush1.bf16.msra.mxu1 %v4493_v16 }
  0x6c   :  { %1004 = vmatprep.subr.bf16.mxu1 %v4497_v19 }
  0x6f   :  { %1005 = vmatpush1.bf16.msra.mxu1 %v4499_v20 }
  0x70   :  { %1006 = vmatprep.subr.bf16.mxu1 %v4503_v23 }
  0x73   :  { %1007 = vmatpush1.bf16.msra.mxu1 %v4505_v24 }
  0x74   :  { %1008 = vmatprep.subr.bf16.mxu1 %v4509_v27 }
  0x77   :  { %1009 = vmatpush1.bf16.msra.mxu1 %v4511_v28 }
  0x78   :  { %1010 = vmatprep.subr.bf16.mxu1 %v4515_v31 }
  0x7b   :  { %1011 = vmatpush1.bf16.msra.mxu1 %v4517_v32 }
  0x7c   :  { %1012 = vmatprep.subr.bf16.mxu1 %v4521_v35 }
  0x7f   :  { %1013 = vmatpush1.bf16.msra.mxu1 %v4523_v36 }
  0x80   :  { %1108 = vmatprep.subr.bf16.mxu1 %v4478_v6 }
 0x102   :  { %v3750_v39 = vpop.f32.mrf.mxu1 }
 0x103   :  { %v198_v42 = vadd.f32 %v3750_v39, %v3530_v40  ;;  %v4555_v39 = vld [vmem:[#allocation10 + $0xec] ss:$16 sps:$4 sm:$0xff]  }
 0x104   :  { %v189_v41 = vpop.f32.mrf.mxu1 }
 0x105   :  { %v190_v44 = vadd.f32 %v3530_v40, %v189_v41  ;;  %v222_v47 = vmax.f32 %v198_v42, 0.0  ;;  %v4560_v41 = vld [vmem:[#allocation10 + $0xcc] ss:$16 sps:$4 sm:$0xff]   ;;  %v4563_v42 = vld [vmem:[#allocation10 + $0xc8] ss:$16 sps:$4 sm:$0xff]  }
 0x106   :  { %v3751_v43 = vpop.f32.mrf.mxu1 }
 0x107   :  { %v201_v45 = vadd.f32 %v3751_v43, %v3530_v40  ;;  %v220_v51 = vmax.f32 %v190_v44, 0.0  ;;  %v4567_v43 = vld [vmem:[#allocation10 + $0xac] ss:$16 sps:$4 sm:$0xff]   ;;  %v4570_v44 = vld [vmem:[#allocation10 + $0xa8] ss:$16 sps:$4 sm:$0xff]  }
 0x108   :  { %v192_v46 = vpop.f32.mrf.mxu1 }
 0x109   :  { %v223_v48 = vmax.f32 %v201_v45, 0.0  ;;  %v193_v49 = vadd.f32 %v3530_v40, %v192_v46  ;;  %v4573_v45 = vld [vmem:[#allocation10 + $0x8c] ss:$16 sps:$4 sm:$0xff]   ;;  %v4576_v46 = vld [vmem:[#allocation10 + $0x88] ss:$16 sps:$4 sm:$0xff]  }
 0x10a   :  { %v3754_v50 = vpop.f32.mrf.mxu1 }
 0x10b   :  { %v3714_v52 = vpack.c.bf16 %v223_v48, %v222_v47  ;;  %v221_v53 = vmax.f32 %v193_v49, 0.0  ;;  %v214_v54 = vadd.f32 %v3754_v50, %v3530_v40  ;;  %v4580_v47 = vld [vmem:[#allocation10 + $0x6c] ss:$16 sps:$4 sm:$0xff]   ;;  %v4583_v48 = vld [vmem:[#allocation10 + $0x68] ss:$16 sps:$4 sm:$0xff]  }
 0x10c   :  { %v205_v55 = vpop.f32.mrf.mxu1  ;;  %v4586_v49 = vld [vmem:[#allocation10 + $0x4c] ss:$16 sps:$4 sm:$0xff]   ;;  %v4589_v50 = vld [vmem:[#allocation10 + $0x48] ss:$16 sps:$4 sm:$0xff]  }
 0x10d   :  { %3726 = vst [vmem:[#allocation2 + $0x8] sm:$0xff] %v3714_v52   ;;  %v3709_v56 = vpack.c.bf16 %v221_v53, %v220_v51  ;;  %v206_v57 = vadd.f32 %v3530_v40, %v205_v55  ;;  %v226_v59 = vmax.f32 %v214_v54, 0.0  ;;  %v4593_v51 = vld [vmem:[#allocation10 + $0x2c] ss:$16 sps:$4 sm:$0xff]   ;;  %v4596_v52 = vld [vmem:[#allocation10 + $0x28] ss:$16 sps:$4 sm:$0xff]  }
 0x10e   :  { %v3755_v58 = vpop.f32.mrf.mxu1  ;;  %v4599_v53 = vld [vmem:[#allocation10 + $0xc] ss:$16 sps:$4 sm:$0xff]   ;;  %v4602_v54 = vld [vmem:[#allocation10 + $0x8] ss:$16 sps:$4 sm:$0xff]  }
 0x10f   :  { %3710 = vst [vmem:[#allocation2] sm:$0xff] %v3709_v56   ;;  %v217_v60 = vadd.f32 %v3755_v58, %v3530_v40  ;;  %v224_v62 = vmax.f32 %v206_v57, 0.0 }
 0x110   :  { %v208_v61 = vpop.f32.mrf.mxu1 }
 0x111   :  { %v227_v63 = vmax.f32 %v217_v60, 0.0  ;;  %v209_v0 = vadd.f32 %v3530_v40, %v208_v61  ;;  %v4557_v40 = vld [vmem:[#allocation10 + $0xe8] ss:$16 sps:$4 sm:$0xff]  }
 0x113   :  { %v3724_v1 = vpack.c.bf16 %v227_v63, %v226_v59  ;;  %v225_v2 = vmax.f32 %v209_v0, 0.0  ;;  %v342_v59 = vlaneseq }
 0x114   :  { %v3856_v14 = vld [vmem:[#allocation2 + $0x8] sm:$0xff]  }
 0x115   :  { %3728 = vst [vmem:[#allocation2 + $0x18] sm:$0xff] %v3724_v1   ;;  %v3719_v3 = vpack.c.bf16 %v225_v2, %v224_v62  ;;  %v4630_v60 = vshrl.u32 %v342_v59, 7  ;;  %v332_v62 = vld [vmem:[%s5552_s5] sm:$0xf] }
 0x116   :  { %v3849_v6 = vld [vmem:[#allocation2] sm:$0xff]  }
 0x117   :  { %3727 = vst [vmem:[#allocation2 + $0x10] sm:$0xff] %v3719_v3   ;;  %579 = vmatmul.mubr.bf16.vlgmr.msra.gmra.mxu0 %v3849_v6  ;;  %5564 = vst [vmem:[#allocation18_spill] sm:$0xff] %v4630_v60  ;;  %v5557_v61 = vsub.s32 0, %v4630_v60  ;;  %v5556_v0 = vsub.s32 1, %v4630_v60 }
 0x118   :  { %620 = vmatpush1.bf16.msra.mxu0 %v3845_v4  ;;  %588 = vmatprep.mubr.bf16.mxu0 %v5558_v38 }
 0x119   :  { %621 = vmatprep.subr.bf16.mxu0 %v3852_v5  ;;  %v345_v2 = vrot.slane %v332_v62, %v5557_v61  ;;  %v349_v4 = vrot.slane %v332_v62, %v5556_v0 }
 0x11c   :  { %622 = vmatpush1.bf16.msra.mxu0 %v3850_v7  ;;  %v3870_v33 = vld [vmem:[#allocation2 + $0x18] sm:$0xff]  }
 0x11d   :  { %623 = vmatprep.subr.bf16.mxu0 %v3855_v8 }
 0x11e   :  { %v3863_v22 = vld [vmem:[#allocation2 + $0x10] sm:$0xff]  }
 0x11f   :  { %589 = vmatmul.mubr.bf16.gmra.mxu0 %v3856_v14 }
 0x120   :  { %624 = vmatpush1.bf16.msra.mxu0 %v3853_v10  ;;  %598 = vmatprep.mubr.bf16.mxu0 %v5558_v38 }
 0x121   :  { %625 = vmatprep.subr.bf16.mxu0 %v3859_v12 }
 0x122   :  { %v4611_v55 = vpop.f32.mrf.mxu1 }
 0x124   :  { %626 = vmatpush1.bf16.msra.mxu0 %v3857_v17  ;;  %v4614_v56 = vpop.f32.mrf.mxu1 }
 0x125   :  { %627 = vmatprep.subr.bf16.mxu0 %v3862_v18 }
 0x126   :  { %v926_v57 = vpop.f32.mrf.mxu1 }
 0x127   :  { %599 = vmatmul.mubr.bf16.gmra.mxu0 %v3863_v22 }
 0x128   :  { %628 = vmatpush1.bf16.msra.mxu0 %v3860_v21  ;;  %608 = vmatprep.mubr.bf16.mxu0 %v5558_v38  ;;  %v927_v58 = vpop.f32.mrf.mxu1 }
 0x129   :  { %629 = vmatprep.subr.bf16.mxu0 %v3866_v25 }
 0x12c   :  { %630 = vmatpush1.bf16.msra.mxu0 %v3864_v26 }
 0x12d   :  { %631 = vmatprep.subr.bf16.mxu0 %v3869_v29 }
 0x12f   :  { %609 = vmatmul.mubr.bf16.gmra.mxu0 %v3870_v33 }
 0x130   :  { %632 = vmatpush1.bf16.msra.mxu0 %v3867_v30  ;;  %651 = vmatprep.mubr.bf16.mxu0 %v5558_v38 }
 0x131   :  { %633 = vmatprep.subr.bf16.mxu0 %v3873_v34 }
 0x134   :  { %634 = vmatpush1.bf16.msra.mxu0 %v3871_v37 }
 0x135   :  { %929 = vmatprep.subr.bf16.mxu0 %v4555_v39 }
 0x137   :  { %652 = vmatmul.mubr.bf16.vlgmr.msra.gmra.mxu0 %v3849_v6 }
 0x138   :  { %930 = vmatpush1.bf16.msra.mxu0 %v4557_v40  ;;  %661 = vmatprep.mubr.bf16.mxu0 %v5558_v38 }
 0x139   :  { %931 = vmatprep.subr.bf16.mxu0 %v4560_v41 }
 0x13c   :  { %932 = vmatpush1.bf16.msra.mxu0 %v4563_v42 }
 0x13d   :  { %933 = vmatprep.subr.bf16.mxu0 %v4567_v43 }
 0x13f   :  { %662 = vmatmul.mubr.bf16.gmra.mxu0 %v3856_v14 }
 0x140   :  { %934 = vmatpush1.bf16.msra.mxu0 %v4570_v44  ;;  %671 = vmatprep.mubr.bf16.mxu0 %v5558_v38 }
 0x141   :  { %935 = vmatprep.subr.bf16.mxu0 %v4573_v45 }
 0x144   :  { %936 = vmatpush1.bf16.msra.mxu0 %v4576_v46 }
 0x145   :  { %937 = vmatprep.subr.bf16.mxu0 %v4580_v47 }
 0x147   :  { %672 = vmatmul.mubr.bf16.gmra.mxu0 %v3863_v22 }
 0x148   :  { %938 = vmatpush1.bf16.msra.mxu0 %v4583_v48  ;;  %681 = vmatprep.mubr.bf16.mxu0 %v5558_v38 }
 0x149   :  { %939 = vmatprep.subr.bf16.mxu0 %v4586_v49 }
 0x14c   :  { %940 = vmatpush1.bf16.msra.mxu0 %v4589_v50 }
 0x14d   :  { %941 = vmatprep.subr.bf16.mxu0 %v4593_v51 }
 0x14f   :  { %682 = vmatmul.mubr.bf16.gmra.mxu0 %v3870_v33 }
 0x150   :  { %942 = vmatpush1.bf16.msra.mxu0 %v4596_v52  ;;  %961 = vmatprep.mubr.bf16.mxu0 %v5558_v38 }
 0x151   :  { %943 = vmatprep.subr.bf16.mxu0 %v4599_v53 }
 0x154   :  { %944 = vmatpush1.bf16.msra.mxu0 %v4602_v54 }
 0x155   :  { %1039 = vmatprep.subr.bf16.mxu0 %v4555_v39 }
 0x157   :  { %962 = vmatmul.mubr.bf16.vlgmr.msra.gmra.mxu0 %v5558_v38 }
 0x158   :  { %1040 = vmatpush1.bf16.msra.mxu0 %v4557_v40  ;;  %1071 = vmatprep.mubr.bf16.mxu0 %v5558_v38 }
 0x159   :  { %1041 = vmatprep.subr.bf16.mxu0 %v4560_v41 }
 0x15c   :  { %1042 = vmatpush1.bf16.msra.mxu0 %v4563_v42 }
 0x15d   :  { %1043 = vmatprep.subr.bf16.mxu0 %v4567_v43 }
 0x160   :  { %1044 = vmatpush1.bf16.msra.mxu0 %v4570_v44 }
 0x161   :  { %1045 = vmatprep.subr.bf16.mxu0 %v4573_v45 }
 0x164   :  { %1046 = vmatpush1.bf16.msra.mxu0 %v4576_v46 }
 0x165   :  { %1047 = vmatprep.subr.bf16.mxu0 %v4580_v47 }
 0x168   :  { %1048 = vmatpush1.bf16.msra.mxu0 %v4583_v48 }
 0x169   :  { %1049 = vmatprep.subr.bf16.mxu0 %v4586_v49 }
 0x16c   :  { %1050 = vmatpush1.bf16.msra.mxu0 %v4589_v50 }
 0x16d   :  { %1051 = vmatprep.subr.bf16.mxu0 %v4593_v51 }
 0x170   :  { %1052 = vmatpush1.bf16.msra.mxu0 %v4596_v52 }
 0x171   :  { %1053 = vmatprep.subr.bf16.mxu0 %v4599_v53 }
 0x174   :  { %1054 = vmatpush1.bf16.msra.mxu0 %v4602_v54 }
 0x175   :  { %1149 = vmatprep.subr.bf16.mxu0 %v4555_v39 }
 0x1d7   :  { %v580_v63 = vpop.f32.mrf.mxu0 }
 0x1d9   :  { %v582_v1 = vpop.f32.mrf.mxu0 }
 0x1db   :  { %v584_v3 = vpop.f32.mrf.mxu0 }
 0x1dc   :  { %v4641_v5 = vadd.f32 %v584_v3, %v345_v2 }
 0x1dd   :  { %v586_v6 = vpop.f32.mrf.mxu0 }
 0x1de   :  { %v4643_v7 = vadd.f32 %v586_v6, %v349_v4 }
 0x1df   :  { %v590_v8 = vpop.f32.mrf.mxu0 }
 0x1e0   :  { %v4645_v10 = vadd.f32 %v590_v8, %v345_v2 }
 0x1e1   :  { %v592_v12 = vpop.f32.mrf.mxu0 }
 0x1e2   :  { %v4647_v14 = vadd.f32 %v592_v12, %v349_v4 }
 0x1e3   :  { %v594_v17 = vpop.f32.mrf.mxu0 }
 0x1e4   :  { %v4649_v18 = vadd.f32 %v594_v17, %v345_v2 }
 0x1e5   :  { %v596_v21 = vpop.f32.mrf.mxu0 }
 0x1e6   :  { %5565 = vst [vmem:[#allocation19_spill] sm:$0xff] %v4649_v18  ;;  %v4651_v22 = vadd.f32 %v596_v21, %v349_v4 }
 0x1e7   :  { %v600_v25 = vpop.f32.mrf.mxu0 }
 0x1e8   :  { %5566 = vst [vmem:[#allocation20_spill] sm:$0xff] %v4651_v22  ;;  %v4653_v26 = vadd.f32 %v600_v25, %v345_v2  ;;  %v5560_v25 = vsub.s32 2, %v4630_v60 }
 0x1e9   :  { %v602_v29 = vpop.f32.mrf.mxu0 }
 0x1ea   :  { %5567 = vst [vmem:[#allocation21_spill] sm:$0xff] %v4653_v26  ;;  %v4655_v30 = vadd.f32 %v602_v29, %v349_v4 }
 0x1eb   :  { %v604_v33 = vpop.f32.mrf.mxu0 }
 0x1ec   :  { %5568 = vst [vmem:[#allocation22_spill] sm:$0xff] %v4655_v30  ;;  %v4657_v34 = vadd.f32 %v604_v33, %v345_v2  ;;  %v5561_v33 = vsub.s32 3, %v4630_v60  ;;  %v581_v30 = vadd.f32 %v580_v63, %v345_v2 }
 0x1ed   :  { %v606_v37 = vpop.f32.mrf.mxu0 }
 0x1ee   :  { %5569 = vst [vmem:[#allocation23_spill] sm:$0xff] %v4657_v34  ;;  %v4659_v57 = vadd.f32 %v606_v37, %v349_v4  ;;  %v353_v37 = vrot.slane %v332_v62, %v5560_v25 }
 0x1ef   :  { %v610_v58 = vpop.f32.mrf.mxu0 }
 0x1f0   :  { %5570 = vst [vmem:[#allocation24_spill] sm:$0xff] %v4659_v57  ;;  %v4661_v59 = vadd.f32 %v610_v58, %v345_v2  ;;  %v583_v57 = vadd.f32 %v582_v1, %v349_v4 }
 0x1f1   :  { %v612_v3 = vpop.f32.mrf.mxu0 }
 0x1f2   :  { %5571 = vst [vmem:[#allocation25_spill] sm:$0xff] %v4661_v59  ;;  %v4663_v6 = vadd.f32 %v612_v3, %v349_v4  ;;  %v357_v3 = vrot.slane %v332_v62, %v5561_v33 }
 0x1f3   :  { %v614_v8 = vpop.f32.mrf.mxu0 }
 0x1f4   :  { %5572 = vst [vmem:[#allocation26_spill] sm:$0xff] %v4663_v6  ;;  %v4665_v12 = vadd.f32 %v614_v8, %v345_v2 }
 0x1f5   :  { %v616_v17 = vpop.f32.mrf.mxu0 }
 0x1f6   :  { %5573 = vst [vmem:[#allocation27_spill] sm:$0xff] %v4665_v12  ;;  %v4667_v21 = vadd.f32 %v616_v17, %v349_v4 }
 0x1f7   :  { %v653_v29 = vpop.f32.mrf.mxu0 }
 0x1f8   :  { %5574 = vst [vmem:[#allocation28_spill] sm:$0xff] %v4667_v21 }
 0x1f9   :  { %v655_v0 = vpop.f32.mrf.mxu0 }
 0x1fb   :  { %v657_v58 = vpop.f32.mrf.mxu0 }
 0x1fc   :  { %v4675_v61 = vadd.f32 %v657_v58, %v353_v37  ;;  %v971_v58 = vadd.f32 %v4614_v56, %v583_v57 }
 0x1fd   :  { %v659_v8 = vpop.f32.mrf.mxu0 }
 0x1fe   :  { %v4677_v38 = vadd.f32 %v659_v8, %v357_v3  ;;  %v978_v22 = vmul.f32 0.5, %v971_v58 }
 0x1ff   :  { %v663_v17 = vpop.f32.mrf.mxu0 }
 0x200   :  { %v4679_v21 = vadd.f32 %v663_v17, %v353_v37  ;;  %v970_v17 = vadd.f32 %v4611_v55, %v581_v30  ;;  %4010 = vtanh.f32 %v978_v22 }
 0x201   :  { %v665_v12 = vpop.f32.mrf.mxu0 }
 0x202   :  { %v4681_v6 = vadd.f32 %v665_v12, %v357_v3  ;;  %v974_v4 = vmul.f32 0.5, %v970_v17 }
 0x203   :  { %v667_v59 = vpop.f32.mrf.mxu0 }
 0x204   :  { %v4683_v34 = vadd.f32 %v667_v59, %v353_v37  ;;  %4012 = vtanh.f32 %v974_v4 }
 0x205   :  { %v669_v25 = vpop.f32.mrf.mxu0 }
 0x206   :  { %v4685_v26 = vadd.f32 %v669_v25, %v357_v3 }
 0x207   :  { %v673_v62 = vpop.f32.mrf.mxu0 }
 0x208   :  { %v4688_v33 = vadd.f32 %v673_v62, %v353_v37  ;;  %v654_v62 = vadd.f32 %v653_v29, %v353_v37 }
 0x209   :  { %v675_v8 = vpop.f32.mrf.mxu0 }
 0x20a   :  { %v4691_v60 = vadd.f32 %v675_v8, %v357_v3 }
 0x20b   :  { %v677_v12 = vpop.f32.mrf.mxu0 }
 0x20c   :  { %5575 = vst [vmem:[#allocation29_spill] sm:$0xff] %v4691_v60  ;;  %v4693_v18 = vadd.f32 %v677_v12, %v353_v37 }
 0x20d   :  { %v679_v1 = vpop.f32.mrf.mxu0 }
 0x20e   :  { %5576 = vst [vmem:[#allocation30_spill] sm:$0xff] %v4693_v18  ;;  %v4695_v59 = vadd.f32 %v679_v1, %v357_v3  ;;  %v656_v1 = vadd.f32 %v655_v0, %v357_v3 }
 0x20f   :  { %v683_v63 = vpop.f32.mrf.mxu0 }
 0x210   :  { %5577 = vst [vmem:[#allocation31_spill] sm:$0xff] %v4695_v59  ;;  %v4697_v2 = vadd.f32 %v683_v63, %v353_v37  ;;  %v4011_v63 = vpop.eup %4010 }
 0x211   :  { %v685_v56 = vpop.f32.mrf.mxu0  ;;  %v4013_v18 = vpop.eup %4012  ;;  %v980_v4 = vmul.f32 0.5, %v4011_v63 }
 0x212   :  { %5578 = vst [vmem:[#allocation32_spill] sm:$0xff] %v4697_v2  ;;  %v4699_v57 = vadd.f32 %v685_v56, %v357_v3 }
 0x213   :  { %v687_v25 = vpop.f32.mrf.mxu0  ;;  %v981_v60 = vadd.f32 0.5, %v980_v4 }
 0x214   :  { %5579 = vst [vmem:[#allocation33_spill] sm:$0xff] %v4699_v57  ;;  %v4701_v55 = vadd.f32 %v687_v25, %v353_v37  ;;  %v976_v57 = vmul.f32 0.5, %v4013_v18 }
 0x215   :  { %v689_v30 = vpop.f32.mrf.mxu0  ;;  %v987_v29 = vmul.f32 0.0, %v981_v60  ;;  %v5581_v60 = vmov 0  }
 0x216   :  { %5580 = vst [vmem:[#allocation34_spill] sm:$0xff] %v4701_v55  ;;  %v4703_v58 = vadd.f32 %v689_v30, %v357_v3  ;;  %v977_v25 = vadd.f32 0.5, %v976_v57 }
 0x217   :  { %v963_v8 = vpop.f32.mrf.mxu0 }
 0x218   :  { %v972_v12 = vadd.f32 %v963_v8, %v654_v62 }
 0x219   :  { %v965_v17 = vpop.f32.mrf.mxu0 }
 0x21a   :  { %4014 = vtanh.f32 %v972_v12  ;;  %v973_v22 = vadd.f32 %v965_v17, %v656_v1 }
 0x21b   :  { %v967_v59 = vpop.f32.mrf.mxu0 }
 0x21c   :  { %v983_v56 = vmul.f32 0.5, %v973_v22 }
 0x21d   :  { %v968_v2 = vpop.f32.mrf.mxu0 }
 0x21e   :  { %4016 = vtanh.f32 %v983_v56 }
 0x227   :  { %v4015_v55 = vpop.eup %4014 }
 0x228   :  { %v988_v37 = vmul.f32 %v4015_v55, %v977_v25 }
 0x22a   :  { %v4705_v30 = vadd.f32 %v988_v37, %v987_v29 }
 0x22b   :  { %v4017_v0 = vpop.eup %4016 }
 0x22c   :  { %4018 = vtanh.f32 %v4705_v30  ;;  %v985_v3 = vmul.f32 0.5, %v4017_v0 }
 0x22e   :  { %v986_v59 = vadd.f32 0.5, %v985_v3 }
 0x239   :  { %v4019_v62 = vpop.eup %4018 }
 0x23a   :  { %v991_v8 = vmul.f32 %v4019_v62, %v986_v59 }
 0x23c   :  { %v992_v2 = vpack.c.bf16 %v991_v8, %v991_v8 }
 0x23e   :  { %993 = vst [vmem:[#allocation2] sm:$0xf] %v992_v2  ;;  %1031 = vmatmul.mubr.bf16.vlgmr.msra.gmra.mxu1 %v992_v2  ;;  %1072 = vmatmul.mubr.bf16.vlgmr.msra.gmra.mxu0 %v992_v2 }
 0x23f   :  { %1109 = vmatpush1.bf16.msra.mxu1 %v4480_v9  ;;  %1150 = vmatpush1.bf16.msra.mxu0 %v4557_v40  ;;  %v4740_v9 = vld [vmem:[#allocation10 + $0xe4] ss:$16 sps:$4 sm:$0xff]  }
 0x240   :  { %1110 = vmatprep.subr.bf16.mxu1 %v4483_v11  ;;  %1151 = vmatprep.subr.bf16.mxu0 %v4560_v41 }
 0x241   :  { %1140 = vmatprep.mubr.bf16.mxu1 %v5581_v60  ;;  %1181 = vmatprep.mubr.bf16.mxu0 %v5581_v60 }
 0x243   :  { %1111 = vmatpush1.bf16.msra.mxu1 %v4487_v13  ;;  %1152 = vmatpush1.bf16.msra.mxu0 %v4563_v42 }
 0x244   :  { %1112 = vmatprep.subr.bf16.mxu1 %v4491_v15  ;;  %1153 = vmatprep.subr.bf16.mxu0 %v4567_v43 }
 0x247   :  { %1113 = vmatpush1.bf16.msra.mxu1 %v4493_v16  ;;  %1154 = vmatpush1.bf16.msra.mxu0 %v4570_v44 }
 0x248   :  { %1114 = vmatprep.subr.bf16.mxu1 %v4497_v19  ;;  %1155 = vmatprep.subr.bf16.mxu0 %v4573_v45 }
 0x24b   :  { %1115 = vmatpush1.bf16.msra.mxu1 %v4499_v20  ;;  %1156 = vmatpush1.bf16.msra.mxu0 %v4576_v46 }
 0x24c   :  { %1116 = vmatprep.subr.bf16.mxu1 %v4503_v23  ;;  %1157 = vmatprep.subr.bf16.mxu0 %v4580_v47 }
 0x24f   :  { %1117 = vmatpush1.bf16.msra.mxu1 %v4505_v24  ;;  %1158 = vmatpush1.bf16.msra.mxu0 %v4583_v48 }
 0x250   :  { %1118 = vmatprep.subr.bf16.mxu1 %v4509_v27  ;;  %1159 = vmatprep.subr.bf16.mxu0 %v4586_v49 }
 0x253   :  { %1119 = vmatpush1.bf16.msra.mxu1 %v4511_v28  ;;  %1160 = vmatpush1.bf16.msra.mxu0 %v4589_v50 }
 0x254   :  { %1120 = vmatprep.subr.bf16.mxu1 %v4515_v31  ;;  %1161 = vmatprep.subr.bf16.mxu0 %v4593_v51 }
 0x257   :  { %1121 = vmatpush1.bf16.msra.mxu1 %v4517_v32  ;;  %1162 = vmatpush1.bf16.msra.mxu0 %v4596_v52 }
 0x258   :  { %1122 = vmatprep.subr.bf16.mxu1 %v4521_v35  ;;  %1163 = vmatprep.subr.bf16.mxu0 %v4599_v53 }
 0x25b   :  { %1123 = vmatpush1.bf16.msra.mxu1 %v4523_v36  ;;  %1164 = vmatpush1.bf16.msra.mxu0 %v4602_v54 }
 0x25c   :  { %1218 = vmatprep.subr.bf16.mxu1 %v4740_v9  ;;  %1259 = vmatprep.subr.bf16.mxu0 %v4555_v39 }
 0x2fe   :  { %v1032_v11 = vpop.f32.mrf.mxu1  ;;  %v1073_v13 = vpop.f32.mrf.mxu0 }
 0x2ff   :  { %v1080_v18 = vadd.f32 %v1032_v11, %v4641_v5  ;;  %v1082_v63 = vadd.f32 %v1073_v13, %v4675_v61 }
 0x300   :  { %v1034_v57 = vpop.f32.mrf.mxu1  ;;  %v1075_v55 = vpop.f32.mrf.mxu0 }
 0x301   :  { %v1084_v12 = vmul.f32 0.5, %v1080_v18  ;;  %v1081_v17 = vadd.f32 %v1034_v57, %v4643_v7  ;;  %v1083_v29 = vadd.f32 %v1075_v55, %v4677_v38 }
 0x302   :  { %v1036_v1 = vpop.f32.mrf.mxu1  ;;  %v1077_v22 = vpop.f32.mrf.mxu0 }
 0x303   :  { %4020 = vtanh.f32 %v1084_v12  ;;  %v1088_v4 = vmul.f32 0.5, %v1081_v17  ;;  %v1093_v37 = vmul.f32 0.5, %v1083_v29  ;;  %v4752_v17 = vld [vmem:[#allocation10 + $0xe0] ss:$16 sps:$4 sm:$0xff]  }
 0x304   :  { %v1037_v56 = vpop.f32.mrf.mxu1  ;;  %v1078_v25 = vpop.f32.mrf.mxu0  ;;  %v4762_v1 = vld [vmem:[#allocation10 + $0xc0] ss:$16 sps:$4 sm:$0xff]  }
 0x305   :  { %4022 = vtanh.f32 %v1088_v4 }
 0x306   :  { %4024 = vtanh.f32 %v1082_v63 }
 0x307   :  { %4026 = vtanh.f32 %v1093_v37 }
 0x310   :  { %v4021_v0 = vpop.eup %4020 }
 0x311   :  { %v1086_v5 = vmul.f32 0.5, %v4021_v0 }
 0x312   :  { %v4023_v3 = vpop.eup %4022 }
 0x313   :  { %v1087_v59 = vadd.f32 0.5, %v1086_v5  ;;  %v1090_v62 = vmul.f32 0.5, %v4023_v3  ;;  %v4025_v7 = vpop.eup %4024 }
 0x314   :  { %v4027_v13 = vpop.eup %4026 }
 0x315   :  { %v1091_v8 = vadd.f32 0.5, %v1090_v62  ;;  %v1098_v2 = vmul.f32 %v4025_v7, %v1087_v59  ;;  %v1095_v18 = vmul.f32 0.5, %v4027_v13 }
 0x317   :  { %v1097_v11 = vmul.f32 %v1091_v8, %v4705_v30  ;;  %v1096_v57 = vadd.f32 0.5, %v1095_v18  ;;  %v4756_v30 = vld [vmem:[#allocation10 + $0xc4] ss:$16 sps:$4 sm:$0xff]  }
 0x319   :  { %v4749_v61 = vadd.f32 %v1098_v2, %v1097_v11 }
 0x31b   :  { %4028 = vtanh.f32 %v4749_v61 }
 0x328   :  { %v4029_v38 = vpop.eup %4028 }
 0x329   :  { %v1101_v55 = vmul.f32 %v4029_v38, %v1096_v57 }
 0x32b   :  { %v1102_v12 = vpack.c.bf16 %v1101_v55, %v1101_v55 }
 0x32d   :  { %1103 = vst [vmem:[#allocation2 + $0x4] sm:$0xf] %v1102_v12  ;;  %1141 = vmatmul.mubr.bf16.vlgmr.msra.gmra.mxu1 %v1102_v12  ;;  %1182 = vmatmul.mubr.bf16.vlgmr.msra.gmra.mxu0 %v1102_v12 }
 0x32e   :  { %1219 = vmatpush1.bf16.msra.mxu1 %v4752_v17  ;;  %1260 = vmatpush1.bf16.msra.mxu0 %v4557_v40 }
 0x32f   :  { %1220 = vmatprep.subr.bf16.mxu1 %v4756_v30  ;;  %1261 = vmatprep.subr.bf16.mxu0 %v4560_v41 }
 0x330   :  { %1250 = vmatprep.mubr.bf16.mxu1 %v5581_v60  ;;  %1291 = vmatprep.mubr.bf16.mxu0 %v5581_v60 }
 0x332   :  { %1221 = vmatpush1.bf16.msra.mxu1 %v4762_v1  ;;  %1262 = vmatpush1.bf16.msra.mxu0 %v4563_v42 }
 0x333   :  { %1222 = vmatprep.subr.bf16.mxu1 %v4491_v15  ;;  %1263 = vmatprep.subr.bf16.mxu0 %v4567_v43 }
 0x336   :  { %1223 = vmatpush1.bf16.msra.mxu1 %v4493_v16  ;;  %1264 = vmatpush1.bf16.msra.mxu0 %v4570_v44 }
 0x337   :  { %1224 = vmatprep.subr.bf16.mxu1 %v4497_v19  ;;  %1265 = vmatprep.subr.bf16.mxu0 %v4573_v45 }
 0x33a   :  { %1225 = vmatpush1.bf16.msra.mxu1 %v4499_v20  ;;  %1266 = vmatpush1.bf16.msra.mxu0 %v4576_v46 }
 0x33b   :  { %1226 = vmatprep.subr.bf16.mxu1 %v4503_v23  ;;  %1267 = vmatprep.subr.bf16.mxu0 %v4580_v47 }
 0x33e   :  { %1227 = vmatpush1.bf16.msra.mxu1 %v4505_v24  ;;  %1268 = vmatpush1.bf16.msra.mxu0 %v4583_v48 }
 0x33f   :  { %1228 = vmatprep.subr.bf16.mxu1 %v4509_v27  ;;  %1269 = vmatprep.subr.bf16.mxu0 %v4586_v49 }
 0x342   :  { %1229 = vmatpush1.bf16.msra.mxu1 %v4511_v28  ;;  %1270 = vmatpush1.bf16.msra.mxu0 %v4589_v50 }
 0x343   :  { %1230 = vmatprep.subr.bf16.mxu1 %v4515_v31  ;;  %1271 = vmatprep.subr.bf16.mxu0 %v4593_v51 }
 0x346   :  { %1231 = vmatpush1.bf16.msra.mxu1 %v4517_v32  ;;  %1272 = vmatpush1.bf16.msra.mxu0 %v4596_v52 }
 0x347   :  { %1232 = vmatprep.subr.bf16.mxu1 %v4521_v35  ;;  %1273 = vmatprep.subr.bf16.mxu0 %v4599_v53 }
 0x34a   :  { %1233 = vmatpush1.bf16.msra.mxu1 %v4523_v36  ;;  %1274 = vmatpush1.bf16.msra.mxu0 %v4602_v54 }
 0x34b   :  { %1328 = vmatprep.subr.bf16.mxu1 %v4740_v9  ;;  %1369 = vmatprep.subr.bf16.mxu0 %v4555_v39 }
 0x3ed   :  { %v1142_v22 = vpop.f32.mrf.mxu1  ;;  %v1183_v63 = vpop.f32.mrf.mxu0 }
 0x3ee   :  { %v1190_v4 = vadd.f32 %v1142_v22, %v4645_v10  ;;  %v1192_v3 = vadd.f32 %v1183_v63, %v4679_v21 }
 0x3ef   :  { %v1144_v56 = vpop.f32.mrf.mxu1  ;;  %v1185_v25 = vpop.f32.mrf.mxu0 }
 0x3f0   :  { %v1194_v29 = vmul.f32 0.5, %v1190_v4  ;;  %v1191_v37 = vadd.f32 %v1144_v56, %v4647_v14  ;;  %v1193_v8 = vadd.f32 %v1185_v25, %v4681_v6 }
 0x3f1   :  { %v1146_v0 = vpop.f32.mrf.mxu1  ;;  %v1187_v5 = vpop.f32.mrf.mxu0 }
 0x3f2   :  { %4030 = vtanh.f32 %v1194_v29  ;;  %v1198_v59 = vmul.f32 0.5, %v1191_v37  ;;  %v1203_v2 = vmul.f32 0.5, %v1193_v8 }
 0x3f3   :  { %v1147_v62 = vpop.f32.mrf.mxu1  ;;  %v1188_v7 = vpop.f32.mrf.mxu0 }
 0x3f4   :  { %4032 = vtanh.f32 %v1198_v59 }
 0x3f5   :  { %4034 = vtanh.f32 %v1192_v3 }
 0x3f6   :  { %4036 = vtanh.f32 %v1203_v2 }
 0x3ff   :  { %v4031_v11 = vpop.eup %4030 }
 0x400   :  { %v1196_v10 = vmul.f32 0.5, %v4031_v11 }
 0x401   :  { %v4033_v13 = vpop.eup %4032 }
 0x402   :  { %v1197_v18 = vadd.f32 0.5, %v1196_v10  ;;  %v1200_v57 = vmul.f32 0.5, %v4033_v13  ;;  %v4035_v14 = vpop.eup %4034 }
 0x403   :  { %v4037_v22 = vpop.eup %4036 }
 0x404   :  { %v1201_v38 = vadd.f32 0.5, %v1200_v57  ;;  %v1208_v55 = vmul.f32 %v4035_v14, %v1197_v18  ;;  %v1205_v63 = vmul.f32 0.5, %v4037_v22  ;;  %v4858_v22 = vld [vmem:[#allocation10 + $0x84] ss:$16 sps:$4 sm:$0xff]  }
 0x406   :  { %v1207_v12 = vmul.f32 %v1201_v38, %v4749_v61  ;;  %v1206_v4 = vadd.f32 0.5, %v1205_v63  ;;  %v4862_v63 = vld [vmem:[#allocation10 + $0x80] ss:$16 sps:$4 sm:$0xff]  }
 0x408   :  { %v4797_v21 = vadd.f32 %v1208_v55, %v1207_v12  ;;  %v4850_v12 = vld [vmem:[#allocation10 + $0xa4] ss:$16 sps:$4 sm:$0xff]  }
 0x40a   :  { %4038 = vtanh.f32 %v4797_v21 }
 0x417   :  { %v4039_v6 = vpop.eup %4038 }
 0x418   :  { %v1211_v56 = vmul.f32 %v4039_v6, %v1206_v4  ;;  %v4866_v4 = vld [vmem:[#allocation10 + $0x64] ss:$16 sps:$4 sm:$0xff]   ;;  %v4870_v6 = vld [vmem:[#allocation10 + $0x60] ss:$16 sps:$4 sm:$0xff]  }
 0x41a   :  { %v1212_v25 = vpack.c.bf16 %v1211_v56, %v1211_v56  ;;  %v4874_v56 = vld [vmem:[#allocation10 + $0x44] ss:$16 sps:$4 sm:$0xff]  }
 0x41c   :  { %1213 = vst [vmem:[#allocation2 + $0x8] sm:$0xf] %v1212_v25  ;;  %1251 = vmatmul.mubr.bf16.vlgmr.msra.gmra.mxu1 %v1212_v25  ;;  %1292 = vmatmul.mubr.bf16.vlgmr.msra.gmra.mxu0 %v1212_v25  ;;  %v4878_v25 = vld [vmem:[#allocation10 + $0x40] ss:$16 sps:$4 sm:$0xff]  }
 0x41d   :  { %1329 = vmatpush1.bf16.msra.mxu1 %v4752_v17  ;;  %1370 = vmatpush1.bf16.msra.mxu0 %v4557_v40 }
 0x41e   :  { %1330 = vmatprep.subr.bf16.mxu1 %v4756_v30  ;;  %1371 = vmatprep.subr.bf16.mxu0 %v4560_v41 }
 0x41f   :  { %1360 = vmatprep.mubr.bf16.mxu1 %v5581_v60  ;;  %1401 = vmatprep.mubr.bf16.mxu0 %v5581_v60 }
 0x421   :  { %1331 = vmatpush1.bf16.msra.mxu1 %v4762_v1  ;;  %1372 = vmatpush1.bf16.msra.mxu0 %v4563_v42 }
 0x422   :  { %1332 = vmatprep.subr.bf16.mxu1 %v4491_v15  ;;  %1373 = vmatprep.subr.bf16.mxu0 %v4567_v43 }
 0x425   :  { %1333 = vmatpush1.bf16.msra.mxu1 %v4493_v16  ;;  %1374 = vmatpush1.bf16.msra.mxu0 %v4570_v44 }
 0x426   :  { %1334 = vmatprep.subr.bf16.mxu1 %v4497_v19  ;;  %1375 = vmatprep.subr.bf16.mxu0 %v4573_v45  ;;  %v5582_v19 = vld [vmem:[#allocation19_spill] sm:$0xff] }
 0x429   :  { %1335 = vmatpush1.bf16.msra.mxu1 %v4499_v20  ;;  %1376 = vmatpush1.bf16.msra.mxu0 %v4576_v46 }
 0x42a   :  { %1336 = vmatprep.subr.bf16.mxu1 %v4503_v23  ;;  %1377 = vmatprep.subr.bf16.mxu0 %v4580_v47 }
 0x42d   :  { %1337 = vmatpush1.bf16.msra.mxu1 %v4505_v24  ;;  %1378 = vmatpush1.bf16.msra.mxu0 %v4583_v48 }
 0x42e   :  { %1338 = vmatprep.subr.bf16.mxu1 %v4509_v27  ;;  %1379 = vmatprep.subr.bf16.mxu0 %v4586_v49 }
 0x431   :  { %1339 = vmatpush1.bf16.msra.mxu1 %v4511_v28  ;;  %1380 = vmatpush1.bf16.msra.mxu0 %v4589_v50  ;;  %v5583_v28 = vld [vmem:[#allocation20_spill] sm:$0xff] }
 0x432   :  { %1340 = vmatprep.subr.bf16.mxu1 %v4515_v31  ;;  %1381 = vmatprep.subr.bf16.mxu0 %v4593_v51 }
 0x435   :  { %1341 = vmatpush1.bf16.msra.mxu1 %v4517_v32  ;;  %1382 = vmatpush1.bf16.msra.mxu0 %v4596_v52 }
 0x436   :  { %1342 = vmatprep.subr.bf16.mxu1 %v4521_v35  ;;  %1383 = vmatprep.subr.bf16.mxu0 %v4599_v53 }
 0x439   :  { %1343 = vmatpush1.bf16.msra.mxu1 %v4523_v36  ;;  %1384 = vmatpush1.bf16.msra.mxu0 %v4602_v54 }
 0x43a   :  { %1438 = vmatprep.subr.bf16.mxu1 %v4740_v9  ;;  %1479 = vmatprep.subr.bf16.mxu0 %v4555_v39 }
 0x4dc   :  { %v1252_v15 = vpop.f32.mrf.mxu1  ;;  %v1293_v16 = vpop.f32.mrf.mxu0 }
 0x4dd   :  { %v1300_v20 = vadd.f32 %v1252_v15, %v5582_v19  ;;  %v1302_v36 = vadd.f32 %v1293_v16, %v4683_v34  ;;  %v4882_v15 = vld [vmem:[#allocation10 + $0x24] ss:$16 sps:$4 sm:$0xff]   ;;  %v4886_v16 = vld [vmem:[#allocation10 + $0x20] ss:$16 sps:$4 sm:$0xff]  }
 0x4de   :  { %v1254_v23 = vpop.f32.mrf.mxu1  ;;  %v1295_v24 = vpop.f32.mrf.mxu0  ;;  %v4890_v19 = vld [vmem:[#allocation10 + $0x4] ss:$16 sps:$4 sm:$0xff]  }
 0x4df   :  { %v1304_v27 = vmul.f32 0.5, %v1300_v20  ;;  %v1301_v31 = vadd.f32 %v1254_v23, %v5583_v28  ;;  %v1303_v0 = vadd.f32 %v1295_v24, %v4685_v26  ;;  %v4894_v20 = vld [vmem:[#allocation10] ss:$16 sps:$4 sm:$0xff]  }
 0x4e0   :  { %v1256_v32 = vpop.f32.mrf.mxu1  ;;  %v1297_v35 = vpop.f32.mrf.mxu0 }
 0x4e1   :  { %4040 = vtanh.f32 %v1304_v27  ;;  %v1308_v61 = vmul.f32 0.5, %v1301_v31  ;;  %v1313_v5 = vmul.f32 0.5, %v1303_v0  ;;  %v5584_v27 = vld [vmem:[#allocation21_spill] sm:$0xff] }
 0x4e2   :  { %v1257_v29 = vpop.f32.mrf.mxu1  ;;  %v1298_v37 = vpop.f32.mrf.mxu0 }
 0x4e3   :  { %4042 = vtanh.f32 %v1308_v61 }
 0x4e4   :  { %4044 = vtanh.f32 %v1302_v36  ;;  %v5585_v36 = vld [vmem:[#allocation22_spill] sm:$0xff] }
 0x4e5   :  { %4046 = vtanh.f32 %v1313_v5 }
 0x4ee   :  { %v4041_v3 = vpop.eup %4040 }
 0x4ef   :  { %v1306_v59 = vmul.f32 0.5, %v4041_v3 }
 0x4f0   :  { %v4043_v62 = vpop.eup %4042 }
 0x4f1   :  { %v1307_v7 = vadd.f32 0.5, %v1306_v59  ;;  %v1310_v8 = vmul.f32 0.5, %v4043_v62  ;;  %v4045_v2 = vpop.eup %4044  ;;  %v5586_v62 = vld [vmem:[#allocation29_spill] sm:$0xff] }
 0x4f2   :  { %v4047_v18 = vpop.eup %4046 }
 0x4f3   :  { %v1311_v11 = vadd.f32 0.5, %v1310_v8  ;;  %v1318_v10 = vmul.f32 %v4045_v2, %v1307_v7  ;;  %v1315_v57 = vmul.f32 0.5, %v4047_v18 }
 0x4f5   :  { %v1317_v13 = vmul.f32 %v1311_v11, %v4797_v21  ;;  %v1316_v14 = vadd.f32 0.5, %v1315_v57  ;;  %v4854_v21 = vld [vmem:[#allocation10 + $0xa0] ss:$16 sps:$4 sm:$0xff]  }
 0x4f7   :  { %v4839_v34 = vadd.f32 %v1318_v10, %v1317_v13 }
 0x4f9   :  { %4048 = vtanh.f32 %v4839_v34 }
 0x506   :  { %v4049_v26 = vpop.eup %4048 }
 0x507   :  { %v1321_v38 = vmul.f32 %v4049_v26, %v1316_v14 }
 0x509   :  { %v1322_v55 = vpack.c.bf16 %v1321_v38, %v1321_v38 }
 0x50b   :  { %1323 = vst [vmem:[#allocation2 + $0xc] sm:$0xf] %v1322_v55  ;;  %1361 = vmatmul.mubr.bf16.vlgmr.msra.gmra.mxu1 %v1322_v55  ;;  %1402 = vmatmul.mubr.bf16.vlgmr.msra.gmra.mxu0 %v1322_v55 }
 0x50c   :  { %1439 = vmatpush1.bf16.msra.mxu1 %v4752_v17  ;;  %1480 = vmatpush1.bf16.msra.mxu0 %v4557_v40 }
 0x50d   :  { %1440 = vmatprep.subr.bf16.mxu1 %v4756_v30  ;;  %1481 = vmatprep.subr.bf16.mxu0 %v4560_v41 }
 0x50e   :  { %1470 = vmatprep.mubr.bf16.mxu1 %v5581_v60  ;;  %1511 = vmatprep.mubr.bf16.mxu0 %v5581_v60 }
 0x510   :  { %1441 = vmatpush1.bf16.msra.mxu1 %v4762_v1  ;;  %1482 = vmatpush1.bf16.msra.mxu0 %v4563_v42 }
 0x511   :  { %1442 = vmatprep.subr.bf16.mxu1 %v4850_v12  ;;  %1483 = vmatprep.subr.bf16.mxu0 %v4567_v43 }
 0x514   :  { %1443 = vmatpush1.bf16.msra.mxu1 %v4854_v21  ;;  %1484 = vmatpush1.bf16.msra.mxu0 %v4570_v44 }
 0x515   :  { %1444 = vmatprep.subr.bf16.mxu1 %v4858_v22  ;;  %1485 = vmatprep.subr.bf16.mxu0 %v4573_v45 }
 0x518   :  { %1445 = vmatpush1.bf16.msra.mxu1 %v4862_v63  ;;  %1486 = vmatpush1.bf16.msra.mxu0 %v4576_v46 }
 0x519   :  { %1446 = vmatprep.subr.bf16.mxu1 %v4866_v4  ;;  %1487 = vmatprep.subr.bf16.mxu0 %v4580_v47 }
 0x51c   :  { %1447 = vmatpush1.bf16.msra.mxu1 %v4870_v6  ;;  %1488 = vmatpush1.bf16.msra.mxu0 %v4583_v48 }
 0x51d   :  { %1448 = vmatprep.subr.bf16.mxu1 %v4874_v56  ;;  %1489 = vmatprep.subr.bf16.mxu0 %v4586_v49 }
 0x520   :  { %1449 = vmatpush1.bf16.msra.mxu1 %v4878_v25  ;;  %1490 = vmatpush1.bf16.msra.mxu0 %v4589_v50 }
 0x521   :  { %1450 = vmatprep.subr.bf16.mxu1 %v4882_v15  ;;  %1491 = vmatprep.subr.bf16.mxu0 %v4593_v51 }
 0x524   :  { %1451 = vmatpush1.bf16.msra.mxu1 %v4886_v16  ;;  %1492 = vmatpush1.bf16.msra.mxu0 %v4596_v52 }
 0x525   :  { %1452 = vmatprep.subr.bf16.mxu1 %v4890_v19  ;;  %1493 = vmatprep.subr.bf16.mxu0 %v4599_v53 }
 0x528   :  { %1453 = vmatpush1.bf16.msra.mxu1 %v4894_v20  ;;  %1494 = vmatpush1.bf16.msra.mxu0 %v4602_v54 }
 0x529   :  { %1548 = vmatprep.subr.bf16.mxu1 %v4740_v9  ;;  %1589 = vmatprep.subr.bf16.mxu0 %v4555_v39 }
 0x5cb   :  { %v1362_v23 = vpop.f32.mrf.mxu1  ;;  %v1403_v24 = vpop.f32.mrf.mxu0 }
 0x5cc   :  { %v1410_v28 = vadd.f32 %v1362_v23, %v5584_v27  ;;  %v1412_v0 = vadd.f32 %v1403_v24, %v4688_v33 }
 0x5cd   :  { %v1364_v31 = vpop.f32.mrf.mxu1  ;;  %v1405_v32 = vpop.f32.mrf.mxu0 }
 0x5ce   :  { %v1414_v35 = vmul.f32 0.5, %v1410_v28  ;;  %v1411_v61 = vadd.f32 %v1364_v31, %v5585_v36  ;;  %v1413_v7 = vadd.f32 %v1405_v32, %v5586_v62 }
 0x5cf   :  { %v1366_v29 = vpop.f32.mrf.mxu1  ;;  %v1407_v37 = vpop.f32.mrf.mxu0 }
 0x5d0   :  { %4050 = vtanh.f32 %v1414_v35  ;;  %v1418_v5 = vmul.f32 0.5, %v1411_v61  ;;  %v1423_v8 = vmul.f32 0.5, %v1413_v7 }
 0x5d1   :  { %v1367_v3 = vpop.f32.mrf.mxu1  ;;  %v1408_v59 = vpop.f32.mrf.mxu0 }
 0x5d2   :  { %4052 = vtanh.f32 %v1418_v5 }
 0x5d3   :  { %4054 = vtanh.f32 %v1412_v0 }
 0x5d4   :  { %4056 = vtanh.f32 %v1423_v8 }
 0x5dd   :  { %v4051_v2 = vpop.eup %4050 }
 0x5de   :  { %v1416_v11 = vmul.f32 0.5, %v4051_v2 }
 0x5df   :  { %v4053_v10 = vpop.eup %4052 }
 0x5e0   :  { %v1417_v13 = vadd.f32 0.5, %v1416_v11  ;;  %v1420_v18 = vmul.f32 0.5, %v4053_v10  ;;  %v4055_v57 = vpop.eup %4054 }
 0x5e1   :  { %v4057_v55 = vpop.eup %4056 }
 0x5e2   :  { %v1421_v14 = vadd.f32 0.5, %v1420_v18  ;;  %v1428_v26 = vmul.f32 %v4055_v57, %v1417_v13  ;;  %v1425_v23 = vmul.f32 0.5, %v4057_v55  ;;  %v4218_v18 = vld [vmem:[#allocation10 + $0xe8] ss:$16 sps:$4 sm:$0xff]   ;;  %v4219_v57 = vld [vmem:[#allocation10 + $0xcc] ss:$16 sps:$4 sm:$0xff]  }
 0x5e4   :  { %v1427_v38 = vmul.f32 %v1421_v14, %v4839_v34  ;;  %v1426_v24 = vadd.f32 0.5, %v1425_v23  ;;  %v4220_v14 = vld [vmem:[#allocation10 + $0xc8] ss:$16 sps:$4 sm:$0xff]  }
 0x5e5   :  { %v5591_v23 = vld [vmem:[#allocation25_spill] sm:$0xff] }
 0x5e6   :  { %v4905_v33 = vadd.f32 %v1428_v26, %v1427_v38  ;;  %v4221_v26 = vld [vmem:[#allocation10 + $0xac] ss:$16 sps:$4 sm:$0xff]   ;;  %v4224_v38 = vld [vmem:[#allocation10 + $0x88] ss:$16 sps:$4 sm:$0xff]  }
 0x5e8   :  { %4058 = vtanh.f32 %v4905_v33 }
 0x5f5   :  { %v4059_v27 = vpop.eup %4058 }
 0x5f6   :  { %v1431_v28 = vmul.f32 %v4059_v27, %v1426_v24 }
 0x5f8   :  { %v1432_v31 = vpack.c.bf16 %v1431_v28, %v1431_v28 }
 0x5fa   :  { %1433 = vst [vmem:[#allocation2 + $0x10] sm:$0xf] %v1432_v31  ;;  %1471 = vmatmul.mubr.bf16.vlgmr.msra.gmra.mxu1 %v1432_v31  ;;  %1512 = vmatmul.mubr.bf16.vlgmr.msra.gmra.mxu0 %v1432_v31  ;;  %v5592_v31 = vld [vmem:[#allocation26_spill] sm:$0xff] }
 0x5fb   :  { %1549 = vmatpush1.bf16.msra.mxu1 %v4752_v17  ;;  %1590 = vmatpush1.bf16.msra.mxu0 %v4557_v40 }
 0x5fc   :  { %1550 = vmatprep.subr.bf16.mxu1 %v4756_v30  ;;  %1591 = vmatprep.subr.bf16.mxu0 %v4560_v41 }
 0x5fd   :  { %1580 = vmatprep.mubr.bf16.mxu1 %v5581_v60  ;;  %1621 = vmatprep.mubr.bf16.mxu0 %v5581_v60 }
 0x5ff   :  { %1551 = vmatpush1.bf16.msra.mxu1 %v4762_v1  ;;  %1592 = vmatpush1.bf16.msra.mxu0 %v4563_v42  ;;  %v5587_v42 = vld [vmem:[#allocation23_spill] sm:$0xff] }
 0x600   :  { %1552 = vmatprep.subr.bf16.mxu1 %v4850_v12  ;;  %1593 = vmatprep.subr.bf16.mxu0 %v4567_v43 }
 0x603   :  { %1553 = vmatpush1.bf16.msra.mxu1 %v4854_v21  ;;  %1594 = vmatpush1.bf16.msra.mxu0 %v4570_v44 }
 0x604   :  { %1554 = vmatprep.subr.bf16.mxu1 %v4858_v22  ;;  %1595 = vmatprep.subr.bf16.mxu0 %v4573_v45 }
 0x607   :  { %1555 = vmatpush1.bf16.msra.mxu1 %v4862_v63  ;;  %1596 = vmatpush1.bf16.msra.mxu0 %v4576_v46 }
 0x608   :  { %1556 = vmatprep.subr.bf16.mxu1 %v4866_v4  ;;  %1597 = vmatprep.subr.bf16.mxu0 %v4580_v47  ;;  %v5588_v47 = vld [vmem:[#allocation24_spill] sm:$0xff] }
 0x60b   :  { %1557 = vmatpush1.bf16.msra.mxu1 %v4870_v6  ;;  %1598 = vmatpush1.bf16.msra.mxu0 %v4583_v48 }
 0x60c   :  { %1558 = vmatprep.subr.bf16.mxu1 %v4874_v56  ;;  %1599 = vmatprep.subr.bf16.mxu0 %v4586_v49 }
 0x60f   :  { %1559 = vmatpush1.bf16.msra.mxu1 %v4878_v25  ;;  %1600 = vmatpush1.bf16.msra.mxu0 %v4589_v50 }
 0x610   :  { %1560 = vmatprep.subr.bf16.mxu1 %v4882_v15  ;;  %1601 = vmatprep.subr.bf16.mxu0 %v4593_v51  ;;  %v5589_v51 = vld [vmem:[#allocation30_spill] sm:$0xff] }
 0x613   :  { %1561 = vmatpush1.bf16.msra.mxu1 %v4886_v16  ;;  %1602 = vmatpush1.bf16.msra.mxu0 %v4596_v52 }
 0x614   :  { %1562 = vmatprep.subr.bf16.mxu1 %v4890_v19  ;;  %1603 = vmatprep.subr.bf16.mxu0 %v4599_v53 }
 0x617   :  { %1563 = vmatpush1.bf16.msra.mxu1 %v4894_v20  ;;  %1604 = vmatpush1.bf16.msra.mxu0 %v4602_v54 }
 0x618   :  { %1658 = vmatprep.subr.bf16.mxu1 %v4740_v9  ;;  %1699 = vmatprep.subr.bf16.mxu0 %v4555_v39  ;;  %v5590_v39 = vld [vmem:[#allocation31_spill] sm:$0xff] }
 0x6ba   :  { %v1472_v40 = vpop.f32.mrf.mxu1  ;;  %v1513_v41 = vpop.f32.mrf.mxu0 }
 0x6bb   :  { %v1520_v43 = vadd.f32 %v1472_v40, %v5587_v42  ;;  %v1522_v52 = vadd.f32 %v1513_v41, %v5589_v51  ;;  %v5593_v42 = vld [vmem:[#allocation32_spill] sm:$0xff] }
 0x6bc   :  { %v1474_v44 = vpop.f32.mrf.mxu1  ;;  %v1515_v45 = vpop.f32.mrf.mxu0 }
 0x6bd   :  { %v1524_v46 = vmul.f32 0.5, %v1520_v43  ;;  %v1521_v48 = vadd.f32 %v1474_v44, %v5588_v47  ;;  %v1523_v9 = vadd.f32 %v1515_v45, %v5590_v39 }
 0x6be   :  { %v1476_v49 = vpop.f32.mrf.mxu1  ;;  %v1517_v50 = vpop.f32.mrf.mxu0 }
 0x6bf   :  { %4060 = vtanh.f32 %v1524_v46  ;;  %v1528_v53 = vmul.f32 0.5, %v1521_v48  ;;  %v1533_v32 = vmul.f32 0.5, %v1523_v9  ;;  %v5594_v46 = vld [vmem:[#allocation33_spill] sm:$0xff] }
 0x6c0   :  { %v1477_v54 = vpop.f32.mrf.mxu1  ;;  %v1518_v34 = vpop.f32.mrf.mxu0 }
 0x6c1   :  { %4062 = vtanh.f32 %v1528_v53 }
 0x6c2   :  { %4064 = vtanh.f32 %v1522_v52 }
 0x6c3   :  { %4066 = vtanh.f32 %v1533_v32 }
 0x6cc   :  { %v4061_v35 = vpop.eup %4060 }
 0x6cd   :  { %v1526_v36 = vmul.f32 0.5, %v4061_v35 }
 0x6ce   :  { %v4063_v61 = vpop.eup %4062 }
 0x6cf   :  { %v1527_v29 = vadd.f32 0.5, %v1526_v36  ;;  %v1530_v37 = vmul.f32 0.5, %v4063_v61  ;;  %v4065_v0 = vpop.eup %4064 }
 0x6d0   :  { %v4067_v7 = vpop.eup %4066 }
 0x6d1   :  { %v1531_v5 = vadd.f32 0.5, %v1530_v37  ;;  %v1538_v3 = vmul.f32 %v4065_v0, %v1527_v29  ;;  %v1535_v8 = vmul.f32 0.5, %v4067_v7  ;;  %v3898_v0 = vld [vmem:[#allocation9 + $0x1e0] ss:$16 sps:$4 sm:$0xff]   ;;  %v3909_v7 = vld [vmem:[#allocation9 + $0x1cc] ss:$16 sps:$4 sm:$0xff]  }
 0x6d3   :  { %v1537_v59 = vmul.f32 %v1531_v5, %v4905_v33  ;;  %v1536_v2 = vadd.f32 0.5, %v1535_v8  ;;  %v3900_v33 = vld [vmem:[#allocation9 + $0x1e4] ss:$16 sps:$4 sm:$0xff]   ;;  %v3901_v5 = vld [vmem:[#allocation9 + $0x1e8] ss:$16 sps:$4 sm:$0xff]  }
 0x6d4   :  { %v3907_v8 = vld [vmem:[#allocation9 + $0x1c8] ss:$16 sps:$4 sm:$0xff]  }
 0x6d5   :  { %v4947_v62 = vadd.f32 %v1538_v3, %v1537_v59  ;;  %v3906_v59 = vld [vmem:[#allocation9 + $0x1c4] ss:$16 sps:$4 sm:$0xff]  }
 0x6d7   :  { %4068 = vtanh.f32 %v4947_v62 }
 0x6e4   :  { %v4069_v11 = vpop.eup %4068 }
 0x6e5   :  { %v1541_v10 = vmul.f32 %v4069_v11, %v1536_v2  ;;  %v3912_v2 = vld [vmem:[#allocation9 + $0x1a4] ss:$16 sps:$4 sm:$0xff]   ;;  %v3915_v11 = vld [vmem:[#allocation9 + $0x1ac] ss:$16 sps:$4 sm:$0xff]  }
 0x6e7   :  { %v1542_v13 = vpack.c.bf16 %v1541_v10, %v1541_v10  ;;  %v3910_v10 = vld [vmem:[#allocation9 + $0x1a0] ss:$16 sps:$4 sm:$0xff]  }
 0x6e9   :  { %1543 = vst [vmem:[#allocation2 + $0x14] sm:$0xf] %v1542_v13  ;;  %1581 = vmatmul.mubr.bf16.vlgmr.msra.gmra.mxu1 %v1542_v13  ;;  %1622 = vmatmul.mubr.bf16.vlgmr.msra.gmra.mxu0 %v1542_v13  ;;  %v3913_v13 = vld [vmem:[#allocation9 + $0x1a8] ss:$16 sps:$4 sm:$0xff]  }
 0x6ea   :  { %1659 = vmatpush1.bf16.msra.mxu1 %v4752_v17  ;;  %1700 = vmatpush1.bf16.msra.mxu0 %v4218_v18  ;;  %v4222_v17 = vld [vmem:[#allocation10 + $0xa8] ss:$16 sps:$4 sm:$0xff]   ;;  %v3918_v18 = vld [vmem:[#allocation9 + $0x184] ss:$16 sps:$4 sm:$0xff]  }
 0x6eb   :  { %1660 = vmatprep.subr.bf16.mxu1 %v4756_v30  ;;  %1701 = vmatprep.subr.bf16.mxu0 %v4219_v57  ;;  %v4223_v30 = vld [vmem:[#allocation10 + $0x8c] ss:$16 sps:$4 sm:$0xff]  }
 0x6ec   :  { %1690 = vmatprep.mubr.bf16.mxu1 %v5581_v60  ;;  %1731 = vmatprep.mubr.bf16.mxu0 %v5581_v60  ;;  %v3921_v57 = vld [vmem:[#allocation9 + $0x18c] ss:$16 sps:$4 sm:$0xff]  }
 0x6ee   :  { %1661 = vmatpush1.bf16.msra.mxu1 %v4762_v1  ;;  %1702 = vmatpush1.bf16.msra.mxu0 %v4220_v14  ;;  %v4225_v1 = vld [vmem:[#allocation10 + $0x6c] ss:$16 sps:$4 sm:$0xff]   ;;  %v3916_v14 = vld [vmem:[#allocation9 + $0x180] ss:$16 sps:$4 sm:$0xff]  }
 0x6ef   :  { %1662 = vmatprep.subr.bf16.mxu1 %v4850_v12  ;;  %1703 = vmatprep.subr.bf16.mxu0 %v4221_v26  ;;  %v4226_v12 = vld [vmem:[#allocation10 + $0x68] ss:$16 sps:$4 sm:$0xff]  }
 0x6f0   :  { %v3919_v26 = vld [vmem:[#allocation9 + $0x188] ss:$16 sps:$4 sm:$0xff]  }
 0x6f2   :  { %1663 = vmatpush1.bf16.msra.mxu1 %v4854_v21  ;;  %1704 = vmatpush1.bf16.msra.mxu0 %v4222_v17  ;;  %v4227_v21 = vld [vmem:[#allocation10 + $0x4c] ss:$16 sps:$4 sm:$0xff]   ;;  %v3924_v17 = vld [vmem:[#allocation9 + $0x164] ss:$16 sps:$4 sm:$0xff]  }
 0x6f3   :  { %1664 = vmatprep.subr.bf16.mxu1 %v4858_v22  ;;  %1705 = vmatprep.subr.bf16.mxu0 %v4223_v30  ;;  %v4228_v22 = vld [vmem:[#allocation10 + $0x48] ss:$16 sps:$4 sm:$0xff]   ;;  %v3927_v30 = vld [vmem:[#allocation9 + $0x16c] ss:$16 sps:$4 sm:$0xff]  }
 0x6f6   :  { %1665 = vmatpush1.bf16.msra.mxu1 %v4862_v63  ;;  %1706 = vmatpush1.bf16.msra.mxu0 %v4224_v38  ;;  %v4229_v63 = vld [vmem:[#allocation10 + $0x2c] ss:$16 sps:$4 sm:$0xff]   ;;  %v3922_v38 = vld [vmem:[#allocation9 + $0x160] ss:$16 sps:$4 sm:$0xff]  }
 0x6f7   :  { %1666 = vmatprep.subr.bf16.mxu1 %v4866_v4  ;;  %1707 = vmatprep.subr.bf16.mxu0 %v4225_v1  ;;  %v4230_v4 = vld [vmem:[#allocation10 + $0x28] ss:$16 sps:$4 sm:$0xff]  }
 0x6f8   :  { %v3925_v1 = vld [vmem:[#allocation9 + $0x168] ss:$16 sps:$4 sm:$0xff]  }
 0x6fa   :  { %1667 = vmatpush1.bf16.msra.mxu1 %v4870_v6  ;;  %1708 = vmatpush1.bf16.msra.mxu0 %v4226_v12  ;;  %v4231_v6 = vld [vmem:[#allocation10 + $0xc] ss:$16 sps:$4 sm:$0xff]   ;;  %v3930_v12 = vld [vmem:[#allocation9 + $0x144] ss:$16 sps:$4 sm:$0xff]  }
 0x6fb   :  { %1668 = vmatprep.subr.bf16.mxu1 %v4874_v56  ;;  %1709 = vmatprep.subr.bf16.mxu0 %v4227_v21  ;;  %v4232_v56 = vld [vmem:[#allocation10 + $0x8] ss:$16 sps:$4 sm:$0xff]   ;;  %v3933_v21 = vld [vmem:[#allocation9 + $0x14c] ss:$16 sps:$4 sm:$0xff]  }
 0x6fe   :  { %1669 = vmatpush1.bf16.msra.mxu1 %v4878_v25  ;;  %1710 = vmatpush1.bf16.msra.mxu0 %v4228_v22  ;;  %v3903_v25 = vld [vmem:[#allocation9 + $0x1ec] ss:$16 sps:$4 sm:$0xff]   ;;  %v3928_v22 = vld [vmem:[#allocation9 + $0x140] ss:$16 sps:$4 sm:$0xff]  }
 0x6ff   :  { %1670 = vmatprep.subr.bf16.mxu1 %v4882_v15  ;;  %1711 = vmatprep.subr.bf16.mxu0 %v4229_v63  ;;  %v3931_v63 = vld [vmem:[#allocation9 + $0x148] ss:$16 sps:$4 sm:$0xff]  }
 0x702   :  { %1671 = vmatpush1.bf16.msra.mxu1 %v4886_v16  ;;  %1712 = vmatpush1.bf16.msra.mxu0 %v4230_v4  ;;  %v3936_v4 = vld [vmem:[#allocation9 + $0x124] ss:$16 sps:$4 sm:$0xff]  }
 0x703   :  { %1672 = vmatprep.subr.bf16.mxu1 %v4890_v19  ;;  %1713 = vmatprep.subr.bf16.mxu0 %v4231_v6  ;;  %v3939_v6 = vld [vmem:[#allocation9 + $0x12c] ss:$16 sps:$4 sm:$0xff]  }
 0x706   :  { %1673 = vmatpush1.bf16.msra.mxu1 %v4894_v20  ;;  %1714 = vmatpush1.bf16.msra.mxu0 %v4232_v56  ;;  %v3934_v56 = vld [vmem:[#allocation9 + $0x120] ss:$16 sps:$4 sm:$0xff]  }
 0x707   :  { %2045 = vmatprep.subr.bf16.mxu1 %v3900_v33  ;;  %2118 = vmatprep.subr.bf16.mxu0 %v3903_v25  ;;  %v3937_v33 = vld [vmem:[#allocation9 + $0x128] ss:$16 sps:$4 sm:$0xff]   ;;  %v3942_v25 = vld [vmem:[#allocation9 + $0x104] ss:$16 sps:$4 sm:$0xff]  }
 0x7a9   :  { %v1582_v55 = vpop.f32.mrf.mxu1  ;;  %v1623_v15 = vpop.f32.mrf.mxu0 }
 0x7aa   :  { %v1630_v24 = vadd.f32 %v1582_v55, %v5591_v23  ;;  %v1632_v20 = vadd.f32 %v1623_v15, %v5593_v42  ;;  %v3945_v55 = vld [vmem:[#allocation9 + $0x10c] ss:$16 sps:$4 sm:$0xff]   ;;  %v3940_v15 = vld [vmem:[#allocation9 + $0x100] ss:$16 sps:$4 sm:$0xff]   ;;  %v3943_v23 = vld [vmem:[#allocation9 + $0x108] ss:$16 sps:$4 sm:$0xff]  }
 0x7ab   :  { %v1584_v27 = vpop.f32.mrf.mxu1  ;;  %v1625_v16 = vpop.f32.mrf.mxu0  ;;  %v4997_v42 = vld [vmem:[#allocation10 + $0x1cc] ss:$16 sps:$4 sm:$0xff]  }
 0x7ac   :  { %v1634_v28 = vmul.f32 0.5, %v1630_v24  ;;  %v1631_v40 = vadd.f32 %v1584_v27, %v5592_v31  ;;  %v1633_v47 = vadd.f32 %v1625_v16, %v5594_v46  ;;  %v3946_v24 = vld [vmem:[#allocation2] sm:$0xff]   ;;  %v3947_v27 = vld [vmem:[#allocation2 + $0x8] sm:$0xff]   ;;  %v3948_v16 = vld [vmem:[#allocation2 + $0x10] sm:$0xff]  }
 0x7ad   :  { %v1586_v19 = vpop.f32.mrf.mxu1  ;;  %v1627_v41 = vpop.f32.mrf.mxu0  ;;  %v4985_v31 = vld [vmem:[#allocation10 + $0x1ec] ss:$16 sps:$4 sm:$0xff]   ;;  %v5011_v46 = vld [vmem:[#allocation10 + $0x1a0] ss:$16 sps:$4 sm:$0xff]  }
 0x7ae   :  { %4070 = vtanh.f32 %v1634_v28  ;;  %v1638_v43 = vmul.f32 0.5, %v1631_v40  ;;  %v1643_v48 = vmul.f32 0.5, %v1633_v47  ;;  %v4983_v28 = vld [vmem:[#allocation10 + $0x1e4] ss:$16 sps:$4 sm:$0xff]   ;;  %v4987_v40 = vld [vmem:[#allocation10 + $0x1e0] ss:$16 sps:$4 sm:$0xff]  }
 0x7af   :  { %v1587_v44 = vpop.f32.mrf.mxu1  ;;  %v1628_v45 = vpop.f32.mrf.mxu0  ;;  %v4989_v19 = vld [vmem:[#allocation10 + $0x1e8] ss:$16 sps:$4 sm:$0xff]   ;;  %v4995_v41 = vld [vmem:[#allocation10 + $0x1c4] ss:$16 sps:$4 sm:$0xff]  }
 0x7b0   :  { %4072 = vtanh.f32 %v1638_v43  ;;  %v5001_v43 = vld [vmem:[#allocation10 + $0x1c8] ss:$16 sps:$4 sm:$0xff]   ;;  %v5007_v44 = vld [vmem:[#allocation10 + $0x1a4] ss:$16 sps:$4 sm:$0xff]   ;;  %v5009_v45 = vld [vmem:[#allocation10 + $0x1ac] ss:$16 sps:$4 sm:$0xff]  }
 0x7b1   :  { %4074 = vtanh.f32 %v1632_v20  ;;  %v4999_v20 = vld [vmem:[#allocation10 + $0x1c0] ss:$16 sps:$4 sm:$0xff]   ;;  %v5013_v47 = vld [vmem:[#allocation10 + $0x1a8] ss:$16 sps:$4 sm:$0xff]  }
 0x7b2   :  { %4076 = vtanh.f32 %v1643_v48  ;;  %v5019_v48 = vld [vmem:[#allocation10 + $0x184] ss:$16 sps:$4 sm:$0xff]  }
 0x7bb   :  { %v4071_v49 = vpop.eup %4070 }
 0x7bc   :  { %v1636_v50 = vmul.f32 0.5, %v4071_v49  ;;  %v5021_v49 = vld [vmem:[#allocation10 + $0x18c] ss:$16 sps:$4 sm:$0xff]  }
 0x7bd   :  { %v4073_v51 = vpop.eup %4072 }
 0x7be   :  { %v1637_v52 = vadd.f32 0.5, %v1636_v50  ;;  %v1640_v53 = vmul.f32 0.5, %v4073_v51  ;;  %v4075_v54 = vpop.eup %4074  ;;  %v5023_v50 = vld [vmem:[#allocation10 + $0x180] ss:$16 sps:$4 sm:$0xff]   ;;  %v5025_v51 = vld [vmem:[#allocation10 + $0x188] ss:$16 sps:$4 sm:$0xff]  }
 0x7bf   :  { %v4077_v35 = vpop.eup %4076 }
 0x7c0   :  { %v1641_v34 = vadd.f32 0.5, %v1640_v53  ;;  %v1648_v39 = vmul.f32 %v4075_v54, %v1637_v52  ;;  %v1645_v36 = vmul.f32 0.5, %v4077_v35  ;;  %v5031_v52 = vld [vmem:[#allocation10 + $0x164] ss:$16 sps:$4 sm:$0xff]   ;;  %v5033_v53 = vld [vmem:[#allocation10 + $0x16c] ss:$16 sps:$4 sm:$0xff]  }
 0x7c1   :  { %v5035_v54 = vld [vmem:[#allocation10 + $0x160] ss:$16 sps:$4 sm:$0xff]  }
 0x7c2   :  { %v1647_v9 = vmul.f32 %v1641_v34, %v4947_v62  ;;  %v1646_v61 = vadd.f32 0.5, %v1645_v36  ;;  %v3904_v62 = vld [vmem:[#allocation9 + $0x1c0] ss:$16 sps:$4 sm:$0xff]   ;;  %v5037_v34 = vld [vmem:[#allocation10 + $0x168] ss:$16 sps:$4 sm:$0xff]  }
 0x7c3   :  { %v5047_v35 = vld [vmem:[#allocation10 + $0x140] ss:$16 sps:$4 sm:$0xff]   ;;  %v5049_v36 = vld [vmem:[#allocation10 + $0x148] ss:$16 sps:$4 sm:$0xff]  }
 0x7c4   :  { %v4972_v32 = vadd.f32 %v1648_v39, %v1647_v9  ;;  %v5043_v39 = vld [vmem:[#allocation10 + $0x144] ss:$16 sps:$4 sm:$0xff]   ;;  %v5045_v9 = vld [vmem:[#allocation10 + $0x14c] ss:$16 sps:$4 sm:$0xff]  }
 0x7c6   :  { %4078 = vtanh.f32 %v4972_v32 }
 0x7d3   :  { %v4079_v29 = vpop.eup %4078 }
 0x7d4   :  { %v1651_v37 = vmul.f32 %v4079_v29, %v1646_v61  ;;  %v5055_v61 = vld [vmem:[#allocation10 + $0x124] ss:$16 sps:$4 sm:$0xff]   ;;  %v5057_v29 = vld [vmem:[#allocation10 + $0x12c] ss:$16 sps:$4 sm:$0xff]  }
 0x7d6   :  { %v1652_v3 = vpack.c.bf16 %v1651_v37, %v1651_v37  ;;  %v5059_v37 = vld [vmem:[#allocation10 + $0x120] ss:$16 sps:$4 sm:$0xff]  }
 0x7d8   :  { %1653 = vst [vmem:[#allocation2 + $0x18] sm:$0xf] %v1652_v3  ;;  %1691 = vmatmul.mubr.bf16.vlgmr.msra.gmra.mxu1 %v1652_v3  ;;  %1732 = vmatmul.mubr.bf16.vlgmr.msra.gmra.mxu0 %v1652_v3  ;;  %v5067_v3 = vld [vmem:[#allocation10 + $0x10c] ss:$16 sps:$4 sm:$0xff]  }
 0x7d9   :  { %2046 = vmatpush1.bf16.msra.mxu1 %v3898_v0  ;;  %2119 = vmatpush1.bf16.msra.mxu0 %v3901_v5  ;;  %v5061_v0 = vld [vmem:[#allocation10 + $0x128] ss:$16 sps:$4 sm:$0xff]   ;;  %v5063_v5 = vld [vmem:[#allocation10 + $0x104] ss:$16 sps:$4 sm:$0xff]  }
 0x7da   :  { %2047 = vmatprep.subr.bf16.mxu1 %v3906_v59  ;;  %2120 = vmatprep.subr.bf16.mxu0 %v3909_v7  ;;  %v5071_v59 = vld [vmem:[#allocation10 + $0x100] ss:$16 sps:$4 sm:$0xff]   ;;  %v5073_v7 = vld [vmem:[#allocation10 + $0x108] ss:$16 sps:$4 sm:$0xff]  }
 0x7db   :  { %2077 = vmatprep.mubr.bf16.mxu1 %v5581_v60  ;;  %2150 = vmatprep.mubr.bf16.mxu0 %v5581_v60 }
 0x7dd   :  { %2048 = vmatpush1.bf16.msra.mxu1 %v3904_v62  ;;  %2121 = vmatpush1.bf16.msra.mxu0 %v3907_v8 }
 0x7de   :  { %2049 = vmatprep.subr.bf16.mxu1 %v3912_v2  ;;  %2122 = vmatprep.subr.bf16.mxu0 %v3915_v11  ;;  %v5595_v2 = vld [vmem:[#allocation27_spill] sm:$0xff] }
 0x7e1   :  { %2050 = vmatpush1.bf16.msra.mxu1 %v3910_v10  ;;  %2123 = vmatpush1.bf16.msra.mxu0 %v3913_v13 }
 0x7e2   :  { %2051 = vmatprep.subr.bf16.mxu1 %v3918_v18  ;;  %2124 = vmatprep.subr.bf16.mxu0 %v3921_v57  ;;  %v5596_v57 = vld [vmem:[#allocation28_spill] sm:$0xff] }
 0x7e5   :  { %2052 = vmatpush1.bf16.msra.mxu1 %v3916_v14  ;;  %2125 = vmatpush1.bf16.msra.mxu0 %v3919_v26 }
 0x7e6   :  { %2053 = vmatprep.subr.bf16.mxu1 %v3924_v17  ;;  %2126 = vmatprep.subr.bf16.mxu0 %v3927_v30  ;;  %v5597_v30 = vld [vmem:[#allocation34_spill] sm:$0xff] }
 0x7e9   :  { %2054 = vmatpush1.bf16.msra.mxu1 %v3922_v38  ;;  %2127 = vmatpush1.bf16.msra.mxu0 %v3925_v1 }
 0x7ea   :  { %2055 = vmatprep.subr.bf16.mxu1 %v3930_v12  ;;  %2128 = vmatprep.subr.bf16.mxu0 %v3933_v21 }
 0x7ed   :  { %2056 = vmatpush1.bf16.msra.mxu1 %v3928_v22  ;;  %2129 = vmatpush1.bf16.msra.mxu0 %v3931_v63 }
 0x7ee   :  { %2057 = vmatprep.subr.bf16.mxu1 %v3936_v4  ;;  %2130 = vmatprep.subr.bf16.mxu0 %v3939_v6 }
 0x7f1   :  { %2058 = vmatpush1.bf16.msra.mxu1 %v3934_v56  ;;  %2131 = vmatpush1.bf16.msra.mxu0 %v3937_v33 }
 0x7f2   :  { %2059 = vmatprep.subr.bf16.mxu1 %v3942_v25  ;;  %2132 = vmatprep.subr.bf16.mxu0 %v3945_v55 }
 0x7f5   :  { %2060 = vmatpush1.bf16.msra.mxu1 %v3940_v15  ;;  %2133 = vmatpush1.bf16.msra.mxu0 %v3943_v23 }
 0x7f6   :  { %2387 = vmatprep.subr.bf16.mxu1 %v4983_v28  ;;  %2428 = vmatprep.subr.bf16.mxu0 %v4985_v31 }
 0x7f8   :  { %2078 = vmatmul.mubr.bf16.vlgmr.msra.gmra.mxu1 %v3946_v24  ;;  %2151 = vmatmul.mubr.bf16.vlgmr.msra.gmra.mxu0 %v3946_v24 }
 0x7f9   :  { %2087 = vmatprep.mubr.bf16.mxu1 %v5581_v60  ;;  %2160 = vmatprep.mubr.bf16.mxu0 %v5581_v60 }
 0x7fa   :  { %2388 = vmatpush1.bf16.msra.mxu1 %v4987_v40  ;;  %2429 = vmatpush1.bf16.msra.mxu0 %v4989_v19 }
 0x7fb   :  { %2389 = vmatprep.subr.bf16.mxu1 %v4995_v41  ;;  %2430 = vmatprep.subr.bf16.mxu0 %v4997_v42 }
 0x7fe   :  { %2390 = vmatpush1.bf16.msra.mxu1 %v4999_v20  ;;  %2431 = vmatpush1.bf16.msra.mxu0 %v5001_v43 }
 0x7ff   :  { %2391 = vmatprep.subr.bf16.mxu1 %v5007_v44  ;;  %2432 = vmatprep.subr.bf16.mxu0 %v5009_v45 }
 0x800   :  { %2088 = vmatmul.mubr.bf16.gmra.mxu1 %v3947_v27  ;;  %2161 = vmatmul.mubr.bf16.gmra.mxu0 %v3947_v27 }
 0x801   :  { %2097 = vmatprep.mubr.bf16.mxu1 %v5581_v60  ;;  %2170 = vmatprep.mubr.bf16.mxu0 %v5581_v60 }
 0x802   :  { %2392 = vmatpush1.bf16.msra.mxu1 %v5011_v46  ;;  %2433 = vmatpush1.bf16.msra.mxu0 %v5013_v47 }
 0x803   :  { %2393 = vmatprep.subr.bf16.mxu1 %v5019_v48  ;;  %2434 = vmatprep.subr.bf16.mxu0 %v5021_v49 }
 0x806   :  { %2394 = vmatpush1.bf16.msra.mxu1 %v5023_v50  ;;  %2435 = vmatpush1.bf16.msra.mxu0 %v5025_v51 }
 0x807   :  { %2395 = vmatprep.subr.bf16.mxu1 %v5031_v52  ;;  %2436 = vmatprep.subr.bf16.mxu0 %v5033_v53 }
 0x808   :  { %2098 = vmatmul.mubr.bf16.gmra.mxu1 %v3948_v16  ;;  %2171 = vmatmul.mubr.bf16.gmra.mxu0 %v3948_v16 }
 0x809   :  { %2107 = vmatprep.mubr.bf16.mxu1 %v5581_v60  ;;  %2180 = vmatprep.mubr.bf16.mxu0 %v5581_v60 }
 0x80a   :  { %2396 = vmatpush1.bf16.msra.mxu1 %v5035_v54  ;;  %2437 = vmatpush1.bf16.msra.mxu0 %v5037_v34 }
 0x80b   :  { %2397 = vmatprep.subr.bf16.mxu1 %v5043_v39  ;;  %2438 = vmatprep.subr.bf16.mxu0 %v5045_v9 }
 0x80e   :  { %2398 = vmatpush1.bf16.msra.mxu1 %v5047_v35  ;;  %2439 = vmatpush1.bf16.msra.mxu0 %v5049_v36 }
 0x80f   :  { %2399 = vmatprep.subr.bf16.mxu1 %v5055_v61  ;;  %2440 = vmatprep.subr.bf16.mxu0 %v5057_v29 }
 0x812   :  { %2400 = vmatpush1.bf16.msra.mxu1 %v5059_v37  ;;  %2441 = vmatpush1.bf16.msra.mxu0 %v5061_v0 }
 0x813   :  { %2401 = vmatprep.subr.bf16.mxu1 %v5063_v5  ;;  %2442 = vmatprep.subr.bf16.mxu0 %v5067_v3 }
 0x816   :  { %2402 = vmatpush1.bf16.msra.mxu1 %v5071_v59  ;;  %2443 = vmatpush1.bf16.msra.mxu0 %v5073_v7 }
 0x817   :  { %2497 = vmatprep.subr.bf16.mxu1 %v4983_v28  ;;  %2538 = vmatprep.subr.bf16.mxu0 %v4985_v31 }
 0x898   :  { %v1692_v62 = vpop.f32.mrf.mxu1  ;;  %v1733_v8 = vpop.f32.mrf.mxu0 }
 0x899   :  { %v1740_v11 = vadd.f32 %v1692_v62, %v5595_v2  ;;  %v1742_v38 = vadd.f32 %v1733_v8, %v5597_v30 }
 0x89a   :  { %v1694_v10 = vpop.f32.mrf.mxu1  ;;  %v1735_v13 = vpop.f32.mrf.mxu0 }
 0x89b   :  { %v1744_v18 = vmul.f32 0.5, %v1740_v11  ;;  %v1741_v14 = vadd.f32 %v1694_v10, %v5596_v57  ;;  %v1743_v22 = vadd.f32 %v1735_v13, %v4703_v58 }
 0x89c   :  { %v1696_v26 = vpop.f32.mrf.mxu1  ;;  %v1737_v17 = vpop.f32.mrf.mxu0 }
 0x89d   :  { %4080 = vtanh.f32 %v1744_v18  ;;  %v1748_v1 = vmul.f32 0.5, %v1741_v14  ;;  %v1753_v63 = vmul.f32 0.5, %v1743_v22 }
 0x89e   :  { %v1697_v12 = vpop.f32.mrf.mxu1  ;;  %v1738_v21 = vpop.f32.mrf.mxu0 }
 0x89f   :  { %4082 = vtanh.f32 %v1748_v1 }
 0x8a0   :  { %4084 = vtanh.f32 %v1742_v38 }
 0x8a1   :  { %4086 = vtanh.f32 %v1753_v63 }
 0x8aa   :  { %v4081_v4 = vpop.eup %4080 }
 0x8ab   :  { %v1746_v6 = vmul.f32 0.5, %v4081_v4 }
 0x8ac   :  { %v4083_v56 = vpop.eup %4082 }
 0x8ad   :  { %v1747_v33 = vadd.f32 0.5, %v1746_v6  ;;  %v1750_v25 = vmul.f32 0.5, %v4083_v56  ;;  %v4085_v55 = vpop.eup %4084 }
 0x8ae   :  { %v4087_v16 = vpop.eup %4086 }
 0x8af   :  { %v1751_v15 = vadd.f32 0.5, %v1750_v25  ;;  %v1758_v23 = vmul.f32 %v4085_v55, %v1747_v33  ;;  %v1755_v62 = vmul.f32 0.5, %v4087_v16  ;;  %v3616_v16 = vld [vmem:[%s5552_s5 + $0x4] sm:$0xf] }
 0x8b1   :  { %v1757_v24 = vmul.f32 %v1751_v15, %v4972_v32  ;;  %v1756_v8 = vadd.f32 0.5, %v1755_v62 }
 0x8b3   :  { %v1759_v27 = vadd.f32 %v1758_v23, %v1757_v24 }
 0x8b5   :  { %4088 = vtanh.f32 %v1759_v27 }
 0x8b8   :  { %v2079_v32 = vpop.f32.mrf.mxu1  ;;  %v2152_v13 = vpop.f32.mrf.mxu0 }
 0x8ba   :  { %v2081_v18 = vpop.f32.mrf.mxu1  ;;  %v2154_v57 = vpop.f32.mrf.mxu0 }
 0x8bc   :  { %v5124_v14 = vpop.f32.mrf.mxu1  ;;  %v5126_v26 = vpop.f32.mrf.mxu0 }
 0x8be   :  { %v5128_v17 = vpop.f32.mrf.mxu1  ;;  %v5130_v30 = vpop.f32.mrf.mxu0 }
 0x8c0   :  { %v5132_v38 = vpop.f32.mrf.mxu1  ;;  %v5134_v1 = vpop.f32.mrf.mxu0 }
 0x8c1   :  { %5598 = vst [vmem:[#allocation19_spill] sm:$0xff] %v5134_v1 }
 0x8c2   :  { %v4089_v2 = vpop.eup %4088  ;;  %v5136_v12 = vpop.f32.mrf.mxu1 }
 0x8c3   :  { %v1761_v11 = vmul.f32 %v4089_v2, %v1756_v8  ;;  %5599 = vst [vmem:[#allocation20_spill] sm:$0xff] %v5136_v12  ;;  %v5138_v21 = vpop.f32.mrf.mxu0 }
 0x8c4   :  { %5600 = vst [vmem:[#allocation21_spill] sm:$0xff] %v5138_v21  ;;  %v5140_v22 = vpop.f32.mrf.mxu1 }
 0x8c5   :  { %v1762_v58 = vpack.c.bf16 %v1761_v11, %v1761_v11  ;;  %5601 = vst [vmem:[#allocation22_spill] sm:$0xff] %v5140_v22  ;;  %v5142_v63 = vpop.f32.mrf.mxu0 }
 0x8c6   :  { %5602 = vst [vmem:[#allocation29_spill] sm:$0xff] %v5142_v63  ;;  %v5144_v4 = vpop.f32.mrf.mxu1 }
 0x8c7   :  { %1763 = vst [vmem:[#allocation2 + $0x1c] sm:$0xf] %v1762_v58  ;;  %5603 = vst [vmem:[#allocation23_spill] sm:$0xff] %v5144_v4  ;;  %v5146_v6 = vpop.f32.mrf.mxu0  ;;  %v5617_v58 = vld [vmem:[#allocation18_spill] sm:$0xff] }
 0x8c8   :  { %5604 = vst [vmem:[#allocation24_spill] sm:$0xff] %v5146_v6  ;;  %v5148_v56 = vpop.f32.mrf.mxu1  ;;  %v5625_v1 = vsub.s32 3, %v5617_v58 }
 0x8c9   :  { %5605 = vst [vmem:[#allocation30_spill] sm:$0xff] %v5148_v56  ;;  %v5150_v33 = vpop.f32.mrf.mxu0 }
 0x8ca   :  { %5606 = vst [vmem:[#allocation31_spill] sm:$0xff] %v5150_v33  ;;  %v5152_v25 = vpop.f32.mrf.mxu1  ;;  %v5200_v12 = vrot.slane %v3616_v16, %v5625_v1 }
 0x8cb   :  { %5607 = vst [vmem:[#allocation25_spill] sm:$0xff] %v5152_v25  ;;  %v5154_v55 = vpop.f32.mrf.mxu0  ;;  %v5624_v25 = vsub.s32 2, %v5617_v58 }
 0x8cc   :  { %5608 = vst [vmem:[#allocation26_spill] sm:$0xff] %v5154_v55  ;;  %v5156_v15 = vpop.f32.mrf.mxu1 }
 0x8cd   :  { %5609 = vst [vmem:[#allocation32_spill] sm:$0xff] %v5156_v15  ;;  %v5158_v23 = vpop.f32.mrf.mxu0 }
 0x8ce   :  { %v3987_v10 = vld [vmem:[#allocation2 + $0x18] sm:$0xff]   ;;  %5610 = vst [vmem:[#allocation33_spill] sm:$0xff] %v5158_v23  ;;  %v5160_v24 = vpop.f32.mrf.mxu1 }
 0x8cf   :  { %2108 = vmatmul.mubr.bf16.gmra.mxu1 %v3987_v10  ;;  %2181 = vmatmul.mubr.bf16.gmra.mxu0 %v3987_v10  ;;  %5611 = vst [vmem:[#allocation27_spill] sm:$0xff] %v5160_v24  ;;  %v5162_v27 = vpop.f32.mrf.mxu0  ;;  %v5618_v10 = vsub.s32 0, %v5617_v58 }
 0x8d0   :  { %2419 = vmatprep.mubr.bf16.mxu1 %v5581_v60  ;;  %2460 = vmatprep.mubr.bf16.mxu0 %v5581_v60  ;;  %5612 = vst [vmem:[#allocation28_spill] sm:$0xff] %v5162_v27  ;;  %v5621_v27 = vsub.s32 1, %v5617_v58 }
 0x8d1   :  { %v5177_v15 = vrot.slane %v3616_v16, %v5618_v10  ;;  %v5194_v10 = vrot.slane %v3616_v16, %v5624_v25 }
 0x8d2   :  { %v5185_v55 = vrot.slane %v3616_v16, %v5621_v27 }
 0x8d7   :  { %2420 = vmatmul.mubr.bf16.vlgmr.msra.gmra.mxu1 %v5581_v60  ;;  %2461 = vmatmul.mubr.bf16.vlgmr.msra.gmra.mxu0 %v5581_v60 }
 0x8d8   :  { %2498 = vmatpush1.bf16.msra.mxu1 %v4987_v40  ;;  %2539 = vmatpush1.bf16.msra.mxu0 %v4989_v19 }
 0x8d9   :  { %2499 = vmatprep.subr.bf16.mxu1 %v4995_v41  ;;  %2540 = vmatprep.subr.bf16.mxu0 %v4997_v42 }
 0x8da   :  { %2529 = vmatprep.mubr.bf16.mxu1 %v5581_v60  ;;  %2570 = vmatprep.mubr.bf16.mxu0 %v5581_v60 }
 0x8dc   :  { %2500 = vmatpush1.bf16.msra.mxu1 %v4999_v20  ;;  %2541 = vmatpush1.bf16.msra.mxu0 %v5001_v43 }
 0x8dd   :  { %2501 = vmatprep.subr.bf16.mxu1 %v5007_v44  ;;  %2542 = vmatprep.subr.bf16.mxu0 %v5009_v45 }
 0x8e0   :  { %2502 = vmatpush1.bf16.msra.mxu1 %v5011_v46  ;;  %2543 = vmatpush1.bf16.msra.mxu0 %v5013_v47 }
 0x8e1   :  { %2503 = vmatprep.subr.bf16.mxu1 %v5019_v48  ;;  %2544 = vmatprep.subr.bf16.mxu0 %v5021_v49 }
 0x8e4   :  { %2504 = vmatpush1.bf16.msra.mxu1 %v5023_v50  ;;  %2545 = vmatpush1.bf16.msra.mxu0 %v5025_v51 }
 0x8e5   :  { %2505 = vmatprep.subr.bf16.mxu1 %v5031_v52  ;;  %2546 = vmatprep.subr.bf16.mxu0 %v5033_v53 }
 0x8e8   :  { %2506 = vmatpush1.bf16.msra.mxu1 %v5035_v54  ;;  %2547 = vmatpush1.bf16.msra.mxu0 %v5037_v34 }
 0x8e9   :  { %2507 = vmatprep.subr.bf16.mxu1 %v5043_v39  ;;  %2548 = vmatprep.subr.bf16.mxu0 %v5045_v9 }
 0x8ec   :  { %2508 = vmatpush1.bf16.msra.mxu1 %v5047_v35  ;;  %2549 = vmatpush1.bf16.msra.mxu0 %v5049_v36 }
 0x8ed   :  { %2509 = vmatprep.subr.bf16.mxu1 %v5055_v61  ;;  %2550 = vmatprep.subr.bf16.mxu0 %v5057_v29 }
 0x8f0   :  { %2510 = vmatpush1.bf16.msra.mxu1 %v5059_v37  ;;  %2551 = vmatpush1.bf16.msra.mxu0 %v5061_v0 }
 0x8f1   :  { %2511 = vmatprep.subr.bf16.mxu1 %v5063_v5  ;;  %2552 = vmatprep.subr.bf16.mxu0 %v5067_v3 }
 0x8f4   :  { %2512 = vmatpush1.bf16.msra.mxu1 %v5071_v59  ;;  %2553 = vmatpush1.bf16.msra.mxu0 %v5073_v7 }
 0x8f5   :  { %2607 = vmatprep.subr.bf16.mxu1 %v4983_v28  ;;  %2648 = vmatprep.subr.bf16.mxu0 %v4985_v31 }
 0x98f   :  { %v5167_v62 = vpop.f32.mrf.mxu1  ;;  %v5169_v8 = vpop.f32.mrf.mxu0 }
 0x990   :  { %5613 = vst [vmem:[#allocation34_spill] sm:$0xff] %v5167_v62  ;;  %5614 = vst [vmem:[#allocation35_spill] sm:$0xff] %v5169_v8  ;;  %v2080_v8 = vadd.f32 %v2079_v32, %v5177_v15 }
 0x991   :  { %v5171_v2 = vpop.f32.mrf.mxu1  ;;  %v5173_v11 = vpop.f32.mrf.mxu0 }
 0x992   :  { %5615 = vst [vmem:[#allocation36_spill] sm:$0xff] %v5171_v2  ;;  %5616 = vst [vmem:[#allocation37_spill] sm:$0xff] %v5173_v11 }
 0x993   :  { %v5179_v23 = vpop.f32.mrf.mxu1  ;;  %v5181_v24 = vpop.f32.mrf.mxu0 }
 0x994   :  { %5619 = vst [vmem:[#allocation18_spill] sm:$0xff] %v5179_v23  ;;  %5620 = vst [vmem:[#allocation38_spill] sm:$0xff] %v5181_v24  ;;  %v2082_v23 = vadd.f32 %v2081_v18, %v5185_v55  ;;  %v2155_v18 = vadd.f32 %v2154_v57, %v5200_v12 }
 0x995   :  { %v5187_v33 = vpop.f32.mrf.mxu1  ;;  %v5189_v62 = vpop.f32.mrf.mxu0 }
 0x996   :  { %5622 = vst [vmem:[#allocation39_spill] sm:$0xff] %v5187_v33  ;;  %5623 = vst [vmem:[#allocation40_spill] sm:$0xff] %v5189_v62  ;;  %v2153_v33 = vadd.f32 %v2152_v13, %v5194_v10 }
 0x997   :  { %v2421_v2 = vpop.f32.mrf.mxu1  ;;  %v2462_v11 = vpop.f32.mrf.mxu0 }
 0x998   :  { %v2469_v56 = vadd.f32 %v2421_v2, %v2080_v8  ;;  %v2471_v25 = vadd.f32 %v2462_v11, %v2153_v33  ;;  %v2084_v11 = vadd.f32 %v5124_v14, %v5177_v15 }
 0x999   :  { %v2423_v24 = vpop.f32.mrf.mxu1  ;;  %v2464_v6 = vpop.f32.mrf.mxu0 }
 0x99a   :  { %v2473_v63 = vmul.f32 0.5, %v2469_v56  ;;  %v2470_v27 = vadd.f32 %v2423_v24, %v2082_v23  ;;  %v2472_v8 = vadd.f32 %v2464_v6, %v2155_v18  ;;  %v2086_v18 = vadd.f32 %v5128_v17, %v5185_v55 }
 0x99b   :  { %v2425_v4 = vpop.f32.mrf.mxu1  ;;  %v2466_v22 = vpop.f32.mrf.mxu0  ;;  %v2159_v17 = vadd.f32 %v5130_v30, %v5200_v12 }
 0x99c   :  { %4090 = vtanh.f32 %v2473_v63  ;;  %v2477_v62 = vmul.f32 0.5, %v2470_v27  ;;  %v2482_v56 = vmul.f32 0.5, %v2472_v8 }
 0x99d   :  { %v2426_v32 = vpop.f32.mrf.mxu1  ;;  %v2467_v21 = vpop.f32.mrf.mxu0 }
 0x99e   :  { %4092 = vtanh.f32 %v2477_v62 }
 0x99f   :  { %4094 = vtanh.f32 %v2471_v25 }
 0x9a0   :  { %4096 = vtanh.f32 %v2482_v56 }
 0x9a9   :  { %v4091_v23 = vpop.eup %4090 }
 0x9aa   :  { %v2475_v4 = vmul.f32 0.5, %v4091_v23 }
 0x9ab   :  { %v4093_v22 = vpop.eup %4092 }
 0x9ac   :  { %v2476_v24 = vadd.f32 0.5, %v2475_v4  ;;  %v2479_v13 = vmul.f32 0.5, %v4093_v22  ;;  %v4095_v2 = vpop.eup %4094  ;;  %v2157_v4 = vadd.f32 %v5126_v26, %v5194_v10 }
 0x9ad   :  { %v4097_v1 = vpop.eup %4096 }
 0x9ae   :  { %v2480_v63 = vadd.f32 0.5, %v2479_v13  ;;  %v2487_v27 = vmul.f32 %v4095_v2, %v2476_v24  ;;  %v2484_v33 = vmul.f32 0.5, %v4097_v1 }
 0x9b0   :  { %v2486_v21 = vmul.f32 0.0, %v2480_v63  ;;  %v2485_v57 = vadd.f32 0.5, %v2484_v33 }
 0x9b2   :  { %v5203_v58 = vadd.f32 %v2487_v27, %v2486_v21 }
 0x9b4   :  { %4098 = vtanh.f32 %v5203_v58 }
 0x9c1   :  { %v4099_v16 = vpop.eup %4098 }
 0x9c2   :  { %v2490_v6 = vmul.f32 %v4099_v16, %v2485_v57 }
 0x9c4   :  { %v2491_v62 = vpack.c.bf16 %v2490_v6, %v2490_v6 }
 0x9c6   :  { %2492 = vst [vmem:[#allocation2] sm:$0xf] %v2491_v62  ;;  %2530 = vmatmul.mubr.bf16.vlgmr.msra.gmra.mxu1 %v2491_v62  ;;  %2571 = vmatmul.mubr.bf16.vlgmr.msra.gmra.mxu0 %v2491_v62 }
 0x9c7   :  { %2608 = vmatpush1.bf16.msra.mxu1 %v4987_v40  ;;  %2649 = vmatpush1.bf16.msra.mxu0 %v4989_v19 }
 0x9c8   :  { %2609 = vmatprep.subr.bf16.mxu1 %v4995_v41  ;;  %2650 = vmatprep.subr.bf16.mxu0 %v4997_v42 }
 0x9c9   :  { %2639 = vmatprep.mubr.bf16.mxu1 %v5581_v60  ;;  %2680 = vmatprep.mubr.bf16.mxu0 %v5581_v60 }
 0x9cb   :  { %2610 = vmatpush1.bf16.msra.mxu1 %v4999_v20  ;;  %2651 = vmatpush1.bf16.msra.mxu0 %v5001_v43 }
 0x9cc   :  { %2611 = vmatprep.subr.bf16.mxu1 %v5007_v44  ;;  %2652 = vmatprep.subr.bf16.mxu0 %v5009_v45 }
 0x9cf   :  { %2612 = vmatpush1.bf16.msra.mxu1 %v5011_v46  ;;  %2653 = vmatpush1.bf16.msra.mxu0 %v5013_v47 }
 0x9d0   :  { %2613 = vmatprep.subr.bf16.mxu1 %v5019_v48  ;;  %2654 = vmatprep.subr.bf16.mxu0 %v5021_v49 }
 0x9d3   :  { %2614 = vmatpush1.bf16.msra.mxu1 %v5023_v50  ;;  %2655 = vmatpush1.bf16.msra.mxu0 %v5025_v51 }
 0x9d4   :  { %2615 = vmatprep.subr.bf16.mxu1 %v5031_v52  ;;  %2656 = vmatprep.subr.bf16.mxu0 %v5033_v53 }
 0x9d7   :  { %2616 = vmatpush1.bf16.msra.mxu1 %v5035_v54  ;;  %2657 = vmatpush1.bf16.msra.mxu0 %v5037_v34 }
 0x9d8   :  { %2617 = vmatprep.subr.bf16.mxu1 %v5043_v39  ;;  %2658 = vmatprep.subr.bf16.mxu0 %v5045_v9 }
 0x9db   :  { %2618 = vmatpush1.bf16.msra.mxu1 %v5047_v35  ;;  %2659 = vmatpush1.bf16.msra.mxu0 %v5049_v36 }
 0x9dc   :  { %2619 = vmatprep.subr.bf16.mxu1 %v5055_v61  ;;  %2660 = vmatprep.subr.bf16.mxu0 %v5057_v29 }
 0x9df   :  { %2620 = vmatpush1.bf16.msra.mxu1 %v5059_v37  ;;  %2661 = vmatpush1.bf16.msra.mxu0 %v5061_v0 }
 0x9e0   :  { %2621 = vmatprep.subr.bf16.mxu1 %v5063_v5  ;;  %2662 = vmatprep.subr.bf16.mxu0 %v5067_v3 }
 0x9e3   :  { %2622 = vmatpush1.bf16.msra.mxu1 %v5071_v59  ;;  %2663 = vmatpush1.bf16.msra.mxu0 %v5073_v7 }
 0x9e4   :  { %2717 = vmatprep.subr.bf16.mxu1 %v4983_v28  ;;  %2758 = vmatprep.subr.bf16.mxu0 %v4985_v31 }
 0xa86   :  { %v2531_v32 = vpop.f32.mrf.mxu1  ;;  %v2572_v25 = vpop.f32.mrf.mxu0 }
 0xa87   :  { %v2579_v8 = vadd.f32 %v2531_v32, %v2084_v11  ;;  %v2581_v2 = vadd.f32 %v2572_v25, %v2157_v4 }
 0xa88   :  { %v2533_v56 = vpop.f32.mrf.mxu1  ;;  %v2574_v23 = vpop.f32.mrf.mxu0 }
 0xa89   :  { %v2583_v22 = vmul.f32 0.5, %v2579_v8  ;;  %v2580_v24 = vadd.f32 %v2533_v56, %v2086_v18  ;;  %v2582_v1 = vadd.f32 %v2574_v23, %v2159_v17 }
 0xa8a   :  { %v2535_v13 = vpop.f32.mrf.mxu1  ;;  %v2576_v63 = vpop.f32.mrf.mxu0 }
 0xa8b   :  { %4100 = vtanh.f32 %v2583_v22  ;;  %v2587_v21 = vmul.f32 0.5, %v2580_v24  ;;  %v2592_v33 = vmul.f32 0.5, %v2582_v1  ;;  %v5627_v1 = vld [vmem:[#allocation19_spill] sm:$0xff] }
 0xa8c   :  { %v2536_v27 = vpop.f32.mrf.mxu1  ;;  %v2577_v14 = vpop.f32.mrf.mxu0 }
 0xa8d   :  { %4102 = vtanh.f32 %v2587_v21 }
 0xa8e   :  { %4104 = vtanh.f32 %v2581_v2  ;;  %v5626_v2 = vld [vmem:[#allocation20_spill] sm:$0xff] }
 0xa8f   :  { %4106 = vtanh.f32 %v2592_v33  ;;  %v2092_v21 = vadd.f32 %v5626_v2, %v5185_v55  ;;  %v2163_v33 = vadd.f32 %v5627_v1, %v5194_v10 }
 0xa98   :  { %v4101_v57 = vpop.eup %4100 }
 0xa99   :  { %v2585_v16 = vmul.f32 0.5, %v4101_v57 }
 0xa9a   :  { %v4103_v6 = vpop.eup %4102 }
 0xa9b   :  { %v2586_v26 = vadd.f32 0.5, %v2585_v16  ;;  %v2589_v62 = vmul.f32 0.5, %v4103_v6  ;;  %v4105_v11 = vpop.eup %4104 }
 0xa9c   :  { %v4107_v56 = vpop.eup %4106 }
 0xa9d   :  { %v2590_v32 = vadd.f32 0.5, %v2589_v62  ;;  %v2597_v18 = vmul.f32 %v4105_v11, %v2586_v26  ;;  %v2594_v4 = vmul.f32 0.5, %v4107_v56 }
 0xa9f   :  { %v2596_v25 = vmul.f32 %v2590_v32, %v5203_v58  ;;  %v2595_v30 = vadd.f32 0.5, %v2594_v4  ;;  %v2090_v58 = vadd.f32 %v5132_v38, %v5177_v15 }
 0xaa1   :  { %v5249_v8 = vadd.f32 %v2597_v18, %v2596_v25  ;;  %v5628_v18 = vld [vmem:[#allocation21_spill] sm:$0xff] }
 0xaa2   :  { %v2165_v25 = vadd.f32 %v5628_v18, %v5200_v12 }
 0xaa3   :  { %4108 = vtanh.f32 %v5249_v8 }
 0xab0   :  { %v4109_v23 = vpop.eup %4108 }
 0xab1   :  { %v2600_v22 = vmul.f32 %v4109_v23, %v2595_v30 }
 0xab3   :  { %v2601_v24 = vpack.c.bf16 %v2600_v22, %v2600_v22 }
 0xab5   :  { %2602 = vst [vmem:[#allocation2 + $0x4] sm:$0xf] %v2601_v24  ;;  %2640 = vmatmul.mubr.bf16.vlgmr.msra.gmra.mxu1 %v2601_v24  ;;  %2681 = vmatmul.mubr.bf16.vlgmr.msra.gmra.mxu0 %v2601_v24 }
 0xab6   :  { %2718 = vmatpush1.bf16.msra.mxu1 %v4987_v40  ;;  %2759 = vmatpush1.bf16.msra.mxu0 %v4989_v19 }
 0xab7   :  { %2719 = vmatprep.subr.bf16.mxu1 %v4995_v41  ;;  %2760 = vmatprep.subr.bf16.mxu0 %v4997_v42 }
 0xab8   :  { %2749 = vmatprep.mubr.bf16.mxu1 %v5581_v60  ;;  %2790 = vmatprep.mubr.bf16.mxu0 %v5581_v60 }
 0xaba   :  { %2720 = vmatpush1.bf16.msra.mxu1 %v4999_v20  ;;  %2761 = vmatpush1.bf16.msra.mxu0 %v5001_v43 }
 0xabb   :  { %2721 = vmatprep.subr.bf16.mxu1 %v5007_v44  ;;  %2762 = vmatprep.subr.bf16.mxu0 %v5009_v45 }
 0xabe   :  { %2722 = vmatpush1.bf16.msra.mxu1 %v5011_v46  ;;  %2763 = vmatpush1.bf16.msra.mxu0 %v5013_v47 }
 0xabf   :  { %2723 = vmatprep.subr.bf16.mxu1 %v5019_v48  ;;  %2764 = vmatprep.subr.bf16.mxu0 %v5021_v49 }
 0xac2   :  { %2724 = vmatpush1.bf16.msra.mxu1 %v5023_v50  ;;  %2765 = vmatpush1.bf16.msra.mxu0 %v5025_v51 }
 0xac3   :  { %2725 = vmatprep.subr.bf16.mxu1 %v5031_v52  ;;  %2766 = vmatprep.subr.bf16.mxu0 %v5033_v53 }
 0xac6   :  { %2726 = vmatpush1.bf16.msra.mxu1 %v5035_v54  ;;  %2767 = vmatpush1.bf16.msra.mxu0 %v5037_v34 }
 0xac7   :  { %2727 = vmatprep.subr.bf16.mxu1 %v5043_v39  ;;  %2768 = vmatprep.subr.bf16.mxu0 %v5045_v9 }
 0xaca   :  { %2728 = vmatpush1.bf16.msra.mxu1 %v5047_v35  ;;  %2769 = vmatpush1.bf16.msra.mxu0 %v5049_v36 }
 0xacb   :  { %2729 = vmatprep.subr.bf16.mxu1 %v5055_v61  ;;  %2770 = vmatprep.subr.bf16.mxu0 %v5057_v29 }
 0xace   :  { %2730 = vmatpush1.bf16.msra.mxu1 %v5059_v37  ;;  %2771 = vmatpush1.bf16.msra.mxu0 %v5061_v0 }
 0xacf   :  { %2731 = vmatprep.subr.bf16.mxu1 %v5063_v5  ;;  %2772 = vmatprep.subr.bf16.mxu0 %v5067_v3 }
 0xad2   :  { %2732 = vmatpush1.bf16.msra.mxu1 %v5071_v59  ;;  %2773 = vmatpush1.bf16.msra.mxu0 %v5073_v7 }
 0xad3   :  { %2827 = vmatprep.subr.bf16.mxu1 %v4983_v28  ;;  %2868 = vmatprep.subr.bf16.mxu0 %v4985_v31 }
 0xb75   :  { %v2641_v13 = vpop.f32.mrf.mxu1  ;;  %v2682_v63 = vpop.f32.mrf.mxu0 }
 0xb76   :  { %v2689_v27 = vadd.f32 %v2641_v13, %v2090_v58  ;;  %v2691_v62 = vadd.f32 %v2682_v63, %v2163_v33 }
 0xb77   :  { %v2643_v14 = vpop.f32.mrf.mxu1  ;;  %v2684_v17 = vpop.f32.mrf.mxu0 }
 0xb78   :  { %v2693_v57 = vmul.f32 0.5, %v2689_v27  ;;  %v2690_v16 = vadd.f32 %v2643_v14, %v2092_v21  ;;  %v2692_v56 = vadd.f32 %v2684_v17, %v2165_v25 }
 0xb79   :  { %v2645_v6 = vpop.f32.mrf.mxu1  ;;  %v2686_v26 = vpop.f32.mrf.mxu0 }
 0xb7a   :  { %4110 = vtanh.f32 %v2693_v57  ;;  %v2697_v11 = vmul.f32 0.5, %v2690_v16  ;;  %v2702_v4 = vmul.f32 0.5, %v2692_v56  ;;  %v5631_v56 = vld [vmem:[#allocation29_spill] sm:$0xff] }
 0xb7b   :  { %v2646_v32 = vpop.f32.mrf.mxu1  ;;  %v2687_v38 = vpop.f32.mrf.mxu0 }
 0xb7c   :  { %4112 = vtanh.f32 %v2697_v11  ;;  %v5630_v11 = vld [vmem:[#allocation23_spill] sm:$0xff] }
 0xb7d   :  { %4114 = vtanh.f32 %v2691_v62  ;;  %v2096_v32 = vadd.f32 %v5630_v11, %v5185_v55 }
 0xb7e   :  { %4116 = vtanh.f32 %v2702_v4  ;;  %v2167_v4 = vadd.f32 %v5631_v56, %v5194_v10 }
 0xb87   :  { %v4111_v30 = vpop.eup %4110 }
 0xb88   :  { %v2695_v23 = vmul.f32 0.5, %v4111_v30 }
 0xb89   :  { %v4113_v22 = vpop.eup %4112 }
 0xb8a   :  { %v2696_v24 = vadd.f32 0.5, %v2695_v23  ;;  %v2699_v58 = vmul.f32 0.5, %v4113_v22  ;;  %v4115_v13 = vpop.eup %4114 }
 0xb8b   :  { %v4117_v14 = vpop.eup %4116 }
 0xb8c   :  { %v2700_v2 = vadd.f32 0.5, %v2699_v58  ;;  %v2707_v21 = vmul.f32 %v4115_v13, %v2696_v24  ;;  %v2704_v1 = vmul.f32 0.5, %v4117_v14 }
 0xb8e   :  { %v2706_v63 = vmul.f32 %v2700_v2, %v5249_v8  ;;  %v2705_v33 = vadd.f32 0.5, %v2704_v1  ;;  %v5629_v8 = vld [vmem:[#allocation22_spill] sm:$0xff] }
 0xb8f   :  { %v2094_v6 = vadd.f32 %v5629_v8, %v5177_v15 }
 0xb90   :  { %v5295_v27 = vadd.f32 %v2707_v21, %v2706_v63  ;;  %v5632_v63 = vld [vmem:[#allocation24_spill] sm:$0xff] }
 0xb91   :  { %v2169_v14 = vadd.f32 %v5632_v63, %v5200_v12 }
 0xb92   :  { %4118 = vtanh.f32 %v5295_v27 }
 0xb9f   :  { %v4119_v17 = vpop.eup %4118 }
 0xba0   :  { %v2710_v57 = vmul.f32 %v4119_v17, %v2705_v33 }
 0xba2   :  { %v2711_v16 = vpack.c.bf16 %v2710_v57, %v2710_v57 }
 0xba4   :  { %2712 = vst [vmem:[#allocation2 + $0x8] sm:$0xf] %v2711_v16  ;;  %2750 = vmatmul.mubr.bf16.vlgmr.msra.gmra.mxu1 %v2711_v16  ;;  %2791 = vmatmul.mubr.bf16.vlgmr.msra.gmra.mxu0 %v2711_v16 }
 0xba5   :  { %2828 = vmatpush1.bf16.msra.mxu1 %v4987_v40  ;;  %2869 = vmatpush1.bf16.msra.mxu0 %v4989_v19 }
 0xba6   :  { %2829 = vmatprep.subr.bf16.mxu1 %v4995_v41  ;;  %2870 = vmatprep.subr.bf16.mxu0 %v4997_v42 }
 0xba7   :  { %2859 = vmatprep.mubr.bf16.mxu1 %v5581_v60  ;;  %2900 = vmatprep.mubr.bf16.mxu0 %v5581_v60 }
 0xba9   :  { %2830 = vmatpush1.bf16.msra.mxu1 %v4999_v20  ;;  %2871 = vmatpush1.bf16.msra.mxu0 %v5001_v43 }
 0xbaa   :  { %2831 = vmatprep.subr.bf16.mxu1 %v5007_v44  ;;  %2872 = vmatprep.subr.bf16.mxu0 %v5009_v45 }
 0xbad   :  { %2832 = vmatpush1.bf16.msra.mxu1 %v5011_v46  ;;  %2873 = vmatpush1.bf16.msra.mxu0 %v5013_v47 }
 0xbae   :  { %2833 = vmatprep.subr.bf16.mxu1 %v5019_v48  ;;  %2874 = vmatprep.subr.bf16.mxu0 %v5021_v49 }
 0xbb1   :  { %2834 = vmatpush1.bf16.msra.mxu1 %v5023_v50  ;;  %2875 = vmatpush1.bf16.msra.mxu0 %v5025_v51 }
 0xbb2   :  { %2835 = vmatprep.subr.bf16.mxu1 %v5031_v52  ;;  %2876 = vmatprep.subr.bf16.mxu0 %v5033_v53 }
 0xbb5   :  { %2836 = vmatpush1.bf16.msra.mxu1 %v5035_v54  ;;  %2877 = vmatpush1.bf16.msra.mxu0 %v5037_v34 }
 0xbb6   :  { %2837 = vmatprep.subr.bf16.mxu1 %v5043_v39  ;;  %2878 = vmatprep.subr.bf16.mxu0 %v5045_v9 }
 0xbb9   :  { %2838 = vmatpush1.bf16.msra.mxu1 %v5047_v35  ;;  %2879 = vmatpush1.bf16.msra.mxu0 %v5049_v36 }
 0xbba   :  { %2839 = vmatprep.subr.bf16.mxu1 %v5055_v61  ;;  %2880 = vmatprep.subr.bf16.mxu0 %v5057_v29 }
 0xbbd   :  { %2840 = vmatpush1.bf16.msra.mxu1 %v5059_v37  ;;  %2881 = vmatpush1.bf16.msra.mxu0 %v5061_v0 }
 0xbbe   :  { %2841 = vmatprep.subr.bf16.mxu1 %v5063_v5  ;;  %2882 = vmatprep.subr.bf16.mxu0 %v5067_v3 }
 0xbc1   :  { %2842 = vmatpush1.bf16.msra.mxu1 %v5071_v59  ;;  %2883 = vmatpush1.bf16.msra.mxu0 %v5073_v7 }
 0xbc2   :  { %2937 = vmatprep.subr.bf16.mxu1 %v4983_v28  ;;  %2978 = vmatprep.subr.bf16.mxu0 %v4985_v31 }
 0xc64   :  { %v2751_v26 = vpop.f32.mrf.mxu1  ;;  %v2792_v62 = vpop.f32.mrf.mxu0 }
 0xc65   :  { %v2799_v38 = vadd.f32 %v2751_v26, %v2094_v6  ;;  %v2801_v58 = vadd.f32 %v2792_v62, %v2167_v4 }
 0xc66   :  { %v2753_v18 = vpop.f32.mrf.mxu1  ;;  %v2794_v25 = vpop.f32.mrf.mxu0 }
 0xc67   :  { %v2803_v30 = vmul.f32 0.5, %v2799_v38  ;;  %v2800_v23 = vadd.f32 %v2753_v18, %v2096_v32  ;;  %v2802_v1 = vadd.f32 %v2794_v25, %v2169_v14 }
 0xc68   :  { %v2755_v22 = vpop.f32.mrf.mxu1  ;;  %v2796_v24 = vpop.f32.mrf.mxu0 }
 0xc69   :  { %4120 = vtanh.f32 %v2803_v30  ;;  %v2807_v13 = vmul.f32 0.5, %v2800_v23  ;;  %v2812_v33 = vmul.f32 0.5, %v2802_v1  ;;  %v5390_v1 = vld [vmem:[#allocation10 + $0x1e0] ss:$16 sps:$4 sm:$0xff]  }
 0xc6a   :  { %v2756_v2 = vpop.f32.mrf.mxu1  ;;  %v2797_v21 = vpop.f32.mrf.mxu0 }
 0xc6b   :  { %4122 = vtanh.f32 %v2807_v13 }
 0xc6c   :  { %4124 = vtanh.f32 %v2801_v58 }
 0xc6d   :  { %4126 = vtanh.f32 %v2812_v33  ;;  %v5393_v33 = vld [vmem:[#allocation10 + $0x1e8] ss:$16 sps:$4 sm:$0xff]  }
 0xc76   :  { %v4121_v17 = vpop.eup %4120 }
 0xc77   :  { %v2805_v57 = vmul.f32 0.5, %v4121_v17  ;;  %v5396_v17 = vld [vmem:[#allocation10 + $0x1c4] ss:$16 sps:$4 sm:$0xff]  }
 0xc78   :  { %v4123_v16 = vpop.eup %4122 }
 0xc79   :  { %v2806_v8 = vadd.f32 0.5, %v2805_v57  ;;  %v2809_v6 = vmul.f32 0.5, %v4123_v16  ;;  %v4125_v26 = vpop.eup %4124  ;;  %v5399_v57 = vld [vmem:[#allocation10 + $0x1cc] ss:$16 sps:$4 sm:$0xff]   ;;  %v5404_v16 = vld [vmem:[#allocation10 + $0x1c0] ss:$16 sps:$4 sm:$0xff]  }
 0xc7a   :  { %v4127_v18 = vpop.eup %4126 }
 0xc7b   :  { %v2810_v11 = vadd.f32 0.5, %v2809_v6  ;;  %v2817_v32 = vmul.f32 %v4125_v26, %v2806_v8  ;;  %v2814_v56 = vmul.f32 0.5, %v4127_v18  ;;  %v5407_v8 = vld [vmem:[#allocation10 + $0x1c8] ss:$16 sps:$4 sm:$0xff]   ;;  %v5410_v6 = vld [vmem:[#allocation10 + $0x1a4] ss:$16 sps:$4 sm:$0xff]  }
 0xc7c   :  { %v5413_v26 = vld [vmem:[#allocation10 + $0x1ac] ss:$16 sps:$4 sm:$0xff]   ;;  %v5428_v18 = vld [vmem:[#allocation10 + $0x180] ss:$16 sps:$4 sm:$0xff]  }
 0xc7d   :  { %v2816_v62 = vmul.f32 %v2810_v11, %v5295_v27  ;;  %v2815_v4 = vadd.f32 0.5, %v2814_v56  ;;  %v5416_v11 = vld [vmem:[#allocation10 + $0x1a0] ss:$16 sps:$4 sm:$0xff]   ;;  %v5431_v56 = vld [vmem:[#allocation10 + $0x188] ss:$16 sps:$4 sm:$0xff]  }
 0xc7f   :  { %v5341_v38 = vadd.f32 %v2817_v32, %v2816_v62  ;;  %v5419_v32 = vld [vmem:[#allocation10 + $0x1a8] ss:$16 sps:$4 sm:$0xff]   ;;  %v5422_v62 = vld [vmem:[#allocation10 + $0x184] ss:$16 sps:$4 sm:$0xff]  }
 0xc81   :  { %4128 = vtanh.f32 %v5341_v38 }
 0xc8e   :  { %v4129_v25 = vpop.eup %4128 }
 0xc8f   :  { %v2820_v30 = vmul.f32 %v4129_v25, %v2815_v4  ;;  %v5434_v4 = vld [vmem:[#allocation10 + $0x164] ss:$16 sps:$4 sm:$0xff]   ;;  %v5437_v25 = vld [vmem:[#allocation10 + $0x16c] ss:$16 sps:$4 sm:$0xff]  }
 0xc91   :  { %v2821_v23 = vpack.c.bf16 %v2820_v30, %v2820_v30  ;;  %v5440_v30 = vld [vmem:[#allocation10 + $0x160] ss:$16 sps:$4 sm:$0xff]  }
 0xc93   :  { %2822 = vst [vmem:[#allocation2 + $0xc] sm:$0xf] %v2821_v23  ;;  %2860 = vmatmul.mubr.bf16.vlgmr.msra.gmra.mxu1 %v2821_v23  ;;  %2901 = vmatmul.mubr.bf16.vlgmr.msra.gmra.mxu0 %v2821_v23  ;;  %v5443_v23 = vld [vmem:[#allocation10 + $0x168] ss:$16 sps:$4 sm:$0xff]  }
 0xc94   :  { %2938 = vmatpush1.bf16.msra.mxu1 %v4987_v40  ;;  %2979 = vmatpush1.bf16.msra.mxu0 %v4989_v19  ;;  %v5633_v40 = vld [vmem:[#allocation30_spill] sm:$0xff] }
 0xc95   :  { %2939 = vmatprep.subr.bf16.mxu1 %v4995_v41  ;;  %2980 = vmatprep.subr.bf16.mxu0 %v4997_v42  ;;  %v2100_v19 = vadd.f32 %v5633_v40, %v5177_v15  ;;  %v5446_v40 = vld [vmem:[#allocation10 + $0x144] ss:$16 sps:$4 sm:$0xff]  }
 0xc96   :  { %2969 = vmatprep.mubr.bf16.mxu1 %v5581_v60  ;;  %3010 = vmatprep.mubr.bf16.mxu0 %v5581_v60 }
 0xc98   :  { %2940 = vmatpush1.bf16.msra.mxu1 %v4999_v20  ;;  %2981 = vmatpush1.bf16.msra.mxu0 %v5001_v43  ;;  %v5634_v20 = vld [vmem:[#allocation25_spill] sm:$0xff] }
 0xc99   :  { %2941 = vmatprep.subr.bf16.mxu1 %v5007_v44  ;;  %2982 = vmatprep.subr.bf16.mxu0 %v5009_v45  ;;  %v2102_v43 = vadd.f32 %v5634_v20, %v5185_v55  ;;  %v5458_v20 = vld [vmem:[#allocation10 + $0x124] ss:$16 sps:$4 sm:$0xff]  }
 0xc9c   :  { %2942 = vmatpush1.bf16.msra.mxu1 %v5011_v46  ;;  %2983 = vmatpush1.bf16.msra.mxu0 %v5013_v47  ;;  %v5635_v47 = vld [vmem:[#allocation31_spill] sm:$0xff] }
 0xc9d   :  { %2943 = vmatprep.subr.bf16.mxu1 %v5019_v48  ;;  %2984 = vmatprep.subr.bf16.mxu0 %v5021_v49  ;;  %v2173_v48 = vadd.f32 %v5635_v47, %v5194_v10  ;;  %v5473_v47 = vld [vmem:[#allocation10 + $0x10c] ss:$16 sps:$4 sm:$0xff]  }
 0xca0   :  { %2944 = vmatpush1.bf16.msra.mxu1 %v5023_v50  ;;  %2985 = vmatpush1.bf16.msra.mxu0 %v5025_v51 }
 0xca1   :  { %2945 = vmatprep.subr.bf16.mxu1 %v5031_v52  ;;  %2986 = vmatprep.subr.bf16.mxu0 %v5033_v53 }
 0xca4   :  { %2946 = vmatpush1.bf16.msra.mxu1 %v5035_v54  ;;  %2987 = vmatpush1.bf16.msra.mxu0 %v5037_v34  ;;  %v5636_v34 = vld [vmem:[#allocation26_spill] sm:$0xff] }
 0xca5   :  { %2947 = vmatprep.subr.bf16.mxu1 %v5043_v39  ;;  %2988 = vmatprep.subr.bf16.mxu0 %v5045_v9  ;;  %v2175_v39 = vadd.f32 %v5636_v34, %v5200_v12 }
 0xca8   :  { %2948 = vmatpush1.bf16.msra.mxu1 %v5047_v35  ;;  %2989 = vmatpush1.bf16.msra.mxu0 %v5049_v36 }
 0xca9   :  { %2949 = vmatprep.subr.bf16.mxu1 %v5055_v61  ;;  %2990 = vmatprep.subr.bf16.mxu0 %v5057_v29 }
 0xcac   :  { %2950 = vmatpush1.bf16.msra.mxu1 %v5059_v37  ;;  %2991 = vmatpush1.bf16.msra.mxu0 %v5061_v0 }
 0xcad   :  { %2951 = vmatprep.subr.bf16.mxu1 %v5063_v5  ;;  %2992 = vmatprep.subr.bf16.mxu0 %v5067_v3 }
 0xcb0   :  { %2952 = vmatpush1.bf16.msra.mxu1 %v5071_v59  ;;  %2993 = vmatpush1.bf16.msra.mxu0 %v5073_v7 }
 0xcb1   :  { %3047 = vmatprep.subr.bf16.mxu1 %v4983_v28  ;;  %3088 = vmatprep.subr.bf16.mxu0 %v4985_v31 }
 0xd53   :  { %v2861_v41 = vpop.f32.mrf.mxu1  ;;  %v2902_v42 = vpop.f32.mrf.mxu0 }
 0xd54   :  { %v2909_v44 = vadd.f32 %v2861_v41, %v2100_v19  ;;  %v2911_v31 = vadd.f32 %v2902_v42, %v2173_v48  ;;  %v5449_v19 = vld [vmem:[#allocation10 + $0x14c] ss:$16 sps:$4 sm:$0xff]   ;;  %v5452_v41 = vld [vmem:[#allocation10 + $0x140] ss:$16 sps:$4 sm:$0xff]   ;;  %v5455_v42 = vld [vmem:[#allocation10 + $0x148] ss:$16 sps:$4 sm:$0xff]  }
 0xd55   :  { %v2863_v45 = vpop.f32.mrf.mxu1  ;;  %v2904_v46 = vpop.f32.mrf.mxu0  ;;  %v4261_v48 = vld [vmem:[#allocation10 + $0x1e4] ss:$16 sps:$4 sm:$0xff]  }
 0xd56   :  { %v2913_v49 = vmul.f32 0.5, %v2909_v44  ;;  %v2910_v50 = vadd.f32 %v2863_v45, %v2102_v43  ;;  %v2912_v9 = vadd.f32 %v2904_v46, %v2175_v39  ;;  %v5461_v43 = vld [vmem:[#allocation10 + $0x12c] ss:$16 sps:$4 sm:$0xff]   ;;  %v5464_v44 = vld [vmem:[#allocation10 + $0x120] ss:$16 sps:$4 sm:$0xff]  }
 0xd57   :  { %v2865_v51 = vpop.f32.mrf.mxu1  ;;  %v2906_v28 = vpop.f32.mrf.mxu0  ;;  %v5467_v45 = vld [vmem:[#allocation10 + $0x128] ss:$16 sps:$4 sm:$0xff]   ;;  %v5470_v46 = vld [vmem:[#allocation10 + $0x104] ss:$16 sps:$4 sm:$0xff]  }
 0xd58   :  { %4130 = vtanh.f32 %v2913_v49  ;;  %v2917_v52 = vmul.f32 0.5, %v2910_v50  ;;  %v2922_v35 = vmul.f32 0.5, %v2912_v9  ;;  %v4262_v49 = vld [vmem:[#allocation10 + $0x1ec] ss:$16 sps:$4 sm:$0xff]   ;;  %v5637_v50 = vld [vmem:[#allocation32_spill] sm:$0xff] }
 0xd59   :  { %v2866_v53 = vpop.f32.mrf.mxu1  ;;  %v2907_v54 = vpop.f32.mrf.mxu0  ;;  %v2104_v51 = vadd.f32 %v5637_v50, %v5177_v15  ;;  %v5639_v9 = vld [vmem:[#allocation33_spill] sm:$0xff] }
 0xd5a   :  { %4132 = vtanh.f32 %v2917_v52  ;;  %v5638_v52 = vld [vmem:[#allocation27_spill] sm:$0xff] }
 0xd5b   :  { %4134 = vtanh.f32 %v2911_v31  ;;  %v2106_v53 = vadd.f32 %v5638_v52, %v5185_v55 }
 0xd5c   :  { %4136 = vtanh.f32 %v2922_v35 }
 0xd65   :  { %v4131_v36 = vpop.eup %4130 }
 0xd66   :  { %v2915_v61 = vmul.f32 0.5, %v4131_v36 }
 0xd67   :  { %v4133_v29 = vpop.eup %4132 }
 0xd68   :  { %v2916_v37 = vadd.f32 0.5, %v2915_v61  ;;  %v2919_v0 = vmul.f32 0.5, %v4133_v29  ;;  %v4135_v5 = vpop.eup %4134 }
 0xd69   :  { %v4137_v58 = vpop.eup %4136 }
 0xd6a   :  { %v2920_v3 = vadd.f32 0.5, %v2919_v0  ;;  %v2927_v27 = vmul.f32 %v4135_v5, %v2916_v37  ;;  %v2924_v13 = vmul.f32 0.5, %v4137_v58 }
 0xd6c   :  { %v2926_v22 = vmul.f32 %v2920_v3, %v5341_v38  ;;  %v2925_v2 = vadd.f32 0.5, %v2924_v13  ;;  %v5425_v38 = vld [vmem:[#allocation10 + $0x18c] ss:$16 sps:$4 sm:$0xff]   ;;  %v5640_v3 = vld [vmem:[#allocation28_spill] sm:$0xff] }
 0xd6e   :  { %v5387_v24 = vadd.f32 %v2927_v27, %v2926_v22  ;;  %v2179_v27 = vadd.f32 %v5640_v3, %v5200_v12 }
 0xd70   :  { %4138 = vtanh.f32 %v5387_v24 }
 0xd7d   :  { %v4139_v21 = vpop.eup %4138 }
 0xd7e   :  { %v2930_v63 = vmul.f32 %v4139_v21, %v2925_v2 }
 0xd80   :  { %v2931_v14 = vpack.c.bf16 %v2930_v63, %v2930_v63 }
 0xd82   :  { %2932 = vst [vmem:[#allocation2 + $0x10] sm:$0xf] %v2931_v14  ;;  %2970 = vmatmul.mubr.bf16.vlgmr.msra.gmra.mxu1 %v2931_v14  ;;  %3011 = vmatmul.mubr.bf16.vlgmr.msra.gmra.mxu0 %v2931_v14 }
 0xd83   :  { %3048 = vmatpush1.bf16.msra.mxu1 %v5390_v1  ;;  %3089 = vmatpush1.bf16.msra.mxu0 %v5393_v33 }
 0xd84   :  { %3049 = vmatprep.subr.bf16.mxu1 %v5396_v17  ;;  %3090 = vmatprep.subr.bf16.mxu0 %v5399_v57 }
 0xd85   :  { %3079 = vmatprep.mubr.bf16.mxu1 %v5581_v60  ;;  %3120 = vmatprep.mubr.bf16.mxu0 %v5581_v60 }
 0xd87   :  { %3050 = vmatpush1.bf16.msra.mxu1 %v5404_v16  ;;  %3091 = vmatpush1.bf16.msra.mxu0 %v5407_v8 }
 0xd88   :  { %3051 = vmatprep.subr.bf16.mxu1 %v5410_v6  ;;  %3092 = vmatprep.subr.bf16.mxu0 %v5413_v26 }
 0xd8b   :  { %3052 = vmatpush1.bf16.msra.mxu1 %v5416_v11  ;;  %3093 = vmatpush1.bf16.msra.mxu0 %v5419_v32 }
 0xd8c   :  { %3053 = vmatprep.subr.bf16.mxu1 %v5422_v62  ;;  %3094 = vmatprep.subr.bf16.mxu0 %v5425_v38 }
 0xd8f   :  { %3054 = vmatpush1.bf16.msra.mxu1 %v5428_v18  ;;  %3095 = vmatpush1.bf16.msra.mxu0 %v5431_v56 }
 0xd90   :  { %3055 = vmatprep.subr.bf16.mxu1 %v5434_v4  ;;  %3096 = vmatprep.subr.bf16.mxu0 %v5437_v25 }
 0xd93   :  { %3056 = vmatpush1.bf16.msra.mxu1 %v5440_v30  ;;  %3097 = vmatpush1.bf16.msra.mxu0 %v5443_v23 }
 0xd94   :  { %3057 = vmatprep.subr.bf16.mxu1 %v5446_v40  ;;  %3098 = vmatprep.subr.bf16.mxu0 %v5449_v19 }
 0xd97   :  { %3058 = vmatpush1.bf16.msra.mxu1 %v5452_v41  ;;  %3099 = vmatpush1.bf16.msra.mxu0 %v5455_v42 }
 0xd98   :  { %3059 = vmatprep.subr.bf16.mxu1 %v5458_v20  ;;  %3100 = vmatprep.subr.bf16.mxu0 %v5461_v43 }
 0xd9b   :  { %3060 = vmatpush1.bf16.msra.mxu1 %v5464_v44  ;;  %3101 = vmatpush1.bf16.msra.mxu0 %v5467_v45 }
 0xd9c   :  { %3061 = vmatprep.subr.bf16.mxu1 %v5470_v46  ;;  %3102 = vmatprep.subr.bf16.mxu0 %v5473_v47 }
 0xd9f   :  { %3062 = vmatpush1.bf16.msra.mxu1 %v5071_v59  ;;  %3103 = vmatpush1.bf16.msra.mxu0 %v5073_v7  ;;  %v2177_v59 = vadd.f32 %v5639_v9, %v5194_v10 }
 0xda0   :  { %3157 = vmatprep.subr.bf16.mxu1 %v4261_v48  ;;  %3198 = vmatprep.subr.bf16.mxu0 %v4262_v49 }
 0xe42   :  { %v2971_v28 = vpop.f32.mrf.mxu1  ;;  %v3012_v31 = vpop.f32.mrf.mxu0 }
 0xe43   :  { %v3019_v54 = vadd.f32 %v2971_v28, %v2104_v51  ;;  %v3021_v29 = vadd.f32 %v3012_v31, %v2177_v59 }
 0xe44   :  { %v2973_v34 = vpop.f32.mrf.mxu1  ;;  %v3014_v39 = vpop.f32.mrf.mxu0 }
 0xe45   :  { %v3023_v35 = vmul.f32 0.5, %v3019_v54  ;;  %v3020_v7 = vadd.f32 %v2973_v34, %v2106_v53  ;;  %v3022_v22 = vadd.f32 %v3014_v39, %v2179_v27 }
 0xe46   :  { %v2975_v36 = vpop.f32.mrf.mxu1  ;;  %v3016_v61 = vpop.f32.mrf.mxu0 }
 0xe47   :  { %4140 = vtanh.f32 %v3023_v35  ;;  %v3027_v37 = vmul.f32 0.5, %v3020_v7  ;;  %v3032_v58 = vmul.f32 0.5, %v3022_v22  ;;  %v4000_v22 = vld [vmem:[#allocation12 + $0x30] sm:$0xff]  }
 0xe48   :  { %v2976_v0 = vpop.f32.mrf.mxu1  ;;  %v3017_v5 = vpop.f32.mrf.mxu0 }
 0xe49   :  { %4142 = vtanh.f32 %v3027_v37 }
 0xe4a   :  { %4144 = vtanh.f32 %v3021_v29 }
 0xe4b   :  { %4146 = vtanh.f32 %v3032_v58  ;;  %v3999_v58 = vld [vmem:[#allocation2] sm:$0xff]  }
 0xe54   :  { %v4141_v13 = vpop.eup %4140 }
 0xe55   :  { %v3025_v2 = vmul.f32 0.5, %v4141_v13  ;;  %v4001_v13 = vld [vmem:[#allocation12 + $0x28] sm:$0xff]  }
 0xe56   :  { %v4143_v21 = vpop.eup %4142 }
 0xe57   :  { %v3026_v63 = vadd.f32 0.5, %v3025_v2  ;;  %v3029_v14 = vmul.f32 0.5, %v4143_v21  ;;  %v4145_v48 = vpop.eup %4144  ;;  %v4002_v2 = vld [vmem:[#allocation12 + $0x20] sm:$0xff]   ;;  %v4003_v21 = vld [vmem:[#allocation12 + $0x18] sm:$0xff]  }
 0xe58   :  { %v4147_v31 = vpop.eup %4146 }
 0xe59   :  { %v3030_v49 = vadd.f32 0.5, %v3029_v14  ;;  %v3037_v50 = vmul.f32 %v4145_v48, %v3026_v63  ;;  %v3034_v52 = vmul.f32 0.5, %v4147_v31  ;;  %v4004_v63 = vld [vmem:[#allocation12 + $0x10] sm:$0xff]   ;;  %v4005_v14 = vld [vmem:[#allocation12 + $0x8] sm:$0xff]   ;;  %v4006_v48 = vld [vmem:[#allocation12] sm:$0xff]  }
 0xe5b   :  { %v3036_v51 = vmul.f32 %v3030_v49, %v5387_v24  ;;  %v3035_v53 = vadd.f32 0.5, %v3034_v52  ;;  %v4264_v24 = vld [vmem:[#allocation10 + $0x108] ss:$16 sps:$4 sm:$0xff]   ;;  %v4007_v49 = vld [vmem:[#allocation2 + $0x8] sm:$0xff]  }
 0xe5d   :  { %v5487_v28 = vadd.f32 %v3037_v50, %v3036_v51  ;;  %v5645_v51 = vld [vmem:[#allocation18_spill] sm:$0xff] }
 0xe5f   :  { %4148 = vtanh.f32 %v5487_v28 }
 0xe6c   :  { %v4149_v54 = vpop.eup %4148 }
 0xe6d   :  { %v3040_v34 = vmul.f32 %v4149_v54, %v3035_v53  ;;  %v5646_v53 = vld [vmem:[#allocation39_spill] sm:$0xff] }
 0xe6e   :  { %v2116_v54 = vadd.f32 %v5646_v53, %v5185_v55 }
 0xe6f   :  { %v3041_v39 = vpack.c.bf16 %v3040_v34, %v3040_v34 }
 0xe71   :  { %3042 = vst [vmem:[#allocation2 + $0x14] sm:$0xf] %v3041_v39  ;;  %3080 = vmatmul.mubr.bf16.vlgmr.msra.gmra.mxu1 %v3041_v39  ;;  %3121 = vmatmul.mubr.bf16.vlgmr.msra.gmra.mxu0 %v3041_v39 }
 0xe72   :  { %3158 = vmatpush1.bf16.msra.mxu1 %v5390_v1  ;;  %3199 = vmatpush1.bf16.msra.mxu0 %v5393_v33  ;;  %v3998_v1 = vld [vmem:[#allocation12 + $0x38] sm:$0xff]   ;;  %v5641_v33 = vld [vmem:[#allocation34_spill] sm:$0xff] }
 0xe73   :  { %3159 = vmatprep.subr.bf16.mxu1 %v5396_v17  ;;  %3200 = vmatprep.subr.bf16.mxu0 %v5399_v57  ;;  %v2110_v17 = vadd.f32 %v5641_v33, %v5177_v15 }
 0xe74   :  { %3189 = vmatprep.mubr.bf16.mxu1 %v5581_v60  ;;  %3230 = vmatprep.mubr.bf16.mxu0 %v5581_v60  ;;  %v4263_v60 = vld [vmem:[#allocation10 + $0x100] ss:$16 sps:$4 sm:$0xff]  }
 0xe76   :  { %3160 = vmatpush1.bf16.msra.mxu1 %v5404_v16  ;;  %3201 = vmatpush1.bf16.msra.mxu0 %v5407_v8  ;;  %v5642_v8 = vld [vmem:[#allocation36_spill] sm:$0xff] }
 0xe77   :  { %3161 = vmatprep.subr.bf16.mxu1 %v5410_v6  ;;  %3202 = vmatprep.subr.bf16.mxu0 %v5413_v26  ;;  %v2112_v6 = vadd.f32 %v5642_v8, %v5185_v55 }
 0xe78   :  { %v4008_v50 = vld [vmem:[#allocation2 + $0x10] sm:$0xff]  }
 0xe7a   :  { %3162 = vmatpush1.bf16.msra.mxu1 %v5416_v11  ;;  %3203 = vmatpush1.bf16.msra.mxu0 %v5419_v32 }
 0xe7b   :  { %3163 = vmatprep.subr.bf16.mxu1 %v5422_v62  ;;  %3204 = vmatprep.subr.bf16.mxu0 %v5425_v38  ;;  %v5643_v62 = vld [vmem:[#allocation35_spill] sm:$0xff] }
 0xe7c   :  { %v2183_v38 = vadd.f32 %v5643_v62, %v5194_v10 }
 0xe7e   :  { %3164 = vmatpush1.bf16.msra.mxu1 %v5428_v18  ;;  %3205 = vmatpush1.bf16.msra.mxu0 %v5431_v56 }
 0xe7f   :  { %3165 = vmatprep.subr.bf16.mxu1 %v5434_v4  ;;  %3206 = vmatprep.subr.bf16.mxu0 %v5437_v25 }
 0xe82   :  { %3166 = vmatpush1.bf16.msra.mxu1 %v5440_v30  ;;  %3207 = vmatpush1.bf16.msra.mxu0 %v5443_v23 }
 0xe83   :  { %3167 = vmatprep.subr.bf16.mxu1 %v5446_v40  ;;  %3208 = vmatprep.subr.bf16.mxu0 %v5449_v19 }
 0xe86   :  { %3168 = vmatpush1.bf16.msra.mxu1 %v5452_v41  ;;  %3209 = vmatpush1.bf16.msra.mxu0 %v5455_v42  ;;  %v5644_v41 = vld [vmem:[#allocation37_spill] sm:$0xff] }
 0xe87   :  { %3169 = vmatprep.subr.bf16.mxu1 %v5458_v20  ;;  %3210 = vmatprep.subr.bf16.mxu0 %v5461_v43  ;;  %v2185_v42 = vadd.f32 %v5644_v41, %v5200_v12  ;;  %v3685_v41 = vld [vmem:[%s5554_s7] ss:$0 sm:$0xff]  ;;  %s4403_s7 = smov [#allocation13]  }
 0xe88   :  { %s3516_s13 = sshll.u32 %s4403_s7, 4  ;;  %s3517_s13 = int_to_ptr.vmem [resolvable:$true] %s3516_s13 }
 0xe89   :  { %s4365_s14 = scalar_lea.vmem %s3517_s13, 1024  ;;  %p4370_p12 = scmp.lt.s32.totalorder %s3517_s13, %s3517_s13 }
 0xe8a   :  { %3170 = vmatpush1.bf16.msra.mxu1 %v5464_v44  ;;  %3211 = vmatpush1.bf16.msra.mxu0 %v5467_v45  ;;  %p4366_p11 = scmp.ne.s32.totalorder %s3517_s13, %s4365_s14  ;;  %p4371_p13 = scmp.lt.s32.totalorder %s4365_s14, %s4365_s14 }
 0xe8b   :  { %3171 = vmatprep.subr.bf16.mxu1 %v5470_v46  ;;  %3212 = vmatprep.subr.bf16.mxu0 %v5473_v47 }
 0xe8c   :  { %p4372_p0 = por %p4371_p13, %p4370_p12 }
 0xe8e   :  { %3172 = vmatpush1.bf16.msra.mxu1 %v4263_v60  ;;  %3213 = vmatpush1.bf16.msra.mxu0 %v4264_v24  ;;  %v5647_v24 = vld [vmem:[#allocation38_spill] sm:$0xff]  ;;  %p4373_p1 = pnand %p4372_p0, %p4366_p11 }
 0xe8f   :  { %3756 = vmatprep.subr.bf16.mxu1 %v3998_v1 }
 0xf31   :  { %v3081_v57 = vpop.f32.mrf.mxu1  ;;  %v3122_v16 = vpop.f32.mrf.mxu0 }
 0xf32   :  { %v3129_v26 = vadd.f32 %v3081_v57, %v2110_v17  ;;  %v3131_v30 = vadd.f32 %v3122_v16, %v2183_v38 }
 0xf33   :  { %v3083_v11 = vpop.f32.mrf.mxu1  ;;  %v3124_v32 = vpop.f32.mrf.mxu0 }
 0xf34   :  { %v3133_v18 = vmul.f32 0.5, %v3129_v26  ;;  %v3130_v56 = vadd.f32 %v3083_v11, %v2112_v6  ;;  %v3132_v20 = vadd.f32 %v3124_v32, %v2185_v42  ;;  %v5648_v11 = vld [vmem:[#allocation40_spill] sm:$0xff] }
 0xf35   :  { %v3085_v4 = vpop.f32.mrf.mxu1  ;;  %v3126_v25 = vpop.f32.mrf.mxu0  ;;  %v2189_v55 = vadd.f32 %v5648_v11, %v5200_v12 }
 0xf36   :  { %4150 = vtanh.f32 %v3133_v18  ;;  %v3137_v23 = vmul.f32 0.5, %v3130_v56  ;;  %v3142_v43 = vmul.f32 0.5, %v3132_v20 }
 0xf37   :  { %v3086_v40 = vpop.f32.mrf.mxu1  ;;  %v3127_v19 = vpop.f32.mrf.mxu0 }
 0xf38   :  { %4152 = vtanh.f32 %v3137_v23 }
 0xf39   :  { %4154 = vtanh.f32 %v3131_v30 }
 0xf3a   :  { %4156 = vtanh.f32 %v3142_v43 }
 0xf43   :  { %v4151_v44 = vpop.eup %4150 }
 0xf44   :  { %v3135_v45 = vmul.f32 0.5, %v4151_v44 }
 0xf45   :  { %v4153_v46 = vpop.eup %4152 }
 0xf46   :  { %v3136_v47 = vadd.f32 0.5, %v3135_v45  ;;  %v3139_v9 = vmul.f32 0.5, %v4153_v46  ;;  %v4155_v59 = vpop.eup %4154 }
 0xf47   :  { %v4157_v29 = vpop.eup %4156 }
 0xf48   :  { %v3140_v35 = vadd.f32 0.5, %v3139_v9  ;;  %v3147_v7 = vmul.f32 %v4155_v59, %v3136_v47  ;;  %v3144_v37 = vmul.f32 0.5, %v4157_v29 }
 0xf4a   :  { %v3146_v36 = vmul.f32 %v3140_v35, %v5487_v28  ;;  %v3145_v0 = vadd.f32 0.5, %v3144_v37  ;;  %v2114_v28 = vadd.f32 %v5645_v51, %v5177_v15 }
 0xf4c   :  { %v5529_v61 = vadd.f32 %v3147_v7, %v3146_v36 }
 0xf4e   :  { %4158 = vtanh.f32 %v5529_v61 }
 0xf5b   :  { %v4159_v5 = vpop.eup %4158 }
 0xf5c   :  { %v3150_v3 = vmul.f32 %v4159_v5, %v3145_v0 }
 0xf5e   :  { %v3151_v27 = vpack.c.bf16 %v3150_v3, %v3150_v3 }
 0xf60   :  { %3152 = vst [vmem:[#allocation2 + $0x18] sm:$0xf] %v3151_v27  ;;  %3190 = vmatmul.mubr.bf16.vlgmr.msra.gmra.mxu1 %v3151_v27  ;;  %3231 = vmatmul.mubr.bf16.vlgmr.msra.gmra.mxu0 %v3151_v27 }
 0xf61   :  { %3757 = vmatpush3.bf16.msra.mxu1 %v3998_v1  ;;  %3772 = vmatprep.mubr.bf16.mxu1 %v3999_v58  ;;  %v2187_v1 = vadd.f32 %v5647_v24, %v5194_v10 }
 0xf62   :  { %3758 = vmatprep.subr.bf16.mxu1 %v4000_v22 }
 0xf65   :  { %3759 = vmatpush3.bf16.msra.mxu1 %v4000_v22 }
 0xf66   :  { %3760 = vmatprep.subr.bf16.mxu1 %v4001_v13 }
 0xf69   :  { %3761 = vmatpush3.bf16.msra.mxu1 %v4001_v13 }
 0xf6a   :  { %3762 = vmatprep.subr.bf16.mxu1 %v4002_v2 }
 0xf6d   :  { %3763 = vmatpush3.bf16.msra.mxu1 %v4002_v2 }
 0xf6e   :  { %3764 = vmatprep.subr.bf16.mxu1 %v4003_v21 }
 0xf71   :  { %3765 = vmatpush3.bf16.msra.mxu1 %v4003_v21 }
 0xf72   :  { %3766 = vmatprep.subr.bf16.mxu1 %v4004_v63 }
 0xf75   :  { %3767 = vmatpush3.bf16.msra.mxu1 %v4004_v63 }
 0xf76   :  { %3768 = vmatprep.subr.bf16.mxu1 %v4005_v14 }
 0xf79   :  { %3769 = vmatpush3.bf16.msra.mxu1 %v4005_v14 }
 0xf7a   :  { %3770 = vmatprep.subr.bf16.mxu1 %v4006_v48 }
 0xf7d   :  { %3771 = vmatpush3.bf16.msra.mxu1 %v4006_v48 }
 0xf80   :  { %3773 = vmatmul.mubr.bf16.vlgmr.msra.gmra.mxu1 %v4007_v49 }
 0xf81   :  { %3776 = vmatprep.mubr.bf16.mxu1 %v4008_v50 }
0x1020   :  { %v3191_v31 = vpop.f32.mrf.mxu1  ;;  %v3232_v52 = vpop.f32.mrf.mxu0 }
0x1021   :  { %v3239_v34 = vadd.f32 %v3191_v31, %v2114_v28  ;;  %v3241_v8 = vadd.f32 %v3232_v52, %v2187_v1 }
0x1022   :  { %v3193_v39 = vpop.f32.mrf.mxu1  ;;  %v3234_v60 = vpop.f32.mrf.mxu0 }
0x1023   :  { %v3243_v33 = vmul.f32 0.5, %v3239_v34  ;;  %v3240_v17 = vadd.f32 %v3193_v39, %v2116_v54  ;;  %v3242_v32 = vadd.f32 %v3234_v60, %v2189_v55 }
0x1024   :  { %v3195_v57 = vpop.f32.mrf.mxu1  ;;  %v3236_v16 = vpop.f32.mrf.mxu0 }
0x1025   :  { %4160 = vtanh.f32 %v3243_v33  ;;  %v3247_v6 = vmul.f32 0.5, %v3240_v17  ;;  %v3252_v62 = vmul.f32 0.5, %v3242_v32 }
0x1026   :  { %v3196_v26 = vpop.f32.mrf.mxu1  ;;  %v3237_v15 = vpop.f32.mrf.mxu0 }
0x1027   :  { %4162 = vtanh.f32 %v3247_v6 }
0x1028   :  { %4164 = vtanh.f32 %v3241_v8 }
0x1029   :  { %4166 = vtanh.f32 %v3252_v62 }
0x1032   :  { %v4161_v38 = vpop.eup %4160 }
0x1033   :  { %v3245_v18 = vmul.f32 0.5, %v4161_v38 }
0x1034   :  { %v4163_v56 = vpop.eup %4162 }
0x1035   :  { %v3246_v10 = vadd.f32 0.5, %v3245_v18  ;;  %v3249_v4 = vmul.f32 0.5, %v4163_v56  ;;  %v4165_v25 = vpop.eup %4164 }
0x1036   :  { %v4167_v20 = vpop.eup %4166 }
0x1037   :  { %v3250_v30 = vadd.f32 0.5, %v3249_v4  ;;  %v3257_v23 = vmul.f32 %v4165_v25, %v3246_v10  ;;  %v3254_v46 = vmul.f32 0.5, %v4167_v20 }
0x1039   :  { %v3256_v40 = vmul.f32 %v3250_v30, %v5529_v61  ;;  %v3255_v35 = vadd.f32 0.5, %v3254_v46 }
0x103b   :  { %v3258_v19 = vadd.f32 %v3257_v23, %v3256_v40 }
0x103d   :  { %4168 = vtanh.f32 %v3258_v19 }
0x1040   :  { %v3774_v12 = vpop.f32.mrf.mxu1 }
0x1041   :  { %v3409_v42 = vadd.f32 %v3774_v12, %v3685_v41 }
0x1042   :  { %v3400_v43 = vpop.f32.mrf.mxu1 }
0x1043   :  { %v3401_v44 = vadd.f32 %v3685_v41, %v3400_v43  ;;  %3435 = vmax.xlane.f32.xlu1 %v3409_v42 }
0x1044   :  { %v3775_v45 = vpop.f32.mrf.mxu1 }
0x1045   :  { %v3412_v47 = vadd.f32 %v3775_v45, %v3685_v41  ;;  %3431 = vmax.xlane.f32.xlu0 %v3401_v44 }
0x1046   :  { %v3403_v9 = vpop.f32.mrf.mxu1 }
0x1047   :  { %v3404_v59 = vadd.f32 %v3685_v41, %v3403_v9  ;;  %3437 = vmax.xlane.f32.xlu1 %v3412_v47 }
0x1049   :  { %3433 = vmax.xlane.f32.xlu0 %v3404_v59 }
0x104a   :  { %v4169_v7 = vpop.eup %4168 }
0x104b   :  { %v3260_v36 = vmul.f32 %v4169_v7, %v3255_v35 }
0x104d   :  { %v3261_v61 = vpack.c.bf16 %v3260_v36, %v3260_v36 }
0x104f   :  { %3262 = vst [vmem:[#allocation2 + $0x1c] sm:$0xf] %v3261_v61 }
0x1056   :  { %v4009_v29 = vld [vmem:[#allocation2 + $0x18] sm:$0xff]  }
0x1057   :  { %3777 = vmatmul.mubr.bf16.gmra.mxu1 %v4009_v29 }
0x10cc   :  { %v3436_v0 = vpop.xlane.xlu1 %3435 }
0x10cd   :  { %v3449_v27 = vsub.f32 %v3409_v42, %v3436_v0 }
0x10ce   :  { %v3432_v37 = vpop.xlane.xlu0 %3431 }
0x10cf   :  { %v3447_v5 = vsub.f32 %v3401_v44, %v3432_v37  ;;  %v3459_v2 = vmul.f32 1.442695, %v3449_v27 }
0x10d0   :  { %v3438_v13 = vpop.xlane.xlu1 %3437 }
0x10d1   :  { %v3455_v22 = vmul.f32 1.442695, %v3447_v5  ;;  %v3450_v21 = vsub.f32 %v3412_v47, %v3438_v13 }
0x10d2   :  { %v3434_v3 = vpop.xlane.xlu0 %3433 }
0x10d3   :  { %v3448_v58 = vsub.f32 %v3404_v59, %v3434_v3  ;;  %4170 = vpow2.f32 %v3455_v22  ;;  %v3461_v49 = vmul.f32 1.442695, %v3450_v21 }
0x10d4   :  { %4172 = vpow2.f32 %v3459_v2 }
0x10d5   :  { %v3457_v63 = vmul.f32 1.442695, %v3448_v58 }
0x10d7   :  { %4174 = vpow2.f32 %v3457_v63 }
0x10d8   :  { %4176 = vpow2.f32 %v3461_v49 }
0x10e0   :  { %v4171_v54 = vpop.eup %4170 }
0x10e1   :  { %v4173_v34 = vpop.eup %4172 }
0x10e4   :  { %v4175_v39 = vpop.eup %4174 }
0x10e5   :  { %v4177_v60 = vpop.eup %4176 }
0x1117   :  { %v3778_v14 = vpop.f32.mrf.mxu1 }
0x1118   :  { %v3425_v31 = vadd.f32 %v3778_v14, %v3685_v41 }
0x1119   :  { %v3416_v48 = vpop.f32.mrf.mxu1 }
0x111a   :  { %v3417_v50 = vadd.f32 %v3685_v41, %v3416_v48 }
0x111b   :  { %v3779_v51 = vpop.f32.mrf.mxu1 }
0x111c   :  { %3439 = vmax.xlane.f32.xlu0 %v3417_v50  ;;  %v3428_v53 = vadd.f32 %v3779_v51, %v3685_v41 }
0x111d   :  { %v3419_v28 = vpop.f32.mrf.mxu1 }
0x111e   :  { %v3420_v52 = vadd.f32 %v3685_v41, %v3419_v28 }
0x1120   :  { %3441 = vmax.xlane.f32.xlu1 %v3420_v52  ;;  %3443 = vmax.xlane.f32.xlu0 %v3425_v31 }
0x1124   :  { %3445 = vmax.xlane.f32.xlu1 %v3428_v53  ;;  %3471 = vadd.xlane.f32.xlu0 %v4171_v54 }
0x1128   :  { %3475 = vadd.xlane.f32.xlu0 %v4173_v34  ;;  %3473 = vadd.xlane.f32.xlu1 %v4175_v39 }
0x112c   :  { %3477 = vadd.xlane.f32.xlu1 %v4177_v60 }
0x11a5   :  { %v3440_v24 = vpop.xlane.xlu0 %3439 }
0x11a6   :  { %v3451_v1 = vsub.f32 %v3417_v50, %v3440_v24 }
0x11a8   :  { %v3463_v33 = vmul.f32 1.442695, %v3451_v1 }
0x11a9   :  { %v3442_v17 = vpop.xlane.xlu1 %3441  ;;  %v3444_v57 = vpop.xlane.xlu0 %3443 }
0x11aa   :  { %4178 = vpow2.f32 %v3463_v33  ;;  %v3452_v16 = vsub.f32 %v3420_v52, %v3442_v17  ;;  %v3453_v8 = vsub.f32 %v3425_v31, %v3444_v57 }
0x11ac   :  { %v3465_v6 = vmul.f32 1.442695, %v3452_v16  ;;  %v3467_v26 = vmul.f32 1.442695, %v3453_v8 }
0x11ad   :  { %v3446_v15 = vpop.xlane.xlu1 %3445  ;;  %v3472_v11 = vpop.xlane.xlu0 %3471 }
0x11ae   :  { %4180 = vpow2.f32 %v3465_v6  ;;  %v3454_v55 = vsub.f32 %v3428_v53, %v3446_v15 }
0x11af   :  { %4182 = vpow2.f32 %v3467_v26 }
0x11b0   :  { %v3469_v32 = vmul.f32 1.442695, %v3454_v55  ;;  %4184 = vrcp.f32 %v3472_v11 }
0x11b1   :  { %v3474_v62 = vpop.xlane.xlu1 %3473  ;;  %v3476_v38 = vpop.xlane.xlu0 %3475 }
0x11b2   :  { %4186 = vpow2.f32 %v3469_v32 }
0x11b3   :  { %4188 = vrcp.f32 %v3474_v62 }
0x11b4   :  { %4190 = vrcp.f32 %v3476_v38 }
0x11b5   :  { %v3478_v18 = vpop.xlane.xlu1 %3477 }
0x11b6   :  { %4192 = vrcp.f32 %v3478_v18 }
0x11b7   :  { %v4179_v56 = vpop.eup %4178 }
0x11b8   :  { %3479 = vadd.xlane.f32.xlu0 %v4179_v56 }
0x11bb   :  { %v4181_v10 = vpop.eup %4180 }
0x11bc   :  { %v4183_v4 = vpop.eup %4182  ;;  %3481 = vadd.xlane.f32.xlu1 %v4181_v10 }
0x11bd   :  { %v4185_v25 = vpop.eup %4184  ;;  %3483 = vadd.xlane.f32.xlu0 %v4183_v4 }
0x11be   :  { %v3488_v30 = vmul.f32 %v4185_v25, %v4171_v54 }
0x11bf   :  { %v4187_v23 = vpop.eup %4186 }
0x11c0   :  { %v4189_v40 = vpop.eup %4188  ;;  %3503 = vst [vmem:[#allocation13] sm:$0xff] %v3488_v30  ;;  %3485 = vadd.xlane.f32.xlu1 %v4187_v23 }
0x11c1   :  { %v4191_v19 = vpop.eup %4190  ;;  %v3490_v41 = vmul.f32 %v4189_v40, %v4175_v39 }
0x11c2   :  { %v3492_v12 = vmul.f32 %v4191_v19, %v4173_v34 }
0x11c3   :  { %v4193_v42 = vpop.eup %4192  ;;  %3504 = vst [vmem:[#allocation13 + $0x8] sm:$0xff] %v3490_v41 }
0x11c4   :  { %3505 = vst [vmem:[#allocation13 + $0x10] sm:$0xff] %v3492_v12  ;;  %v3494_v20 = vmul.f32 %v4193_v42, %v4177_v60 }
0x11c6   :  { %3506 = vst [vmem:[#allocation13 + $0x18] sm:$0xff] %v3494_v20 }
0x1241   :  { %v3480_v43 = vpop.xlane.xlu0 %3479 }
0x1242   :  { %4194 = vrcp.f32 %v3480_v43 }
0x1245   :  { %v3482_v44 = vpop.xlane.xlu1 %3481 }
0x1246   :  { %4196 = vrcp.f32 %v3482_v44  ;;  %v3484_v45 = vpop.xlane.xlu0 %3483 }
0x1247   :  { %4198 = vrcp.f32 %v3484_v45 }
0x1249   :  { %v3486_v46 = vpop.xlane.xlu1 %3485 }
0x124a   :  { %4200 = vrcp.f32 %v3486_v46 }
0x124f   :  { %v4195_v47 = vpop.eup %4194 }
0x1250   :  { %v3496_v9 = vmul.f32 %v4195_v47, %v4179_v56 }
0x1252   :  { %3507 = vst [vmem:[#allocation13 + $0x20] sm:$0xff] %v3496_v9 }
0x1253   :  { %v4197_v59 = vpop.eup %4196 }
0x1254   :  { %v4199_v35 = vpop.eup %4198  ;;  %v3498_v7 = vmul.f32 %v4197_v59, %v4181_v10 }
0x1255   :  { %v3500_v36 = vmul.f32 %v4199_v35, %v4183_v4 }
0x1256   :  { %3508 = vst [vmem:[#allocation13 + $0x28] sm:$0xff] %v3498_v7 }
0x1257   :  { %v4201_v61 = vpop.eup %4200  ;;  %3509 = vst [vmem:[#allocation13 + $0x30] sm:$0xff] %v3500_v36 }
0x1258   :  { %v3502_v29 = vmul.f32 %v4201_v61, %v4187_v23 }
0x125a   :  { %3510 = vst [vmem:[#allocation13 + $0x38] sm:$0xff] %v3502_v29 }
0x125b   :  { %4376 = shalt.err (!%p4373_p1)
}
0x125c   :  { %s4404_s15 = smov 128   ;;  %s4405_s16 = smov 8  }
0x125d   :  { %3522 = dma.vmem_to_hbm [thread:$0]  %s3517_s13, 1024, %s5555_s8, [#allocation6], %s4404_s15, %s4404_s15, %s4405_s16  }
0x125e   :  { %4391 = dma.done.wait [#allocation6], 1024  }
0x125f   :  { %4392 = vsyncadd [#allocation6], 4294966272 }
0x1260   :  { %3526 = vsyncpa [#allocation5], 1 }
0x1261   :  { %3527 = vsyncpa [#allocation8], 1 }
0x1262   :  { %3528 = vsyncpa [#allocation11], 1 }
0x1263   :  { %3529 = vsyncpa [#allocation6], 1 }

</bundles_post_ra>
